<compile_context>
chip_gen: v6e
topology: v6e:2x2x1
jax: 0.10.0
libtpu: 0.0.40
codegen_flags: <defaults>
</compile_context>

<pallas_src>
import functools

import jax
import jax.numpy as jnp
from jax import lax
from jax.experimental import pallas as pl
from jax.experimental.pallas import tpu as pltpu

EPS = 1e-5


def _shift_w(ah, dx, use_roll):
    """W-axis (sublane) shift with reflection at the boundary.

    dx=0 -> left-neighbour values  (out[:, w] = ah[:, w-1], reflect at w=0)
    dx=2 -> right-neighbour values (out[:, w] = ah[:, w+1], reflect at w=W-1)
    """
    W = ah.shape[1]
    if dx == 0:
        edge, edge_col, shift = ah[:, 1:2, :], 0, 1
    else:
        edge, edge_col, shift = ah[:, W - 2:W - 1, :], W - 1, W - 1
    if use_roll:
        rolled = pltpu.roll(ah, shift=shift, axis=1)          # one XLU rotate
        col = lax.broadcasted_iota(jnp.int32, (1, W, 1), 1)
        return jnp.where(col == edge_col, edge, rolled)       # fix 1 column
    # Fallback: sublane concatenate (known-good, slower).
    if dx == 0:
        return jnp.concatenate([edge, ah[:, :W - 1, :]], axis=1)
    return jnp.concatenate([ah[:, 1:, :], edge], axis=1)


def residual_block_kernel(x_ref, w1_ref, w2_ref, o_ref, *, use_roll):
    # x_ref / o_ref block: (1, H, W, C) in the input dtype (f32 here).
    # w*_ref: (9*C, C) bf16 resident in VMEM, rows ordered (dy*3 + dx)*C + cin.
    x = x_ref[0]
    H, W, C = x.shape
    inv_hw = jnp.float32(1.0 / (H * W))

    def conv3x3_in(a_bf16, w_ref, relu):
        # Reflection pad along H (major axis): cheap whole-row copies.
        ah = jnp.concatenate([a_bf16[1:2], a_bf16, a_bf16[H - 2:H - 1]],
                             axis=0)                           # (H+2, W, C)
        # Lane-concatenated dx slab: slab[h, w, dx*C + c] = x_pad[h, w+dx-1, c].
        left = _shift_w(ah, 0, use_roll)
        right = _shift_w(ah, 2, use_roll)
        slab = jnp.concatenate([left, ah, right], axis=-1)     # (H+2, W, 3C)

        # 3 MXU matmuls (K = 3C), one per dy; the dy view is a free H offset.
        acc = None
        for dy in range(3):
            patch = slab[dy:dy + H]                            # (H, W, 3C)
            w_dy = w_ref[dy * 3 * C:(dy + 1) * 3 * C, :]       # (3C, C) bf16
            part = jnp.einsum("hwi,io->hwo", patch, w_dy,
                              preferred_element_type=jnp.float32)
            acc = part if acc is None else acc + part          # 3 f32 RMWs

        # Fused non-affine InstanceNorm (single-pass stats) + optional ReLU.
        s = jnp.sum(acc, axis=(0, 1), keepdims=True)           # (1, 1, C)
        ss = jnp.sum(acc * acc, axis=(0, 1), keepdims=True)    # (1, 1, C)
        mu = s * inv_hw
        var = jnp.maximum(ss * inv_hw - mu * mu, 0.0)          # biased variance
        y = (acc - mu) * lax.rsqrt(var + EPS)
        if relu:
            # bf16 hand-off: feeds conv2's MXU directly (cast is a no-op there).
            return jnp.maximum(y, 0.0).astype(jnp.bfloat16)
        return y                                               # f32 for residual

    xf = x.astype(jnp.float32)
    h = conv3x3_in(x.astype(jnp.bfloat16), w1_ref, relu=True)  # bf16 out
    h = conv3x3_in(h, w2_ref, relu=False)                      # f32 out
    o_ref[0] = (xf + h).astype(o_ref.dtype)                    # residual add


def _flatten_weight(w_torch):
    # (Cout, Cin, 3, 3) -> (9*Cin, Cout), row = (dy*3 + dx)*Cin + cin, bf16.
    c_out, c_in = w_torch.shape[0], w_torch.shape[1]
    w = jnp.transpose(w_torch, (2, 3, 1, 0))                   # (dy, dx, Cin, Cout)
    return w.reshape(9 * c_in, c_out).astype(jnp.bfloat16)


def _build_call(N, H, W, C, dtype, *, use_roll, resident_weights):
    kernel = functools.partial(residual_block_kernel, use_roll=use_roll)
    if resident_weights:
        # Whole-array VMEM residents: fetched once, single-buffered.
        w_spec = pl.BlockSpec(memory_space=pltpu.MemorySpace.VMEM)
    else:
        w_spec = pl.BlockSpec((9 * C, C), lambda n: (0, 0))
    return pl.pallas_call(
        kernel,
        out_shape=jax.ShapeDtypeStruct((N, H, W, C), dtype),
        grid_spec=pltpu.PrefetchScalarGridSpec(
            num_scalar_prefetch=0,
            grid=(N,),
            in_specs=[
                pl.BlockSpec((1, H, W, C), lambda n: (n, 0, 0, 0)),
                w_spec,
                w_spec,
            ],
            out_specs=pl.BlockSpec((1, H, W, C), lambda n: (n, 0, 0, 0)),
        ),
        compiler_params=pltpu.CompilerParams(
            dimension_semantics=("parallel",),
            vmem_limit_bytes=48 * 1024 * 1024),
    )


def residual_block_nhwc(x_nhwc, w1_2d, w2_2d):
    """x_nhwc: (N, H, W, C); w*_2d: (9*C, C) bf16 dy/dx/cin-major weight slabs."""
    N, H, W, C = x_nhwc.shape
    # Optimized config first; graceful fallback if a toolchain rejects the 3-D
    # bf16 sublane roll or the whole-array VMEM weight operands.
    configs = (
        dict(use_roll=True, resident_weights=True),
        dict(use_roll=False, resident_weights=True),
        dict(use_roll=False, resident_weights=False),   # proven baseline
    )
    last_err = None
    for cfg in configs:
        try:
            call = _build_call(N, H, W, C, x_nhwc.dtype, **cfg)
            return jax.block_until_ready(call(x_nhwc, w1_2d, w2_2d))
        except Exception as e:  # pragma: no cover - only on unsupported lowering
            last_err = e
    raise last_err


def residual_block(x_nchw, w1_t, b1, w2_t, b2):
    """Torch-compatible wrapper. x_nchw: (N, C, H, W); w*_t: (Cout, Cin, 3, 3).

    b1/b2 are accepted for API parity but not sent to the kernel: a per-channel
    bias before a non-affine InstanceNorm is exactly cancelled by the mean
    subtraction, so the result is identical.
    """
    del b1, b2
    x = jnp.transpose(x_nchw, (0, 2, 3, 1))                    # NHWC once
    out = residual_block_nhwc(x, _flatten_weight(w1_t), _flatten_weight(w2_t))
    return jnp.transpose(out, (0, 3, 1, 2))                    # back to NCHW


# ---------------- pure-JAX reference (for correctness check) ----------------
def _ref_block(x, w1, b1, w2, b2):
    def conv(a, w, b):
        ap = jnp.pad(a, ((0, 0), (0, 0), (1, 1), (1, 1)), mode="reflect")
        y = lax.conv_general_dilated(
            ap, w, window_strides=(1, 1), padding="VALID",
            dimension_numbers=("NCHW", "OIHW", "NCHW"))
        return y + b[None, :, None, None]

    def inorm(a):
        mu = a.mean(axis=(2, 3), keepdims=True)
        var = ((a - mu) ** 2).mean(axis=(2, 3), keepdims=True)
        return (a - mu) / jnp.sqrt(var + EPS)

    h = jnp.maximum(inorm(conv(x, w1, b1)), 0.0)
    return x + inorm(conv(h, w2, b2))


if __name__ == "__main__":
    key = jax.random.PRNGKey(0)
    N, C, H, W = 2, 4, 16, 16
    k_x, k_w1, k_b1, k_w2, k_b2 = jax.random.split(key, 5)

    x = jax.random.normal(k_x, (N, C, H, W), dtype=jnp.float32)
    # torch Conv2d parameter shapes: weight (Cout, Cin, 3, 3), bias (Cout,)
    w1 = 0.1 * jax.random.normal(k_w1, (C, C, 3, 3), dtype=jnp.float32)
    b1 = 0.1 * jax.random.normal(k_b1, (C,), dtype=jnp.float32)
    w2 = 0.1 * jax.random.normal(k_w2, (C, C, 3, 3), dtype=jnp.float32)
    b2 = 0.1 * jax.random.normal(k_b2, (C,), dtype=jnp.float32)

    out = jax.block_until_ready(residual_block(x, w1, b1, w2, b2))
    ref = jax.block_until_ready(_ref_block(x, w1, b1, w2, b2))

    assert out.shape == (N, C, H, W)
    # bf16 MXU operands (f32 accumulation, f32 IN stats) => ~1e-2-level
    # deviation vs the pure-f32 reference; tolerance loosened accordingly.
    max_err = float(jnp.max(jnp.abs(out - ref)))
    assert jnp.allclose(out, ref, atol=5e-2, rtol=5e-2), max_err

    print("KERNEL_OK")
</pallas_src>

<mosaic_0001>
module attributes {stable_mosaic.version = 11 : i64} {
  func.func @residual_block_kernel(%arg0: i32, %arg1: memref<1x16x16x4xf32, #tpu.memory_space<vmem>>, %arg2: memref<36x4xbf16, #tpu.memory_space<vmem>>, %arg3: memref<36x4xbf16, #tpu.memory_space<vmem>>, %arg4: memref<1x16x16x4xf32, #tpu.memory_space<vmem>>) attributes {dimension_semantics = [#tpu.dimension_semantics<parallel>], iteration_bounds = array<i64: 2>, scalar_prefetch = 0 : i64, scratch_operands = 0 : i64, tpu.core_type = #tpu.core_type<tc>, window_params = [{transform_indices = @transform_0, window_bounds = array<i64: 1, 16, 16, 4>}, {pipeline_mode = #tpu.pipeline_mode<synchronous>, transform_indices = @transform_1, window_bounds = array<i64: 36, 4>}, {pipeline_mode = #tpu.pipeline_mode<synchronous>, transform_indices = @transform_2, window_bounds = array<i64: 36, 4>}, {transform_indices = @transform_3, window_bounds = array<i64: 1, 16, 16, 4>}]} {
    %c0 = arith.constant 0 : index
    %c0_0 = arith.constant 0 : index
    %c0_1 = arith.constant 0 : index
    %c0_2 = arith.constant 0 : index
    %0 = vector.load %arg1[%c0, %c0_0, %c0_1, %c0_2] : memref<1x16x16x4xf32, #tpu.memory_space<vmem>>, vector<1x16x16x4xf32>
    %1 = vector.shape_cast %0 : vector<1x16x16x4xf32> to vector<16x16x4xf32>
    %2 = arith.truncf %1 : vector<16x16x4xf32> to vector<16x16x4xbf16>
    %3 = vector.extract_strided_slice %2 {offsets = [1, 0, 0], sizes = [1, 16, 4], strides = [1, 1, 1]} : vector<16x16x4xbf16> to vector<1x16x4xbf16>
    %4 = vector.extract_strided_slice %2 {offsets = [14, 0, 0], sizes = [1, 16, 4], strides = [1, 1, 1]} : vector<16x16x4xbf16> to vector<1x16x4xbf16>
    %5 = tpu.concatenate %3, %2, %4 in 0 : vector<1x16x4xbf16>, vector<16x16x4xbf16>, vector<1x16x4xbf16> -> vector<18x16x4xbf16>
    %6 = vector.extract_strided_slice %5 {offsets = [0, 1, 0], sizes = [18, 1, 4], strides = [1, 1, 1]} : vector<18x16x4xbf16> to vector<18x1x4xbf16>
    %c1_i32 = arith.constant 1 : i32
    %7 = tpu.dynamic_rotate %5 by %c1_i32 dim 1 : vector<18x16x4xbf16>, i32 -> vector<18x16x4xbf16>
    %8 = tpu.iota {dimensions = array<i32: 1>} : vector<1x16x1xi32>
    %c0_i32 = arith.constant 0 : i32
    %9 = vector.broadcast %c0_i32 : i32 to vector<1x16x1xi32>
    %10 = arith.cmpi eq, %8, %9 : vector<1x16x1xi32>
    %11 = vector.shape_cast %10 : vector<1x16x1xi1> to vector<1x16x1xi1>
    %12 = vector.broadcast %11 : vector<1x16x1xi1> to vector<18x16x4xi1>
    %13 = vector.shape_cast %6 : vector<18x1x4xbf16> to vector<18x1x4xbf16>
    %14 = vector.broadcast %13 : vector<18x1x4xbf16> to vector<18x16x4xbf16>
    %15 = arith.select %12, %14, %7 : vector<18x16x4xi1>, vector<18x16x4xbf16>
    %16 = vector.extract_strided_slice %5 {offsets = [0, 14, 0], sizes = [18, 1, 4], strides = [1, 1, 1]} : vector<18x16x4xbf16> to vector<18x1x4xbf16>
    %c15_i32 = arith.constant 15 : i32
    %17 = tpu.dynamic_rotate %5 by %c15_i32 dim 1 : vector<18x16x4xbf16>, i32 -> vector<18x16x4xbf16>
    %18 = tpu.iota {dimensions = array<i32: 1>} : vector<1x16x1xi32>
    %c15_i32_3 = arith.constant 15 : i32
    %19 = vector.broadcast %c15_i32_3 : i32 to vector<1x16x1xi32>
    %20 = arith.cmpi eq, %18, %19 : vector<1x16x1xi32>
    %21 = vector.shape_cast %20 : vector<1x16x1xi1> to vector<1x16x1xi1>
    %22 = vector.broadcast %21 : vector<1x16x1xi1> to vector<18x16x4xi1>
    %23 = vector.shape_cast %16 : vector<18x1x4xbf16> to vector<18x1x4xbf16>
    %24 = vector.broadcast %23 : vector<18x1x4xbf16> to vector<18x16x4xbf16>
    %25 = arith.select %22, %24, %17 : vector<18x16x4xi1>, vector<18x16x4xbf16>
    %26 = tpu.concatenate %15, %5, %25 in 2 : vector<18x16x4xbf16>, vector<18x16x4xbf16>, vector<18x16x4xbf16> -> vector<18x16x12xbf16>
    %27 = vector.extract_strided_slice %26 {offsets = [0, 0, 0], sizes = [16, 16, 12], strides = [1, 1, 1]} : vector<18x16x12xbf16> to vector<16x16x12xbf16>
    %c0_4 = arith.constant 0 : index
    %c0_5 = arith.constant 0 : index
    %28 = vector.load %arg2[%c0_4, %c0_5] : memref<36x4xbf16, #tpu.memory_space<vmem>>, vector<12x4xbf16>
    "tpu.trace_start"() <{level = 10 : i32, message = "hwi,io->hwo"}> : () -> ()
    %cst = arith.constant dense<0.000000e+00> : vector<16x16x4xf32>
    %29 = tpu.matmul %27, %28, %cst {dimension_numbers = #tpu.dot_dimension_numbers<[2], [0], [0, 1], [1], [0, 0, 0, 1, 1, 1], [], []>} : vector<16x16x12xbf16>, vector<12x4xbf16>, vector<16x16x4xf32> -> vector<16x16x4xf32>
    "tpu.trace_stop"() : () -> ()
    %30 = vector.extract_strided_slice %26 {offsets = [1, 0, 0], sizes = [16, 16, 12], strides = [1, 1, 1]} : vector<18x16x12xbf16> to vector<16x16x12xbf16>
    %c12 = arith.constant 12 : index
    %c0_6 = arith.constant 0 : index
    %31 = vector.load %arg2[%c12, %c0_6] : memref<36x4xbf16, #tpu.memory_space<vmem>>, vector<12x4xbf16>
    "tpu.trace_start"() <{level = 10 : i32, message = "hwi,io->hwo"}> : () -> ()
    %cst_7 = arith.constant dense<0.000000e+00> : vector<16x16x4xf32>
    %32 = tpu.matmul %30, %31, %cst_7 {dimension_numbers = #tpu.dot_dimension_numbers<[2], [0], [0, 1], [1], [0, 0, 0, 1, 1, 1], [], []>} : vector<16x16x12xbf16>, vector<12x4xbf16>, vector<16x16x4xf32> -> vector<16x16x4xf32>
    "tpu.trace_stop"() : () -> ()
    %33 = arith.addf %29, %32 : vector<16x16x4xf32>
    %34 = vector.extract_strided_slice %26 {offsets = [2, 0, 0], sizes = [16, 16, 12], strides = [1, 1, 1]} : vector<18x16x12xbf16> to vector<16x16x12xbf16>
    %c24 = arith.constant 24 : index
    %c0_8 = arith.constant 0 : index
    %35 = vector.load %arg2[%c24, %c0_8] : memref<36x4xbf16, #tpu.memory_space<vmem>>, vector<12x4xbf16>
    "tpu.trace_start"() <{level = 10 : i32, message = "hwi,io->hwo"}> : () -> ()
    %cst_9 = arith.constant dense<0.000000e+00> : vector<16x16x4xf32>
    %36 = tpu.matmul %34, %35, %cst_9 {dimension_numbers = #tpu.dot_dimension_numbers<[2], [0], [0, 1], [1], [0, 0, 0, 1, 1, 1], [], []>} : vector<16x16x12xbf16>, vector<12x4xbf16>, vector<16x16x4xf32> -> vector<16x16x4xf32>
    "tpu.trace_stop"() : () -> ()
    %37 = arith.addf %33, %36 : vector<16x16x4xf32>
    %cst_10 = arith.constant dense<0.000000e+00> : vector<4xf32>
    %38 = vector.multi_reduction <add>, %37, %cst_10 [0, 1] : vector<16x16x4xf32> to vector<4xf32>
    %39 = vector.shape_cast %38 : vector<4xf32> to vector<1x1x4xf32>
    %40 = arith.mulf %37, %37 : vector<16x16x4xf32>
    %cst_11 = arith.constant dense<0.000000e+00> : vector<4xf32>
    %41 = vector.multi_reduction <add>, %40, %cst_11 [0, 1] : vector<16x16x4xf32> to vector<4xf32>
    %42 = vector.shape_cast %41 : vector<4xf32> to vector<1x1x4xf32>
    %cst_12 = arith.constant 3.906250e-03 : f32
    %43 = vector.broadcast %cst_12 : f32 to vector<1x1x4xf32>
    %44 = arith.mulf %39, %43 : vector<1x1x4xf32>
    %cst_13 = arith.constant 3.906250e-03 : f32
    %45 = vector.broadcast %cst_13 : f32 to vector<1x1x4xf32>
    %46 = arith.mulf %42, %45 : vector<1x1x4xf32>
    %47 = arith.mulf %44, %44 : vector<1x1x4xf32>
    %48 = arith.subf %46, %47 : vector<1x1x4xf32>
    %cst_14 = arith.constant 0.000000e+00 : f32
    %49 = vector.broadcast %cst_14 : f32 to vector<1x1x4xf32>
    %50 = arith.maximumf %48, %49 : vector<1x1x4xf32>
    %51 = vector.broadcast %44 : vector<1x1x4xf32> to vector<16x16x4xf32>
    %52 = arith.subf %37, %51 : vector<16x16x4xf32>
    %cst_15 = arith.constant 9.99999974E-6 : f32
    %53 = vector.broadcast %cst_15 : f32 to vector<1x1x4xf32>
    %54 = arith.addf %50, %53 : vector<1x1x4xf32>
    %55 = math.rsqrt %54 : vector<1x1x4xf32>
    %56 = vector.broadcast %55 : vector<1x1x4xf32> to vector<16x16x4xf32>
    %57 = arith.mulf %52, %56 : vector<16x16x4xf32>
    %cst_16 = arith.constant 0.000000e+00 : f32
    %58 = vector.broadcast %cst_16 : f32 to vector<16x16x4xf32>
    %59 = arith.maximumf %57, %58 : vector<16x16x4xf32>
    %60 = arith.truncf %59 : vector<16x16x4xf32> to vector<16x16x4xbf16>
    %61 = vector.extract_strided_slice %60 {offsets = [1, 0, 0], sizes = [1, 16, 4], strides = [1, 1, 1]} : vector<16x16x4xbf16> to vector<1x16x4xbf16>
    %62 = vector.extract_strided_slice %60 {offsets = [14, 0, 0], sizes = [1, 16, 4], strides = [1, 1, 1]} : vector<16x16x4xbf16> to vector<1x16x4xbf16>
    %63 = tpu.concatenate %61, %60, %62 in 0 : vector<1x16x4xbf16>, vector<16x16x4xbf16>, vector<1x16x4xbf16> -> vector<18x16x4xbf16>
    %64 = vector.extract_strided_slice %63 {offsets = [0, 1, 0], sizes = [18, 1, 4], strides = [1, 1, 1]} : vector<18x16x4xbf16> to vector<18x1x4xbf16>
    %c1_i32_17 = arith.constant 1 : i32
    %65 = tpu.dynamic_rotate %63 by %c1_i32_17 dim 1 : vector<18x16x4xbf16>, i32 -> vector<18x16x4xbf16>
    %66 = tpu.iota {dimensions = array<i32: 1>} : vector<1x16x1xi32>
    %c0_i32_18 = arith.constant 0 : i32
    %67 = vector.broadcast %c0_i32_18 : i32 to vector<1x16x1xi32>
    %68 = arith.cmpi eq, %66, %67 : vector<1x16x1xi32>
    %69 = vector.shape_cast %68 : vector<1x16x1xi1> to vector<1x16x1xi1>
    %70 = vector.broadcast %69 : vector<1x16x1xi1> to vector<18x16x4xi1>
    %71 = vector.shape_cast %64 : vector<18x1x4xbf16> to vector<18x1x4xbf16>
    %72 = vector.broadcast %71 : vector<18x1x4xbf16> to vector<18x16x4xbf16>
    %73 = arith.select %70, %72, %65 : vector<18x16x4xi1>, vector<18x16x4xbf16>
    %74 = vector.extract_strided_slice %63 {offsets = [0, 14, 0], sizes = [18, 1, 4], strides = [1, 1, 1]} : vector<18x16x4xbf16> to vector<18x1x4xbf16>
    %c15_i32_19 = arith.constant 15 : i32
    %75 = tpu.dynamic_rotate %63 by %c15_i32_19 dim 1 : vector<18x16x4xbf16>, i32 -> vector<18x16x4xbf16>
    %76 = tpu.iota {dimensions = array<i32: 1>} : vector<1x16x1xi32>
    %c15_i32_20 = arith.constant 15 : i32
    %77 = vector.broadcast %c15_i32_20 : i32 to vector<1x16x1xi32>
    %78 = arith.cmpi eq, %76, %77 : vector<1x16x1xi32>
    %79 = vector.shape_cast %78 : vector<1x16x1xi1> to vector<1x16x1xi1>
    %80 = vector.broadcast %79 : vector<1x16x1xi1> to vector<18x16x4xi1>
    %81 = vector.shape_cast %74 : vector<18x1x4xbf16> to vector<18x1x4xbf16>
    %82 = vector.broadcast %81 : vector<18x1x4xbf16> to vector<18x16x4xbf16>
    %83 = arith.select %80, %82, %75 : vector<18x16x4xi1>, vector<18x16x4xbf16>
    %84 = tpu.concatenate %73, %63, %83 in 2 : vector<18x16x4xbf16>, vector<18x16x4xbf16>, vector<18x16x4xbf16> -> vector<18x16x12xbf16>
    %85 = vector.extract_strided_slice %84 {offsets = [0, 0, 0], sizes = [16, 16, 12], strides = [1, 1, 1]} : vector<18x16x12xbf16> to vector<16x16x12xbf16>
    %c0_21 = arith.constant 0 : index
    %c0_22 = arith.constant 0 : index
    %86 = vector.load %arg3[%c0_21, %c0_22] : memref<36x4xbf16, #tpu.memory_space<vmem>>, vector<12x4xbf16>
    "tpu.trace_start"() <{level = 10 : i32, message = "hwi,io->hwo"}> : () -> ()
    %cst_23 = arith.constant dense<0.000000e+00> : vector<16x16x4xf32>
    %87 = tpu.matmul %85, %86, %cst_23 {dimension_numbers = #tpu.dot_dimension_numbers<[2], [0], [0, 1], [1], [0, 0, 0, 1, 1, 1], [], []>} : vector<16x16x12xbf16>, vector<12x4xbf16>, vector<16x16x4xf32> -> vector<16x16x4xf32>
    "tpu.trace_stop"() : () -> ()
    %88 = vector.extract_strided_slice %84 {offsets = [1, 0, 0], sizes = [16, 16, 12], strides = [1, 1, 1]} : vector<18x16x12xbf16> to vector<16x16x12xbf16>
    %c12_24 = arith.constant 12 : index
    %c0_25 = arith.constant 0 : index
    %89 = vector.load %arg3[%c12_24, %c0_25] : memref<36x4xbf16, #tpu.memory_space<vmem>>, vector<12x4xbf16>
    "tpu.trace_start"() <{level = 10 : i32, message = "hwi,io->hwo"}> : () -> ()
    %cst_26 = arith.constant dense<0.000000e+00> : vector<16x16x4xf32>
    %90 = tpu.matmul %88, %89, %cst_26 {dimension_numbers = #tpu.dot_dimension_numbers<[2], [0], [0, 1], [1], [0, 0, 0, 1, 1, 1], [], []>} : vector<16x16x12xbf16>, vector<12x4xbf16>, vector<16x16x4xf32> -> vector<16x16x4xf32>
    "tpu.trace_stop"() : () -> ()
    %91 = arith.addf %87, %90 : vector<16x16x4xf32>
    %92 = vector.extract_strided_slice %84 {offsets = [2, 0, 0], sizes = [16, 16, 12], strides = [1, 1, 1]} : vector<18x16x12xbf16> to vector<16x16x12xbf16>
    %c24_27 = arith.constant 24 : index
    %c0_28 = arith.constant 0 : index
    %93 = vector.load %arg3[%c24_27, %c0_28] : memref<36x4xbf16, #tpu.memory_space<vmem>>, vector<12x4xbf16>
    "tpu.trace_start"() <{level = 10 : i32, message = "hwi,io->hwo"}> : () -> ()
    %cst_29 = arith.constant dense<0.000000e+00> : vector<16x16x4xf32>
    %94 = tpu.matmul %92, %93, %cst_29 {dimension_numbers = #tpu.dot_dimension_numbers<[2], [0], [0, 1], [1], [0, 0, 0, 1, 1, 1], [], []>} : vector<16x16x12xbf16>, vector<12x4xbf16>, vector<16x16x4xf32> -> vector<16x16x4xf32>
    "tpu.trace_stop"() : () -> ()
    %95 = arith.addf %91, %94 : vector<16x16x4xf32>
    %cst_30 = arith.constant dense<0.000000e+00> : vector<4xf32>
    %96 = vector.multi_reduction <add>, %95, %cst_30 [0, 1] : vector<16x16x4xf32> to vector<4xf32>
    %97 = vector.shape_cast %96 : vector<4xf32> to vector<1x1x4xf32>
    %98 = arith.mulf %95, %95 : vector<16x16x4xf32>
    %cst_31 = arith.constant dense<0.000000e+00> : vector<4xf32>
    %99 = vector.multi_reduction <add>, %98, %cst_31 [0, 1] : vector<16x16x4xf32> to vector<4xf32>
    %100 = vector.shape_cast %99 : vector<4xf32> to vector<1x1x4xf32>
    %cst_32 = arith.constant 3.906250e-03 : f32
    %101 = vector.broadcast %cst_32 : f32 to vector<1x1x4xf32>
    %102 = arith.mulf %97, %101 : vector<1x1x4xf32>
    %cst_33 = arith.constant 3.906250e-03 : f32
    %103 = vector.broadcast %cst_33 : f32 to vector<1x1x4xf32>
    %104 = arith.mulf %100, %103 : vector<1x1x4xf32>
    %105 = arith.mulf %102, %102 : vector<1x1x4xf32>
    %106 = arith.subf %104, %105 : vector<1x1x4xf32>
    %cst_34 = arith.constant 0.000000e+00 : f32
    %107 = vector.broadcast %cst_34 : f32 to vector<1x1x4xf32>
    %108 = arith.maximumf %106, %107 : vector<1x1x4xf32>
    %109 = vector.broadcast %102 : vector<1x1x4xf32> to vector<16x16x4xf32>
    %110 = arith.subf %95, %109 : vector<16x16x4xf32>
    %cst_35 = arith.constant 9.99999974E-6 : f32
    %111 = vector.broadcast %cst_35 : f32 to vector<1x1x4xf32>
    %112 = arith.addf %108, %111 : vector<1x1x4xf32>
    %113 = math.rsqrt %112 : vector<1x1x4xf32>
    %114 = vector.broadcast %113 : vector<1x1x4xf32> to vector<16x16x4xf32>
    %115 = arith.mulf %110, %114 : vector<16x16x4xf32>
    %116 = arith.addf %1, %115 : vector<16x16x4xf32>
    %c0_36 = arith.constant 0 : index
    %c0_37 = arith.constant 0 : index
    %c0_38 = arith.constant 0 : index
    %c0_39 = arith.constant 0 : index
    %117 = vector.load %arg4[%c0_36, %c0_37, %c0_38, %c0_39] : memref<1x16x16x4xf32, #tpu.memory_space<vmem>>, vector<1x16x16x4xf32>
    %118 = vector.shape_cast %117 : vector<1x16x16x4xf32> to vector<16x16x4xf32>
    %119 = vector.shape_cast %116 : vector<16x16x4xf32> to vector<1x16x16x4xf32>
    tpu.vector_store %arg4[%c0_36, %c0_37, %c0_38, %c0_39], %119 {strides = array<i32>} : memref<1x16x16x4xf32, #tpu.memory_space<vmem>>, vector<1x16x16x4xf32>,
    return
  }
  func.func @transform_0(%arg0: i32) -> (i32, i32, i32, i32) {
    %c0_i32 = arith.constant 0 : i32
    %c0_i32_0 = arith.constant 0 : i32
    %c0_i32_1 = arith.constant 0 : i32
    %c0_i32_2 = arith.constant 0 : i32
    return %arg0, %c0_i32, %c0_i32_0, %c0_i32_1 : i32, i32, i32, i32
  }
  func.func @transform_1(%arg0: i32) -> (i32, i32) {
    %c0_i32 = arith.constant 0 : i32
    %c0_i32_0 = arith.constant 0 : i32
    %c0_i32_1 = arith.constant 0 : i32
    return %c0_i32, %c0_i32_0 : i32, i32
  }
  func.func @transform_2(%arg0: i32) -> (i32, i32) {
    %c0_i32 = arith.constant 0 : i32
    %c0_i32_0 = arith.constant 0 : i32
    %c0_i32_1 = arith.constant 0 : i32
    return %c0_i32, %c0_i32_0 : i32, i32
  }
  func.func @transform_3(%arg0: i32) -> (i32, i32, i32, i32) {
    %c0_i32 = arith.constant 0 : i32
    %c0_i32_0 = arith.constant 0 : i32
    %c0_i32_1 = arith.constant 0 : i32
    %c0_i32_2 = arith.constant 0 : i32
    return %arg0, %c0_i32, %c0_i32_0, %c0_i32_1 : i32, i32, i32, i32
  }
}

module attributes {stable_mosaic.version = 11 : i64} {
  func.func @residual_block_kernel(%arg0: i32, %arg1: memref<1x16x16x4xf32, #tpu.memory_space<vmem>>, %arg2: memref<36x4xbf16, #tpu.memory_space<vmem>>, %arg3: memref<36x4xbf16, #tpu.memory_space<vmem>>, %arg4: memref<1x16x16x4xf32, #tpu.memory_space<vmem>>) attributes {dimension_semantics = [#tpu.dimension_semantics<parallel>], iteration_bounds = array<i64: 2>, scalar_prefetch = 0 : i64, scratch_operands = 0 : i64, tpu.core_type = #tpu.core_type<tc>, window_params = [{transform_indices = @transform_0, window_bounds = array<i64: 1, 16, 16, 4>}, {pipeline_mode = #tpu.pipeline_mode<synchronous>, transform_indices = @transform_1, window_bounds = array<i64: 36, 4>}, {pipeline_mode = #tpu.pipeline_mode<synchronous>, transform_indices = @transform_2, window_bounds = array<i64: 36, 4>}, {transform_indices = @transform_3, window_bounds = array<i64: 1, 16, 16, 4>}]} {
    %c0 = arith.constant 0 : index
    %c0_0 = arith.constant 0 : index
    %c0_1 = arith.constant 0 : index
    %c0_2 = arith.constant 0 : index
    %0 = vector.load %arg1[%c0, %c0_0, %c0_1, %c0_2] : memref<1x16x16x4xf32, #tpu.memory_space<vmem>>, vector<1x16x16x4xf32>
    %1 = vector.shape_cast %0 : vector<1x16x16x4xf32> to vector<16x16x4xf32>
    %2 = arith.truncf %1 : vector<16x16x4xf32> to vector<16x16x4xbf16>
    %3 = vector.extract_strided_slice %2 {offsets = [1, 0, 0], sizes = [1, 16, 4], strides = [1, 1, 1]} : vector<16x16x4xbf16> to vector<1x16x4xbf16>
    %4 = vector.extract_strided_slice %2 {offsets = [14, 0, 0], sizes = [1, 16, 4], strides = [1, 1, 1]} : vector<16x16x4xbf16> to vector<1x16x4xbf16>
    %5 = tpu.concatenate %3, %2, %4 in 0 : vector<1x16x4xbf16>, vector<16x16x4xbf16>, vector<1x16x4xbf16> -> vector<18x16x4xbf16>
    %6 = vector.extract_strided_slice %5 {offsets = [0, 1, 0], sizes = [18, 1, 4], strides = [1, 1, 1]} : vector<18x16x4xbf16> to vector<18x1x4xbf16>
    %7 = vector.extract_strided_slice %5 {offsets = [0, 0, 0], sizes = [18, 15, 4], strides = [1, 1, 1]} : vector<18x16x4xbf16> to vector<18x15x4xbf16>
    %8 = tpu.concatenate %6, %7 in 1 : vector<18x1x4xbf16>, vector<18x15x4xbf16> -> vector<18x16x4xbf16>
    %9 = vector.extract_strided_slice %5 {offsets = [0, 14, 0], sizes = [18, 1, 4], strides = [1, 1, 1]} : vector<18x16x4xbf16> to vector<18x1x4xbf16>
    %10 = vector.extract_strided_slice %5 {offsets = [0, 1, 0], sizes = [18, 15, 4], strides = [1, 1, 1]} : vector<18x16x4xbf16> to vector<18x15x4xbf16>
    %11 = tpu.concatenate %10, %9 in 1 : vector<18x15x4xbf16>, vector<18x1x4xbf16> -> vector<18x16x4xbf16>
    %12 = tpu.concatenate %8, %5, %11 in 2 : vector<18x16x4xbf16>, vector<18x16x4xbf16>, vector<18x16x4xbf16> -> vector<18x16x12xbf16>
    %13 = vector.extract_strided_slice %12 {offsets = [0, 0, 0], sizes = [16, 16, 12], strides = [1, 1, 1]} : vector<18x16x12xbf16> to vector<16x16x12xbf16>
    %c0_3 = arith.constant 0 : index
    %c0_4 = arith.constant 0 : index
    %14 = vector.load %arg2[%c0_3, %c0_4] : memref<36x4xbf16, #tpu.memory_space<vmem>>, vector<12x4xbf16>
    "tpu.trace_start"() <{level = 10 : i32, message = "hwi,io->hwo"}> : () -> ()
    %cst = arith.constant dense<0.000000e+00> : vector<16x16x4xf32>
    %15 = tpu.matmul %13, %14, %cst {dimension_numbers = #tpu.dot_dimension_numbers<[2], [0], [0, 1], [1], [0, 0, 0, 1, 1, 1], [], []>} : vector<16x16x12xbf16>, vector<12x4xbf16>, vector<16x16x4xf32> -> vector<16x16x4xf32>
    "tpu.trace_stop"() : () -> ()
    %16 = vector.extract_strided_slice %12 {offsets = [1, 0, 0], sizes = [16, 16, 12], strides = [1, 1, 1]} : vector<18x16x12xbf16> to vector<16x16x12xbf16>
    %c12 = arith.constant 12 : index
    %c0_5 = arith.constant 0 : index
    %17 = vector.load %arg2[%c12, %c0_5] : memref<36x4xbf16, #tpu.memory_space<vmem>>, vector<12x4xbf16>
    "tpu.trace_start"() <{level = 10 : i32, message = "hwi,io->hwo"}> : () -> ()
    %cst_6 = arith.constant dense<0.000000e+00> : vector<16x16x4xf32>
    %18 = tpu.matmul %16, %17, %cst_6 {dimension_numbers = #tpu.dot_dimension_numbers<[2], [0], [0, 1], [1], [0, 0, 0, 1, 1, 1], [], []>} : vector<16x16x12xbf16>, vector<12x4xbf16>, vector<16x16x4xf32> -> vector<16x16x4xf32>
    "tpu.trace_stop"() : () -> ()
    %19 = arith.addf %15, %18 : vector<16x16x4xf32>
    %20 = vector.extract_strided_slice %12 {offsets = [2, 0, 0], sizes = [16, 16, 12], strides = [1, 1, 1]} : vector<18x16x12xbf16> to vector<16x16x12xbf16>
    %c24 = arith.constant 24 : index
    %c0_7 = arith.constant 0 : index
    %21 = vector.load %arg2[%c24, %c0_7] : memref<36x4xbf16, #tpu.memory_space<vmem>>, vector<12x4xbf16>
    "tpu.trace_start"() <{level = 10 : i32, message = "hwi,io->hwo"}> : () -> ()
    %cst_8 = arith.constant dense<0.000000e+00> : vector<16x16x4xf32>
    %22 = tpu.matmul %20, %21, %cst_8 {dimension_numbers = #tpu.dot_dimension_numbers<[2], [0], [0, 1], [1], [0, 0, 0, 1, 1, 1], [], []>} : vector<16x16x12xbf16>, vector<12x4xbf16>, vector<16x16x4xf32> -> vector<16x16x4xf32>
    "tpu.trace_stop"() : () -> ()
    %23 = arith.addf %19, %22 : vector<16x16x4xf32>
    %cst_9 = arith.constant dense<0.000000e+00> : vector<4xf32>
    %24 = vector.multi_reduction <add>, %23, %cst_9 [0, 1] : vector<16x16x4xf32> to vector<4xf32>
    %25 = vector.shape_cast %24 : vector<4xf32> to vector<1x1x4xf32>
    %26 = arith.mulf %23, %23 : vector<16x16x4xf32>
    %cst_10 = arith.constant dense<0.000000e+00> : vector<4xf32>
    %27 = vector.multi_reduction <add>, %26, %cst_10 [0, 1] : vector<16x16x4xf32> to vector<4xf32>
    %28 = vector.shape_cast %27 : vector<4xf32> to vector<1x1x4xf32>
    %cst_11 = arith.constant 3.906250e-03 : f32
    %29 = vector.broadcast %cst_11 : f32 to vector<1x1x4xf32>
    %30 = arith.mulf %25, %29 : vector<1x1x4xf32>
    %cst_12 = arith.constant 3.906250e-03 : f32
    %31 = vector.broadcast %cst_12 : f32 to vector<1x1x4xf32>
    %32 = arith.mulf %28, %31 : vector<1x1x4xf32>
    %33 = arith.mulf %30, %30 : vector<1x1x4xf32>
    %34 = arith.subf %32, %33 : vector<1x1x4xf32>
    %cst_13 = arith.constant 0.000000e+00 : f32
    %35 = vector.broadcast %cst_13 : f32 to vector<1x1x4xf32>
    %36 = arith.maximumf %34, %35 : vector<1x1x4xf32>
    %37 = vector.broadcast %30 : vector<1x1x4xf32> to vector<16x16x4xf32>
    %38 = arith.subf %23, %37 : vector<16x16x4xf32>
    %cst_14 = arith.constant 9.99999974E-6 : f32
    %39 = vector.broadcast %cst_14 : f32 to vector<1x1x4xf32>
    %40 = arith.addf %36, %39 : vector<1x1x4xf32>
    %41 = math.rsqrt %40 : vector<1x1x4xf32>
    %42 = vector.broadcast %41 : vector<1x1x4xf32> to vector<16x16x4xf32>
    %43 = arith.mulf %38, %42 : vector<16x16x4xf32>
    %cst_15 = arith.constant 0.000000e+00 : f32
    %44 = vector.broadcast %cst_15 : f32 to vector<16x16x4xf32>
    %45 = arith.maximumf %43, %44 : vector<16x16x4xf32>
    %46 = arith.truncf %45 : vector<16x16x4xf32> to vector<16x16x4xbf16>
    %47 = vector.extract_strided_slice %46 {offsets = [1, 0, 0], sizes = [1, 16, 4], strides = [1, 1, 1]} : vector<16x16x4xbf16> to vector<1x16x4xbf16>
    %48 = vector.extract_strided_slice %46 {offsets = [14, 0, 0], sizes = [1, 16, 4], strides = [1, 1, 1]} : vector<16x16x4xbf16> to vector<1x16x4xbf16>
    %49 = tpu.concatenate %47, %46, %48 in 0 : vector<1x16x4xbf16>, vector<16x16x4xbf16>, vector<1x16x4xbf16> -> vector<18x16x4xbf16>
    %50 = vector.extract_strided_slice %49 {offsets = [0, 1, 0], sizes = [18, 1, 4], strides = [1, 1, 1]} : vector<18x16x4xbf16> to vector<18x1x4xbf16>
    %51 = vector.extract_strided_slice %49 {offsets = [0, 0, 0], sizes = [18, 15, 4], strides = [1, 1, 1]} : vector<18x16x4xbf16> to vector<18x15x4xbf16>
    %52 = tpu.concatenate %50, %51 in 1 : vector<18x1x4xbf16>, vector<18x15x4xbf16> -> vector<18x16x4xbf16>
    %53 = vector.extract_strided_slice %49 {offsets = [0, 14, 0], sizes = [18, 1, 4], strides = [1, 1, 1]} : vector<18x16x4xbf16> to vector<18x1x4xbf16>
    %54 = vector.extract_strided_slice %49 {offsets = [0, 1, 0], sizes = [18, 15, 4], strides = [1, 1, 1]} : vector<18x16x4xbf16> to vector<18x15x4xbf16>
    %55 = tpu.concatenate %54, %53 in 1 : vector<18x15x4xbf16>, vector<18x1x4xbf16> -> vector<18x16x4xbf16>
    %56 = tpu.concatenate %52, %49, %55 in 2 : vector<18x16x4xbf16>, vector<18x16x4xbf16>, vector<18x16x4xbf16> -> vector<18x16x12xbf16>
    %57 = vector.extract_strided_slice %56 {offsets = [0, 0, 0], sizes = [16, 16, 12], strides = [1, 1, 1]} : vector<18x16x12xbf16> to vector<16x16x12xbf16>
    %c0_16 = arith.constant 0 : index
    %c0_17 = arith.constant 0 : index
    %58 = vector.load %arg3[%c0_16, %c0_17] : memref<36x4xbf16, #tpu.memory_space<vmem>>, vector<12x4xbf16>
    "tpu.trace_start"() <{level = 10 : i32, message = "hwi,io->hwo"}> : () -> ()
    %cst_18 = arith.constant dense<0.000000e+00> : vector<16x16x4xf32>
    %59 = tpu.matmul %57, %58, %cst_18 {dimension_numbers = #tpu.dot_dimension_numbers<[2], [0], [0, 1], [1], [0, 0, 0, 1, 1, 1], [], []>} : vector<16x16x12xbf16>, vector<12x4xbf16>, vector<16x16x4xf32> -> vector<16x16x4xf32>
    "tpu.trace_stop"() : () -> ()
    %60 = vector.extract_strided_slice %56 {offsets = [1, 0, 0], sizes = [16, 16, 12], strides = [1, 1, 1]} : vector<18x16x12xbf16> to vector<16x16x12xbf16>
    %c12_19 = arith.constant 12 : index
    %c0_20 = arith.constant 0 : index
    %61 = vector.load %arg3[%c12_19, %c0_20] : memref<36x4xbf16, #tpu.memory_space<vmem>>, vector<12x4xbf16>
    "tpu.trace_start"() <{level = 10 : i32, message = "hwi,io->hwo"}> : () -> ()
    %cst_21 = arith.constant dense<0.000000e+00> : vector<16x16x4xf32>
    %62 = tpu.matmul %60, %61, %cst_21 {dimension_numbers = #tpu.dot_dimension_numbers<[2], [0], [0, 1], [1], [0, 0, 0, 1, 1, 1], [], []>} : vector<16x16x12xbf16>, vector<12x4xbf16>, vector<16x16x4xf32> -> vector<16x16x4xf32>
    "tpu.trace_stop"() : () -> ()
    %63 = arith.addf %59, %62 : vector<16x16x4xf32>
    %64 = vector.extract_strided_slice %56 {offsets = [2, 0, 0], sizes = [16, 16, 12], strides = [1, 1, 1]} : vector<18x16x12xbf16> to vector<16x16x12xbf16>
    %c24_22 = arith.constant 24 : index
    %c0_23 = arith.constant 0 : index
    %65 = vector.load %arg3[%c24_22, %c0_23] : memref<36x4xbf16, #tpu.memory_space<vmem>>, vector<12x4xbf16>
    "tpu.trace_start"() <{level = 10 : i32, message = "hwi,io->hwo"}> : () -> ()
    %cst_24 = arith.constant dense<0.000000e+00> : vector<16x16x4xf32>
    %66 = tpu.matmul %64, %65, %cst_24 {dimension_numbers = #tpu.dot_dimension_numbers<[2], [0], [0, 1], [1], [0, 0, 0, 1, 1, 1], [], []>} : vector<16x16x12xbf16>, vector<12x4xbf16>, vector<16x16x4xf32> -> vector<16x16x4xf32>
    "tpu.trace_stop"() : () -> ()
    %67 = arith.addf %63, %66 : vector<16x16x4xf32>
    %cst_25 = arith.constant dense<0.000000e+00> : vector<4xf32>
    %68 = vector.multi_reduction <add>, %67, %cst_25 [0, 1] : vector<16x16x4xf32> to vector<4xf32>
    %69 = vector.shape_cast %68 : vector<4xf32> to vector<1x1x4xf32>
    %70 = arith.mulf %67, %67 : vector<16x16x4xf32>
    %cst_26 = arith.constant dense<0.000000e+00> : vector<4xf32>
    %71 = vector.multi_reduction <add>, %70, %cst_26 [0, 1] : vector<16x16x4xf32> to vector<4xf32>
    %72 = vector.shape_cast %71 : vector<4xf32> to vector<1x1x4xf32>
    %cst_27 = arith.constant 3.906250e-03 : f32
    %73 = vector.broadcast %cst_27 : f32 to vector<1x1x4xf32>
    %74 = arith.mulf %69, %73 : vector<1x1x4xf32>
    %cst_28 = arith.constant 3.906250e-03 : f32
    %75 = vector.broadcast %cst_28 : f32 to vector<1x1x4xf32>
    %76 = arith.mulf %72, %75 : vector<1x1x4xf32>
    %77 = arith.mulf %74, %74 : vector<1x1x4xf32>
    %78 = arith.subf %76, %77 : vector<1x1x4xf32>
    %cst_29 = arith.constant 0.000000e+00 : f32
    %79 = vector.broadcast %cst_29 : f32 to vector<1x1x4xf32>
    %80 = arith.maximumf %78, %79 : vector<1x1x4xf32>
    %81 = vector.broadcast %74 : vector<1x1x4xf32> to vector<16x16x4xf32>
    %82 = arith.subf %67, %81 : vector<16x16x4xf32>
    %cst_30 = arith.constant 9.99999974E-6 : f32
    %83 = vector.broadcast %cst_30 : f32 to vector<1x1x4xf32>
    %84 = arith.addf %80, %83 : vector<1x1x4xf32>
    %85 = math.rsqrt %84 : vector<1x1x4xf32>
    %86 = vector.broadcast %85 : vector<1x1x4xf32> to vector<16x16x4xf32>
    %87 = arith.mulf %82, %86 : vector<16x16x4xf32>
    %88 = arith.addf %1, %87 : vector<16x16x4xf32>
    %c0_31 = arith.constant 0 : index
    %c0_32 = arith.constant 0 : index
    %c0_33 = arith.constant 0 : index
    %c0_34 = arith.constant 0 : index
    %89 = vector.load %arg4[%c0_31, %c0_32, %c0_33, %c0_34] : memref<1x16x16x4xf32, #tpu.memory_space<vmem>>, vector<1x16x16x4xf32>
    %90 = vector.shape_cast %89 : vector<1x16x16x4xf32> to vector<16x16x4xf32>
    %91 = vector.shape_cast %88 : vector<16x16x4xf32> to vector<1x16x16x4xf32>
    tpu.vector_store %arg4[%c0_31, %c0_32, %c0_33, %c0_34], %91 {strides = array<i32>} : memref<1x16x16x4xf32, #tpu.memory_space<vmem>>, vector<1x16x16x4xf32>,
    return
  }
  func.func @transform_0(%arg0: i32) -> (i32, i32, i32, i32) {
    %c0_i32 = arith.constant 0 : i32
    %c0_i32_0 = arith.constant 0 : i32
    %c0_i32_1 = arith.constant 0 : i32
    %c0_i32_2 = arith.constant 0 : i32
    return %arg0, %c0_i32, %c0_i32_0, %c0_i32_1 : i32, i32, i32, i32
  }
  func.func @transform_1(%arg0: i32) -> (i32, i32) {
    %c0_i32 = arith.constant 0 : i32
    %c0_i32_0 = arith.constant 0 : i32
    %c0_i32_1 = arith.constant 0 : i32
    return %c0_i32, %c0_i32_0 : i32, i32
  }
  func.func @transform_2(%arg0: i32) -> (i32, i32) {
    %c0_i32 = arith.constant 0 : i32
    %c0_i32_0 = arith.constant 0 : i32
    %c0_i32_1 = arith.constant 0 : i32
    return %c0_i32, %c0_i32_0 : i32, i32
  }
  func.func @transform_3(%arg0: i32) -> (i32, i32, i32, i32) {
    %c0_i32 = arith.constant 0 : i32
    %c0_i32_0 = arith.constant 0 : i32
    %c0_i32_1 = arith.constant 0 : i32
    %c0_i32_2 = arith.constant 0 : i32
    return %arg0, %c0_i32, %c0_i32_0, %c0_i32_1 : i32, i32, i32, i32
  }
}

module attributes {stable_mosaic.version = 11 : i64} {
  func.func @residual_block_kernel(%arg0: i32, %arg1: memref<1x16x16x4xf32, #tpu.memory_space<vmem>>, %arg2: memref<36x4xbf16, #tpu.memory_space<vmem>>, %arg3: memref<36x4xbf16, #tpu.memory_space<vmem>>, %arg4: memref<1x16x16x4xf32, #tpu.memory_space<vmem>>) attributes {dimension_semantics = [#tpu.dimension_semantics<parallel>], iteration_bounds = array<i64: 2>, scalar_prefetch = 0 : i64, scratch_operands = 0 : i64, tpu.core_type = #tpu.core_type<tc>, window_params = [{transform_indices = @transform_0, window_bounds = array<i64: 1, 16, 16, 4>}, {pipeline_mode = #tpu.pipeline_mode<synchronous>, transform_indices = @transform_1, window_bounds = array<i64: 36, 4>}, {pipeline_mode = #tpu.pipeline_mode<synchronous>, transform_indices = @transform_2, window_bounds = array<i64: 36, 4>}, {transform_indices = @transform_3, window_bounds = array<i64: 1, 16, 16, 4>}]} {
    %c0 = arith.constant 0 : index
    %c0_0 = arith.constant 0 : index
    %c0_1 = arith.constant 0 : index
    %c0_2 = arith.constant 0 : index
    %0 = vector.load %arg1[%c0, %c0_0, %c0_1, %c0_2] : memref<1x16x16x4xf32, #tpu.memory_space<vmem>>, vector<1x16x16x4xf32>
    %1 = vector.shape_cast %0 : vector<1x16x16x4xf32> to vector<16x16x4xf32>
    %2 = arith.truncf %1 : vector<16x16x4xf32> to vector<16x16x4xbf16>
    %3 = vector.extract_strided_slice %2 {offsets = [1, 0, 0], sizes = [1, 16, 4], strides = [1, 1, 1]} : vector<16x16x4xbf16> to vector<1x16x4xbf16>
    %4 = vector.extract_strided_slice %2 {offsets = [14, 0, 0], sizes = [1, 16, 4], strides = [1, 1, 1]} : vector<16x16x4xbf16> to vector<1x16x4xbf16>
    %5 = tpu.concatenate %3, %2, %4 in 0 : vector<1x16x4xbf16>, vector<16x16x4xbf16>, vector<1x16x4xbf16> -> vector<18x16x4xbf16>
    %6 = vector.extract_strided_slice %5 {offsets = [0, 1, 0], sizes = [18, 1, 4], strides = [1, 1, 1]} : vector<18x16x4xbf16> to vector<18x1x4xbf16>
    %7 = vector.extract_strided_slice %5 {offsets = [0, 0, 0], sizes = [18, 15, 4], strides = [1, 1, 1]} : vector<18x16x4xbf16> to vector<18x15x4xbf16>
    %8 = tpu.concatenate %6, %7 in 1 : vector<18x1x4xbf16>, vector<18x15x4xbf16> -> vector<18x16x4xbf16>
    %9 = vector.extract_strided_slice %5 {offsets = [0, 14, 0], sizes = [18, 1, 4], strides = [1, 1, 1]} : vector<18x16x4xbf16> to vector<18x1x4xbf16>
    %10 = vector.extract_strided_slice %5 {offsets = [0, 1, 0], sizes = [18, 15, 4], strides = [1, 1, 1]} : vector<18x16x4xbf16> to vector<18x15x4xbf16>
    %11 = tpu.concatenate %10, %9 in 1 : vector<18x15x4xbf16>, vector<18x1x4xbf16> -> vector<18x16x4xbf16>
    %12 = tpu.concatenate %8, %5, %11 in 2 : vector<18x16x4xbf16>, vector<18x16x4xbf16>, vector<18x16x4xbf16> -> vector<18x16x12xbf16>
    %13 = vector.extract_strided_slice %12 {offsets = [0, 0, 0], sizes = [16, 16, 12], strides = [1, 1, 1]} : vector<18x16x12xbf16> to vector<16x16x12xbf16>
    %c0_3 = arith.constant 0 : index
    %c0_4 = arith.constant 0 : index
    %14 = vector.load %arg2[%c0_3, %c0_4] : memref<36x4xbf16, #tpu.memory_space<vmem>>, vector<12x4xbf16>
    "tpu.trace_start"() <{level = 10 : i32, message = "hwi,io->hwo"}> : () -> ()
    %cst = arith.constant dense<0.000000e+00> : vector<16x16x4xf32>
    %15 = tpu.matmul %13, %14, %cst {dimension_numbers = #tpu.dot_dimension_numbers<[2], [0], [0, 1], [1], [0, 0, 0, 1, 1, 1], [], []>} : vector<16x16x12xbf16>, vector<12x4xbf16>, vector<16x16x4xf32> -> vector<16x16x4xf32>
    "tpu.trace_stop"() : () -> ()
    %16 = vector.extract_strided_slice %12 {offsets = [1, 0, 0], sizes = [16, 16, 12], strides = [1, 1, 1]} : vector<18x16x12xbf16> to vector<16x16x12xbf16>
    %c12 = arith.constant 12 : index
    %c0_5 = arith.constant 0 : index
    %17 = vector.load %arg2[%c12, %c0_5] : memref<36x4xbf16, #tpu.memory_space<vmem>>, vector<12x4xbf16>
    "tpu.trace_start"() <{level = 10 : i32, message = "hwi,io->hwo"}> : () -> ()
    %cst_6 = arith.constant dense<0.000000e+00> : vector<16x16x4xf32>
    %18 = tpu.matmul %16, %17, %cst_6 {dimension_numbers = #tpu.dot_dimension_numbers<[2], [0], [0, 1], [1], [0, 0, 0, 1, 1, 1], [], []>} : vector<16x16x12xbf16>, vector<12x4xbf16>, vector<16x16x4xf32> -> vector<16x16x4xf32>
    "tpu.trace_stop"() : () -> ()
    %19 = arith.addf %15, %18 : vector<16x16x4xf32>
    %20 = vector.extract_strided_slice %12 {offsets = [2, 0, 0], sizes = [16, 16, 12], strides = [1, 1, 1]} : vector<18x16x12xbf16> to vector<16x16x12xbf16>
    %c24 = arith.constant 24 : index
    %c0_7 = arith.constant 0 : index
    %21 = vector.load %arg2[%c24, %c0_7] : memref<36x4xbf16, #tpu.memory_space<vmem>>, vector<12x4xbf16>
    "tpu.trace_start"() <{level = 10 : i32, message = "hwi,io->hwo"}> : () -> ()
    %cst_8 = arith.constant dense<0.000000e+00> : vector<16x16x4xf32>
    %22 = tpu.matmul %20, %21, %cst_8 {dimension_numbers = #tpu.dot_dimension_numbers<[2], [0], [0, 1], [1], [0, 0, 0, 1, 1, 1], [], []>} : vector<16x16x12xbf16>, vector<12x4xbf16>, vector<16x16x4xf32> -> vector<16x16x4xf32>
    "tpu.trace_stop"() : () -> ()
    %23 = arith.addf %19, %22 : vector<16x16x4xf32>
    %cst_9 = arith.constant dense<0.000000e+00> : vector<4xf32>
    %24 = vector.multi_reduction <add>, %23, %cst_9 [0, 1] : vector<16x16x4xf32> to vector<4xf32>
    %25 = vector.shape_cast %24 : vector<4xf32> to vector<1x1x4xf32>
    %26 = arith.mulf %23, %23 : vector<16x16x4xf32>
    %cst_10 = arith.constant dense<0.000000e+00> : vector<4xf32>
    %27 = vector.multi_reduction <add>, %26, %cst_10 [0, 1] : vector<16x16x4xf32> to vector<4xf32>
    %28 = vector.shape_cast %27 : vector<4xf32> to vector<1x1x4xf32>
    %cst_11 = arith.constant 3.906250e-03 : f32
    %29 = vector.broadcast %cst_11 : f32 to vector<1x1x4xf32>
    %30 = arith.mulf %25, %29 : vector<1x1x4xf32>
    %cst_12 = arith.constant 3.906250e-03 : f32
    %31 = vector.broadcast %cst_12 : f32 to vector<1x1x4xf32>
    %32 = arith.mulf %28, %31 : vector<1x1x4xf32>
    %33 = arith.mulf %30, %30 : vector<1x1x4xf32>
    %34 = arith.subf %32, %33 : vector<1x1x4xf32>
    %cst_13 = arith.constant 0.000000e+00 : f32
    %35 = vector.broadcast %cst_13 : f32 to vector<1x1x4xf32>
    %36 = arith.maximumf %34, %35 : vector<1x1x4xf32>
    %37 = vector.broadcast %30 : vector<1x1x4xf32> to vector<16x16x4xf32>
    %38 = arith.subf %23, %37 : vector<16x16x4xf32>
    %cst_14 = arith.constant 9.99999974E-6 : f32
    %39 = vector.broadcast %cst_14 : f32 to vector<1x1x4xf32>
    %40 = arith.addf %36, %39 : vector<1x1x4xf32>
    %41 = math.rsqrt %40 : vector<1x1x4xf32>
    %42 = vector.broadcast %41 : vector<1x1x4xf32> to vector<16x16x4xf32>
    %43 = arith.mulf %38, %42 : vector<16x16x4xf32>
    %cst_15 = arith.constant 0.000000e+00 : f32
    %44 = vector.broadcast %cst_15 : f32 to vector<16x16x4xf32>
    %45 = arith.maximumf %43, %44 : vector<16x16x4xf32>
    %46 = arith.truncf %45 : vector<16x16x4xf32> to vector<16x16x4xbf16>
    %47 = vector.extract_strided_slice %46 {offsets = [1, 0, 0], sizes = [1, 16, 4], strides = [1, 1, 1]} : vector<16x16x4xbf16> to vector<1x16x4xbf16>
    %48 = vector.extract_strided_slice %46 {offsets = [14, 0, 0], sizes = [1, 16, 4], strides = [1, 1, 1]} : vector<16x16x4xbf16> to vector<1x16x4xbf16>
    %49 = tpu.concatenate %47, %46, %48 in 0 : vector<1x16x4xbf16>, vector<16x16x4xbf16>, vector<1x16x4xbf16> -> vector<18x16x4xbf16>
    %50 = vector.extract_strided_slice %49 {offsets = [0, 1, 0], sizes = [18, 1, 4], strides = [1, 1, 1]} : vector<18x16x4xbf16> to vector<18x1x4xbf16>
    %51 = vector.extract_strided_slice %49 {offsets = [0, 0, 0], sizes = [18, 15, 4], strides = [1, 1, 1]} : vector<18x16x4xbf16> to vector<18x15x4xbf16>
    %52 = tpu.concatenate %50, %51 in 1 : vector<18x1x4xbf16>, vector<18x15x4xbf16> -> vector<18x16x4xbf16>
    %53 = vector.extract_strided_slice %49 {offsets = [0, 14, 0], sizes = [18, 1, 4], strides = [1, 1, 1]} : vector<18x16x4xbf16> to vector<18x1x4xbf16>
    %54 = vector.extract_strided_slice %49 {offsets = [0, 1, 0], sizes = [18, 15, 4], strides = [1, 1, 1]} : vector<18x16x4xbf16> to vector<18x15x4xbf16>
    %55 = tpu.concatenate %54, %53 in 1 : vector<18x15x4xbf16>, vector<18x1x4xbf16> -> vector<18x16x4xbf16>
    %56 = tpu.concatenate %52, %49, %55 in 2 : vector<18x16x4xbf16>, vector<18x16x4xbf16>, vector<18x16x4xbf16> -> vector<18x16x12xbf16>
    %57 = vector.extract_strided_slice %56 {offsets = [0, 0, 0], sizes = [16, 16, 12], strides = [1, 1, 1]} : vector<18x16x12xbf16> to vector<16x16x12xbf16>
    %c0_16 = arith.constant 0 : index
    %c0_17 = arith.constant 0 : index
    %58 = vector.load %arg3[%c0_16, %c0_17] : memref<36x4xbf16, #tpu.memory_space<vmem>>, vector<12x4xbf16>
    "tpu.trace_start"() <{level = 10 : i32, message = "hwi,io->hwo"}> : () -> ()
    %cst_18 = arith.constant dense<0.000000e+00> : vector<16x16x4xf32>
    %59 = tpu.matmul %57, %58, %cst_18 {dimension_numbers = #tpu.dot_dimension_numbers<[2], [0], [0, 1], [1], [0, 0, 0, 1, 1, 1], [], []>} : vector<16x16x12xbf16>, vector<12x4xbf16>, vector<16x16x4xf32> -> vector<16x16x4xf32>
    "tpu.trace_stop"() : () -> ()
    %60 = vector.extract_strided_slice %56 {offsets = [1, 0, 0], sizes = [16, 16, 12], strides = [1, 1, 1]} : vector<18x16x12xbf16> to vector<16x16x12xbf16>
    %c12_19 = arith.constant 12 : index
    %c0_20 = arith.constant 0 : index
    %61 = vector.load %arg3[%c12_19, %c0_20] : memref<36x4xbf16, #tpu.memory_space<vmem>>, vector<12x4xbf16>
    "tpu.trace_start"() <{level = 10 : i32, message = "hwi,io->hwo"}> : () -> ()
    %cst_21 = arith.constant dense<0.000000e+00> : vector<16x16x4xf32>
    %62 = tpu.matmul %60, %61, %cst_21 {dimension_numbers = #tpu.dot_dimension_numbers<[2], [0], [0, 1], [1], [0, 0, 0, 1, 1, 1], [], []>} : vector<16x16x12xbf16>, vector<12x4xbf16>, vector<16x16x4xf32> -> vector<16x16x4xf32>
    "tpu.trace_stop"() : () -> ()
    %63 = arith.addf %59, %62 : vector<16x16x4xf32>
    %64 = vector.extract_strided_slice %56 {offsets = [2, 0, 0], sizes = [16, 16, 12], strides = [1, 1, 1]} : vector<18x16x12xbf16> to vector<16x16x12xbf16>
    %c24_22 = arith.constant 24 : index
    %c0_23 = arith.constant 0 : index
    %65 = vector.load %arg3[%c24_22, %c0_23] : memref<36x4xbf16, #tpu.memory_space<vmem>>, vector<12x4xbf16>
    "tpu.trace_start"() <{level = 10 : i32, message = "hwi,io->hwo"}> : () -> ()
    %cst_24 = arith.constant dense<0.000000e+00> : vector<16x16x4xf32>
    %66 = tpu.matmul %64, %65, %cst_24 {dimension_numbers = #tpu.dot_dimension_numbers<[2], [0], [0, 1], [1], [0, 0, 0, 1, 1, 1], [], []>} : vector<16x16x12xbf16>, vector<12x4xbf16>, vector<16x16x4xf32> -> vector<16x16x4xf32>
    "tpu.trace_stop"() : () -> ()
    %67 = arith.addf %63, %66 : vector<16x16x4xf32>
    %cst_25 = arith.constant dense<0.000000e+00> : vector<4xf32>
    %68 = vector.multi_reduction <add>, %67, %cst_25 [0, 1] : vector<16x16x4xf32> to vector<4xf32>
    %69 = vector.shape_cast %68 : vector<4xf32> to vector<1x1x4xf32>
    %70 = arith.mulf %67, %67 : vector<16x16x4xf32>
    %cst_26 = arith.constant dense<0.000000e+00> : vector<4xf32>
    %71 = vector.multi_reduction <add>, %70, %cst_26 [0, 1] : vector<16x16x4xf32> to vector<4xf32>
    %72 = vector.shape_cast %71 : vector<4xf32> to vector<1x1x4xf32>
    %cst_27 = arith.constant 3.906250e-03 : f32
    %73 = vector.broadcast %cst_27 : f32 to vector<1x1x4xf32>
    %74 = arith.mulf %69, %73 : vector<1x1x4xf32>
    %cst_28 = arith.constant 3.906250e-03 : f32
    %75 = vector.broadcast %cst_28 : f32 to vector<1x1x4xf32>
    %76 = arith.mulf %72, %75 : vector<1x1x4xf32>
    %77 = arith.mulf %74, %74 : vector<1x1x4xf32>
    %78 = arith.subf %76, %77 : vector<1x1x4xf32>
    %cst_29 = arith.constant 0.000000e+00 : f32
    %79 = vector.broadcast %cst_29 : f32 to vector<1x1x4xf32>
    %80 = arith.maximumf %78, %79 : vector<1x1x4xf32>
    %81 = vector.broadcast %74 : vector<1x1x4xf32> to vector<16x16x4xf32>
    %82 = arith.subf %67, %81 : vector<16x16x4xf32>
    %cst_30 = arith.constant 9.99999974E-6 : f32
    %83 = vector.broadcast %cst_30 : f32 to vector<1x1x4xf32>
    %84 = arith.addf %80, %83 : vector<1x1x4xf32>
    %85 = math.rsqrt %84 : vector<1x1x4xf32>
    %86 = vector.broadcast %85 : vector<1x1x4xf32> to vector<16x16x4xf32>
    %87 = arith.mulf %82, %86 : vector<16x16x4xf32>
    %88 = arith.addf %1, %87 : vector<16x16x4xf32>
    %c0_31 = arith.constant 0 : index
    %c0_32 = arith.constant 0 : index
    %c0_33 = arith.constant 0 : index
    %c0_34 = arith.constant 0 : index
    %89 = vector.load %arg4[%c0_31, %c0_32, %c0_33, %c0_34] : memref<1x16x16x4xf32, #tpu.memory_space<vmem>>, vector<1x16x16x4xf32>
    %90 = vector.shape_cast %89 : vector<1x16x16x4xf32> to vector<16x16x4xf32>
    %91 = vector.shape_cast %88 : vector<16x16x4xf32> to vector<1x16x16x4xf32>
    tpu.vector_store %arg4[%c0_31, %c0_32, %c0_33, %c0_34], %91 {strides = array<i32>} : memref<1x16x16x4xf32, #tpu.memory_space<vmem>>, vector<1x16x16x4xf32>,
    return
  }
  func.func @transform_0(%arg0: i32) -> (i32, i32, i32, i32) {
    %c0_i32 = arith.constant 0 : i32
    %c0_i32_0 = arith.constant 0 : i32
    %c0_i32_1 = arith.constant 0 : i32
    %c0_i32_2 = arith.constant 0 : i32
    return %arg0, %c0_i32, %c0_i32_0, %c0_i32_1 : i32, i32, i32, i32
  }
  func.func @transform_1(%arg0: i32) -> (i32, i32) {
    %c0_i32 = arith.constant 0 : i32
    %c0_i32_0 = arith.constant 0 : i32
    %c0_i32_1 = arith.constant 0 : i32
    return %c0_i32, %c0_i32_0 : i32, i32
  }
  func.func @transform_2(%arg0: i32) -> (i32, i32) {
    %c0_i32 = arith.constant 0 : i32
    %c0_i32_0 = arith.constant 0 : i32
    %c0_i32_1 = arith.constant 0 : i32
    return %c0_i32, %c0_i32_0 : i32, i32
  }
  func.func @transform_3(%arg0: i32) -> (i32, i32, i32, i32) {
    %c0_i32 = arith.constant 0 : i32
    %c0_i32_0 = arith.constant 0 : i32
    %c0_i32_1 = arith.constant 0 : i32
    %c0_i32_2 = arith.constant 0 : i32
    return %arg0, %c0_i32, %c0_i32_0, %c0_i32_1 : i32, i32, i32, i32
  }
}

</mosaic_0001>

<bundles_post_ra>
// kernel: tpu_custom_call.1
= control target key start
LH: loop header
LB: loop body
LE: loop exit
PB: predicated region body
PF: predicated region fallthrough
CT: control target
= control target key end

     0   :  { %s3376_s12 = smov 0   ;;  %s5608_s0 = inlined_call_operand.vmem [shape: f32[2,16,16,4], index: 0, kind: input, shape index: {}]   ;;  %s5609_s1 = inlined_call_operand.vmem [shape: bf16[36,4], index: 1, kind: input, shape index: {}]   ;;  %s5610_s2 = inlined_call_operand.vmem [shape: bf16[36,4], index: 2, kind: input, shape index: {}]   ;;  %s5611_s3 = inlined_call_operand.vmem [shape: f32[2,16,16,4], index: 3, kind: output, shape index: {}]  }
   0x1 LB: > { %s2867_s13 = sadd.s32 4294967295, %s3352_s12   ;;  %p2871_p0 = scmp.ge.s32.totalorder %s3352_s12, 1  ;;  %s3352_s12 = sphi %s3376_s12, %s13_s12  }
   0x2   : > { %p137_p1 = scmp.lt.s32.totalorder %s3352_s12, 3 }
   0x4   : > { %p138_p2 = pnand %p2871_p0, %p137_p1 }
   0x6   : > { %141 = sbr.rel (%p138_p2) target bundleno = 1031 (0x407), region = 32 }
   0xb   : > { %p161_p3 = scmp.lt.s32.totalorder %s2867_s13, 1  ;;  %v3304_v0 = vld [vmem:[%s5609_s1 + $0x4] sm:$0xfc]   ;;  %vm687_vm0 = vcmask 1045504   ;;  %v3305_v2 = vld [vmem:[%s5609_s1] sm:$0x3f]  }
   0xc   : > { %v653_v1 = vrot.slane %v3304_v0, 2  ;;  %3289 = vmatprep.subr.msk.bf16.mxu1 %vm687_vm0, %v3305_v2  ;;  %v858_v7 = vsel %vm687_vm0, %v3305_v2, 0  ;;  %vm447_vm1 = vcmask 1047552   ;;  %s3354_s22 = smov 4   ;;  %vm448_vm2 = vsmask.f32 7424 }
   0xd   : > { %s5644_s13 = smov (!%p161_p3, %s2867_s13), 1  ;;  %3119 = vmatpush3.bf16.msra.mxu1 %v858_v7  ;;  %vm3431_vm3 = vmand %vm447_vm1, %vm448_vm2  ;;  %v5618_v29 = vmov 0  ;;  %s3355_s23 = smov 8   ;;  %v3469_v49 = vld [vmem:[%s5609_s1 + $0xc] sm:$0x3f]   ;;  %vm364_vm4 = vcmask 1040384  }
   0xe   : > { %s2980_s16 = sshll.u32 %s5644_s13, 8  ;;  %3288 = vmatprep.subr.msk.bf16.mxu0 %vm687_vm0, %v653_v1  ;;  %v689_v6 = vsel %vm687_vm0, %v653_v1, 0  ;;  %v5619_v29 = vsel %vm3431_vm3, 4294967295, %v5618_v29  ;;  %vm365_vm5 = vsmask.f32 256  ;;  %vm562_vm7 = vcmask 31744  }
   0xf   : > { %s3398_s21 = scalar_lea.vmem %s5608_s0, %s2980_s16  ;;  %3085 = vmatpush3.bf16.msra.mxu0 %v689_v6  ;;  %5620 = vst [vmem:[#allocation2_spill] sm:$0xff] %v5619_v29  ;;  %vm3560_vm6 = vmand %vm364_vm4, %vm365_vm5  ;;  %vm611_vm8 = vcmask 64512   ;;  %vm654_vm9 = vcmask 97280   ;;  %s5487_s7 = scalar_lea.vmem %s5611_s3, %s2980_s16 }
  0x10   : > { %v172_v3 = vld [vmem:[%s3398_s21] sm:$0xff]  ;;  %v173_v4 = vld [vmem:[%s3398_s21 + $0x8] sm:$0xff]  ;;  %v174_v5 = vld [vmem:[%s3398_s21 + $0x10] sm:$0xff]  ;;  %3290 = vmatprep.subr.msk.bf16.mxu0 %vm687_vm0, %v3469_v49 }
  0x11   : > { %v204_v8 = vpack.c.bf16 %v173_v4, %v172_v3  ;;  %v175_v9 = vld [vmem:[%s3398_s21 + $0x18] sm:$0xff]  ;;  %v176_v10 = vld [vmem:[%s3398_s21 + $0x20] sm:$0xff]  ;;  %v177_v11 = vld [vmem:[%s3398_s21 + $0x28] sm:$0xff] }
  0x12   : > { %v205_v12 = vpack.c.bf16 %v175_v9, %v174_v5  ;;  %v206_v13 = vpack.c.bf16 %v177_v11, %v176_v10  ;;  %v178_v14 = vld [vmem:[%s3398_s21 + $0x30] sm:$0xff]  ;;  %v179_v15 = vld [vmem:[%s3398_s21 + $0x38] sm:$0xff]  ;;  %v180_v16 = vld [vmem:[%s3398_s21 + $0x40] sm:$0xff] }
  0x13   : > { %484 = vrot.lane.b32.xlu0 %v204_v8, %s3354_s22  ;;  %v3414_v17 = vshrl.u32 %v204_v8, 16  ;;  %v3416_v18 = vshll.u32 %v204_v8, 16  ;;  %v207_v19 = vpack.c.bf16 %v179_v15, %v178_v14  ;;  %v181_v20 = vld [vmem:[%s3398_s21 + $0x48] sm:$0xff]  ;;  %v182_v27 = vld [vmem:[%s3398_s21 + $0x50] sm:$0xff]  ;;  %v183_v28 = vld [vmem:[%s3398_s21 + $0x58] sm:$0xff] }
  0x14   : > { %v3419_v21 = vshrl.u32 %v205_v12, 16  ;;  %v3421_v22 = vshrl.u32 %v206_v13, 16  ;;  %v3423_v23 = vshll.u32 %v205_v12, 16  ;;  %v3425_v24 = vshll.u32 %v206_v13, 16  ;;  %v184_v32 = vld [vmem:[%s3398_s21 + $0x60] sm:$0xff]  ;;  %v185_v33 = vld [vmem:[%s3398_s21 + $0x68] sm:$0xff] }
  0x15   : > { %v385_v25 = vrot.slane %v3416_v18, 1  ;;  %v208_v26 = vpack.c.bf16 %v181_v20, %v180_v16  ;;  %v3441_v35 = vshll.u32 %v207_v19, 16  ;;  %v3447_v39 = vpack.c.bf16 %v183_v28, %v182_v27  ;;  %v186_v43 = vld [vmem:[%s3398_s21 + $0x70] sm:$0xff]  ;;  %v187_v44 = vld [vmem:[%s3398_s21 + $0x78] sm:$0xff]  ;;  %v188_v45 = vld [vmem:[%s3398_s21 + $0x80] sm:$0xff] }
  0x16   : > { %v383_v30 = vrot.slane %v3423_v23, 1  ;;  %v387_v31 = vrot.slane %v3425_v24, 1  ;;  %v3452_v41 = vpack.c.bf16 %v185_v33, %v184_v32  ;;  %v3455_v42 = vshrl.u32 %v207_v19, 16  ;;  %v189_v48 = vld [vmem:[%s3398_s21 + $0x88] sm:$0xff]  ;;  %v190_v61 = vld [vmem:[%s3398_s21 + $0x90] sm:$0xff]  ;;  %v191_v62 = vld [vmem:[%s3398_s21 + $0x98] sm:$0xff] }
  0x17   : > { %482 = vrot.lane.b32.xlu0 %v205_v12, %s3354_s22  ;;  %v386_v34 = vor.u32 %v385_v25, %v3414_v17  ;;  %v3445_v38 = vshll.u32 %v208_v26, 16  ;;  %v389_v47 = vrot.slane %v3441_v35, 1  ;;  %v3474_v51 = vshrl.u32 %v208_v26, 16  ;;  %v192_v5 = vld [vmem:[%s3398_s21 + $0xa0] sm:$0xff]  ;;  %v193_v6 = vld [vmem:[%s3398_s21 + $0xa8] sm:$0xff]  ;;  %v194_v12 = vld [vmem:[%s3398_s21 + $0xb0] sm:$0xff] }
  0x18   : > { %v384_v36 = vor.u32 %v383_v30, %v3419_v21  ;;  %v388_v37 = vor.u32 %v387_v31, %v3421_v22  ;;  %v3478_v53 = vshll.u32 %v3447_v39, 16  ;;  %v3481_v54 = vshll.u32 %v3452_v41, 16  ;;  %v196_v33 = vld [vmem:[%s3398_s21 + $0xc0] sm:$0xff] }
  0x19   : > { %v451_v40 = vsel %vm3431_vm3, %v386_v34, %v3416_v18  ;;  %v391_v52 = vrot.slane %v3445_v38, 1  ;;  %v3483_v55 = vpack.c.bf16 %v187_v44, %v186_v43  ;;  %v3488_v56 = vpack.c.bf16 %v189_v48, %v188_v45  ;;  %v197_v34 = vld [vmem:[%s3398_s21 + $0xc8] sm:$0xff] }
  0x1a   : > { %532 = vrot.lane.b32.xlu1 %v451_v40, %s3355_s23  ;;  %v450_v46 = vsel %vm3431_vm3, %v384_v36, %v3423_v23  ;;  %v452_v50 = vsel %vm3431_vm3, %v388_v37, %v3425_v24  ;;  %v390_v57 = vor.u32 %v389_v47, %v3455_v42  ;;  %v3494_v59 = vshrl.u32 %v3447_v39, 16 }
  0x1b   : > { %486 = vrot.lane.b32.xlu0 %v206_v13, %s3354_s22  ;;  %v392_v58 = vor.u32 %v391_v52, %v3474_v51  ;;  %v393_v60 = vrot.slane %v3478_v53, 1  ;;  %v3500_v63 = vshrl.u32 %v3452_v41, 16  ;;  %v395_v0 = vrot.slane %v3481_v54, 1  ;;  %v195_v13 = vld [vmem:[%s3398_s21 + $0xb8] sm:$0xff] }
  0x1c   : > { %v3504_v1 = vshll.u32 %v3483_v55, 16  ;;  %v3508_v2 = vshll.u32 %v3488_v56, 16  ;;  %v453_v3 = vsel %vm3431_vm3, %v390_v57, %v3441_v35  ;;  %v3514_v4 = vpack.c.bf16 %v191_v62, %v190_v61 }
  0x1d   : > { %v454_v7 = vsel %vm3431_vm3, %v392_v58, %v3445_v38  ;;  %v394_v8 = vor.u32 %v393_v60, %v3494_v59  ;;  %v396_v9 = vor.u32 %v395_v0, %v3500_v63  ;;  %v3524_v10 = vshrl.u32 %v3483_v55, 16 }
  0x1e   : > { %530 = vrot.lane.b32.xlu1 %v450_v46, %s3355_s23  ;;  %v397_v11 = vrot.slane %v3504_v1, 1  ;;  %v3531_v14 = vshrl.u32 %v3488_v56, 16  ;;  %v399_v15 = vrot.slane %v3508_v2, 1  ;;  %v3534_v16 = vpack.c.bf16 %v193_v6, %v192_v5 }
  0x1f   : > { %534 = vrot.lane.b32.xlu0 %v452_v50, %s3355_s23  ;;  %v3541_v20 = vshll.u32 %v3514_v4, 16  ;;  %v455_v25 = vsel %vm3431_vm3, %v394_v8, %v3478_v53  ;;  %v288_v27 = vrot.slane %v3414_v17, 7  ;;  %v284_v28 = vrot.slane %v3419_v21, 7 }
  0x20   : > { %v456_v30 = vsel %vm3431_vm3, %v396_v9, %v3481_v54  ;;  %v398_v31 = vor.u32 %v397_v11, %v3524_v10  ;;  %v3555_v32 = vshrl.u32 %v3534_v16, 16  ;;  %v5621_v36 = vmov 0  ;;  %v199_v11 = vld [vmem:[%s3398_s21 + $0xd8] sm:$0xff] }
  0x21   : > { %v5622_v36 = vsel %vm3560_vm6, 4294967295, %v5621_v36  ;;  %v292_v37 = vrot.slane %v3421_v22, 7  ;;  %v400_v40 = vor.u32 %v399_v15, %v3531_v14  ;;  %v3569_v43 = vshll.u32 %v3534_v16, 16 }
  0x22   : > { %488 = vrot.lane.b32.xlu1 %v207_v19, %s3354_s22  ;;  %v3538_v19 = vshrl.u32 %v3514_v4, 16  ;;  %5623 = vst [vmem:[#allocation3_spill] sm:$0xff] %v5622_v36  ;;  %v3572_v44 = vor.u32 %v3416_v18, %v288_v27  ;;  %v3575_v45 = vor.u32 %v3423_v23, %v284_v28  ;;  %v401_v46 = vrot.slane %v3541_v20, 1 }
  0x23   : > { %490 = vrot.lane.b32.xlu0 %v208_v26, %s3354_s22  ;;  %v3546_v26 = vpack.c.bf16 %v195_v13, %v194_v12  ;;  %v296_v48 = vrot.slane %v3455_v42, 7  ;;  %v3587_v50 = vpack.c.bf16 %v197_v34, %v196_v33  ;;  %v304_v58 = vrot.slane %v3494_v59, 7 }
  0x24   : > { %v368_v18 = vsel %vm3560_vm6, %v3414_v17, %v3572_v44  ;;  %v367_v23 = vsel %vm3560_vm6, %v3419_v21, %v3575_v45  ;;  %v308_v61 = vrot.slane %v3500_v63, 7  ;;  %v312_v62 = vrot.slane %v3524_v10, 7 }
  0x25   : > { %v3581_v47 = vshrl.u32 %v3546_v26, 16  ;;  %v3599_v52 = vshll.u32 %v3546_v26, 16  ;;  %v3606_v57 = vor.u32 %v3441_v35, %v296_v48  ;;  %v316_v0 = vrot.slane %v3531_v14, 7 }
  0x26   : > { %536 = vrot.lane.b32.xlu1 %v453_v3, %s3355_s23  ;;  %v3622_v3 = vor.u32 %v3478_v53, %v304_v58  ;;  %v320_v5 = vrot.slane %v3538_v19, 7  ;;  %v3634_v8 = vor.u32 %v3504_v1, %v312_v62  ;;  %v198_v53 = vld [vmem:[%s3398_s21 + $0xd0] sm:$0xff]  ;;  %v403_v34 = vrot.slane %v3569_v43, 1  ;;  %v200_v62 = vld [vmem:[%s3398_s21 + $0xe0] sm:$0xff] }
  0x27   : > { %538 = vrot.lane.b32.xlu0 %v454_v7, %s3355_s23  ;;  %v370_v35 = vsel %vm3560_vm6, %v3455_v42, %v3606_v57  ;;  %v3631_v7 = vor.u32 %v3481_v54, %v308_v61  ;;  %v3637_v9 = vor.u32 %v3508_v2, %v316_v0  ;;  %v328_v54 = vrot.slane %v3581_v47, 7 }
  0x28   : > { %v372_v12 = vsel %vm3560_vm6, %v3494_v59, %v3622_v3  ;;  %v3646_v13 = vor.u32 %v3541_v20, %v320_v5  ;;  %v374_v28 = vsel %vm3560_vm6, %v3524_v10, %v3634_v8  ;;  %v333_v48 = vshll.u32 %v3587_v50, 16 }
  0x29   : > { %v373_v27 = vsel %vm3560_vm6, %v3500_v63, %v3631_v7  ;;  %v3683_v33 = vor.u32 %v3599_v52, %v328_v54  ;;  %v404_v5 = vor.u32 %v403_v34, %v3555_v32  ;;  %v202_v54 = vld [vmem:[%s3398_s21 + $0xf0] sm:$0xff]  ;;  %v405_v34 = vrot.slane %v3599_v52, 1 }
  0x2a   : > { %492 = vrot.lane.b32.xlu1 %v3447_v39, %s3354_s22  ;;  %v3584_v39 = vor.u32 %v3425_v24, %v292_v37  ;;  %v217_v37 = vpack.c.bf16 %v199_v11, %v198_v53  ;;  %v5624_v8 = vsel %vm3560_vm6, %v3538_v19, %v3646_v13 }
  0x2b   : > { %494 = vrot.lane.b32.xlu0 %v3452_v41, %s3354_s22  ;;  %v300_v41 = vrot.slane %v3474_v51, 7 }
  0x2c   : > { %v369_v24 = vsel %vm3560_vm6, %v3421_v22, %v3584_v39  ;;  %v3696_v61 = vshrl.u32 %v217_v37, 16 }
  0x2d   : > { %v3611_v60 = vor.u32 %v3445_v38, %v300_v41  ;;  %v324_v38 = vrot.slane %v3555_v32, 7  ;;  %v203_v41 = vld [vmem:[%s3398_s21 + $0xf8] sm:$0xff] }
  0x2e   : > { %540 = vrot.lane.b32.xlu1 %v455_v25, %s3355_s23  ;;  %v457_v25 = vsel %vm3431_vm3, %v398_v31, %v3504_v1  ;;  %v3672_v1 = vshrl.u32 %v3587_v50, 16  ;;  %v336_v53 = vrot.slane %v3696_v61, 7 }
  0x2f   : > { %542 = vrot.lane.b32.xlu0 %v456_v30, %s3355_s23  ;;  %v371_v6 = vsel %vm3560_vm6, %v3474_v51, %v3611_v60  ;;  %v3649_v15 = vor.u32 %v3569_v43, %v324_v38  ;;  %v337_v38 = vshll.u32 %v217_v37, 16 }
  0x30   : > { %v332_v58 = vrot.slane %v3672_v1, 7 }
  0x31   : > { %v377_v31 = vsel %vm3560_vm6, %v3555_v32, %v3649_v15 }
  0x32   : > { %496 = vrot.lane.b32.xlu1 %v3483_v55, %s3354_s22  ;;  %v375_v55 = vsel %vm3560_vm6, %v3531_v14, %v3637_v9  ;;  %v3702_v0 = vor.u32 %v333_v48, %v332_v58 }
  0x33   : > { %498 = vrot.lane.b32.xlu0 %v3488_v56, %s3354_s22  ;;  %v458_v56 = vsel %vm3431_vm3, %v400_v40, %v3508_v2  ;;  %v201_v2 = vld [vmem:[%s3398_s21 + $0xe8] sm:$0xff]  ;;  %v402_v40 = vor.u32 %v401_v46, %v3538_v19 }
  0x34   : > { %v218_v11 = vpack.c.bf16 %v201_v2, %v200_v62  ;;  %v460_v62 = vsel %vm3431_vm3, %v404_v5, %v3569_v43  ;;  %v407_v2 = vrot.slane %v333_v48, 1  ;;  %v5625_v19 = vsel %vm3560_vm6, %v3672_v1, %v3702_v0 }
  0x35   : > { %v459_v46 = vsel %vm3431_vm3, %v402_v40, %v3541_v20  ;;  %v406_v40 = vor.u32 %v405_v34, %v3581_v47 }
  0x36   : > { %544 = vrot.lane.b32.xlu1 %v457_v25, %s3355_s23  ;;  %v3722_v58 = vshrl.u32 %v218_v11, 16  ;;  %v219_v25 = vpack.c.bf16 %v203_v41, %v202_v54  ;;  %v408_v43 = vor.u32 %v407_v2, %v3672_v1 }
  0x37   : > { %546 = vrot.lane.b32.xlu0 %v458_v56, %s3355_s23  ;;  %v3714_v56 = vor.u32 %v337_v38, %v336_v53  ;;  %v461_v34 = vsel %vm3431_vm3, %v406_v40, %v3599_v52 }
  0x38   : > { %v340_v53 = vrot.slane %v3722_v58, 7  ;;  %v3733_v20 = vshrl.u32 %v219_v25, 16  ;;  %v345_v41 = vshll.u32 %v219_v25, 16  ;;  %v462_v2 = vsel %vm3431_vm3, %v408_v43, %v333_v48 }
  0x3a   : > { %500 = vrot.lane.b32.xlu1 %v3514_v4, %s3354_s22  ;;  %v344_v5 = vrot.slane %v3733_v20, 7  ;;  %v413_v48 = vrot.slane %v345_v41, 1 }
  0x3b   : > { %502 = vrot.lane.b32.xlu0 %v3534_v16, %s3354_s22  ;;  %v341_v16 = vshll.u32 %v218_v11, 16 }
  0x3c   : > { %v414_v43 = vor.u32 %v413_v48, %v3733_v20 }
  0x3d   : > { %v3737_v30 = vor.u32 %v341_v16, %v340_v53  ;;  %v411_v53 = vrot.slane %v341_v16, 1 }
  0x3e   : > { %548 = vrot.lane.b32.xlu1 %v459_v46, %s3355_s23  ;;  %v3747_v46 = vor.u32 %v345_v41, %v344_v5 }
  0x3f   : > { %550 = vrot.lane.b32.xlu0 %v460_v62, %s3355_s23  ;;  %v381_v54 = vsel %vm3560_vm6, %v3722_v58, %v3737_v30  ;;  %v409_v62 = vrot.slane %v337_v38, 1 }
  0x40   : > { %v382_v4 = vsel %vm3560_vm6, %v3733_v20, %v3747_v46 }
  0x42   : > { %504 = vrot.lane.b32.xlu1 %v3546_v26, %s3354_s22  ;;  %v410_v26 = vor.u32 %v409_v62, %v3696_v61 }
  0x43   : > { %506 = vrot.lane.b32.xlu0 %v3587_v50, %s3354_s22  ;;  %v412_v50 = vor.u32 %v411_v53, %v3722_v58 }
  0x44   : > { %v463_v52 = vsel %vm3431_vm3, %v410_v26, %v337_v38 }
  0x45   : > { %v464_v40 = vsel %vm3431_vm3, %v412_v50, %v341_v16 }
  0x46   : > { %552 = vrot.lane.b32.xlu1 %v461_v34, %s3355_s23 }
  0x47   : > { %554 = vrot.lane.b32.xlu0 %v462_v2, %s3355_s23 }
  0x4a   : > { %508 = vrot.lane.b32.xlu1 %v217_v37, %s3354_s22  ;;  %v465_v37 = vsel %vm3431_vm3, %v414_v43, %v345_v41 }
  0x4b   : > { %510 = vrot.lane.b32.xlu0 %v218_v11, %s3354_s22 }
  0x4e   : > { %556 = vrot.lane.b32.xlu1 %v463_v52, %s3355_s23 }
  0x4f   : > { %558 = vrot.lane.b32.xlu0 %v464_v40, %s3355_s23 }
  0x52   : > { %512 = vrot.lane.b32.xlu1 %v219_v25, %s3354_s22 }
  0x56   : > { %560 = vrot.lane.b32.xlu1 %v465_v37, %s3355_s23 }
  0x85   : > { %v485_v11 = vpop.permute.xlu0 %484 }
  0x86   : > { %v568_v16 = vsel %vm562_vm7, %v368_v18, %v485_v11  ;;  %v1029_v18 = vsel %vm687_vm0, %v3469_v49, 0 }
  0x89   : > { %v483_v38 = vpop.permute.xlu0 %482 }
  0x8a   : > { %v565_v41 = vsel %vm562_vm7, %v367_v23, %v483_v38 }
  0x8c   : > { %v533_v5 = vpop.permute.xlu1 %532 }
  0x8d   : > { %v615_v25 = vsel %vm611_vm8, %v568_v16, %v533_v5  ;;  %v487_v34 = vpop.permute.xlu0 %486 }
  0x8e   : > { %3086 = vmatprep.mubr.msk.bf16.mxu0 %vm654_vm9, %v615_v25  ;;  %v571_v17 = vsel %vm562_vm7, %v369_v24, %v487_v34 }
  0x90   : > { %v531_v44 = vpop.permute.xlu1 %530 }
  0x91   : > { %v3800_v62 = vsel %vm611_vm8, %v565_v41, %v531_v44  ;;  %v535_v2 = vpop.permute.xlu0 %534 }
  0x92   : > { %3087 = vmatmul.mubr.msk.bf16.vlgmr.msra.gmra.mxu0 %vm654_vm9, %v3800_v62  ;;  %3120 = vmatprep.mubr.msk.bf16.mxu1 %vm654_vm9, %v3800_v62  ;;  %v3807_v21 = vsel %vm611_vm8, %v571_v17, %v535_v2 }
  0x93   : > { %3153 = vmatpush3.bf16.msra.mxu0 %v1029_v18  ;;  %3121 = vmatmul.mubr.msk.bf16.vlgmr.msra.gmra.mxu1 %vm654_vm9, %v615_v25 }
  0x94   : > { %v489_v22 = vpop.permute.xlu1 %488  ;;  %3124 = vmatprep.mubr.msk.bf16.mxu1 %vm654_vm9, %v3800_v62  ;;  %3090 = vmatprep.mubr.msk.bf16.mxu0 %vm654_vm9, %v3807_v21 }
  0x95   : > { %v491_v49 = vpop.permute.xlu0 %490  ;;  %v574_v39 = vsel %vm562_vm7, %v370_v35, %v489_v22 }
  0x96   : > { %v577_v45 = vsel %vm562_vm7, %v371_v6, %v491_v49 }
  0x98   : > { %v537_v23 = vpop.permute.xlu1 %536 }
  0x99   : > { %v3827_v24 = vsel %vm611_vm8, %v574_v39, %v537_v23  ;;  %v539_v53 = vpop.permute.xlu0 %538 }
  0x9a   : > { %3091 = vmatmul.mubr.msk.bf16.gmra.mxu0 %vm654_vm9, %v3827_v24  ;;  %v3832_v26 = vsel %vm611_vm8, %v577_v45, %v539_v53 }
  0x9b   : > { %3125 = vmatmul.mubr.msk.bf16.gmra.mxu1 %vm654_vm9, %v3807_v21  ;;  %3094 = vmatprep.mubr.msk.bf16.mxu0 %vm654_vm9, %v3832_v26 }
  0x9c   : > { %v493_v42 = vpop.permute.xlu1 %492  ;;  %3128 = vmatprep.mubr.msk.bf16.mxu1 %vm654_vm9, %v3827_v24 }
  0x9d   : > { %v495_v51 = vpop.permute.xlu0 %494  ;;  %v580_v60 = vsel %vm562_vm7, %v372_v12, %v493_v42 }
  0x9e   : > { %v583_v57 = vsel %vm562_vm7, %v373_v27, %v495_v51 }
  0xa0   : > { %v541_v35 = vpop.permute.xlu1 %540 }
  0xa1   : > { %v3853_v6 = vsel %vm611_vm8, %v580_v60, %v541_v35  ;;  %v543_v50 = vpop.permute.xlu0 %542 }
  0xa2   : > { %3095 = vmatmul.mubr.msk.bf16.gmra.mxu0 %vm654_vm9, %v3853_v6  ;;  %v3858_v52 = vsel %vm611_vm8, %v583_v57, %v543_v50 }
  0xa3   : > { %3129 = vmatmul.mubr.msk.bf16.gmra.mxu1 %vm654_vm9, %v3832_v26  ;;  %3098 = vmatprep.mubr.msk.bf16.mxu0 %vm654_vm9, %v3858_v52 }
  0xa4   : > { %v497_v59 = vpop.permute.xlu1 %496  ;;  %3132 = vmatprep.mubr.msk.bf16.mxu1 %vm654_vm9, %v3853_v6 }
  0xa5   : > { %v499_v63 = vpop.permute.xlu0 %498  ;;  %v586_v7 = vsel %vm562_vm7, %v374_v28, %v497_v59 }
  0xa6   : > { %v589_v3 = vsel %vm562_vm7, %v375_v55, %v499_v63 }
  0xa8   : > { %v545_v12 = vpop.permute.xlu1 %544 }
  0xa9   : > { %v627_v27 = vsel %vm611_vm8, %v586_v7, %v545_v12  ;;  %v547_v48 = vpop.permute.xlu0 %546 }
  0xaa   : > { %3099 = vmatmul.mubr.msk.bf16.gmra.mxu0 %vm654_vm9, %v627_v27  ;;  %v629_v40 = vsel %vm611_vm8, %v589_v3, %v547_v48 }
  0xab   : > { %3133 = vmatmul.mubr.msk.bf16.gmra.mxu1 %vm654_vm9, %v3858_v52  ;;  %3102 = vmatprep.mubr.msk.bf16.mxu0 %vm654_vm9, %v629_v40 }
  0xac   : > { %v501_v14 = vpop.permute.xlu1 %500  ;;  %3136 = vmatprep.mubr.msk.bf16.mxu1 %vm654_vm9, %v627_v27 }
  0xad   : > { %v503_v9 = vpop.permute.xlu0 %502  ;;  %v592_v28 = vsel %vm562_vm7, %v5624_v8, %v501_v14 }
  0xae   : > { %v595_v10 = vsel %vm562_vm7, %v377_v31, %v503_v9  ;;  %v5626_v31 = vsel %vm3560_vm6, %v3581_v47, %v3683_v33  ;;  %v5627_v33 = vsel %vm3560_vm6, %v3696_v61, %v3714_v56 }
  0xb0   : > { %v549_v55 = vpop.permute.xlu1 %548 }
  0xb1   : > { %v631_v43 = vsel %vm611_vm8, %v592_v28, %v549_v55  ;;  %v551_v37 = vpop.permute.xlu0 %550 }
  0xb2   : > { %3103 = vmatmul.mubr.msk.bf16.gmra.mxu0 %vm654_vm9, %v631_v43  ;;  %v633_v11 = vsel %vm611_vm8, %v595_v10, %v551_v37 }
  0xb3   : > { %3137 = vmatmul.mubr.msk.bf16.gmra.mxu1 %vm654_vm9, %v629_v40  ;;  %3106 = vmatprep.mubr.msk.bf16.mxu0 %vm654_vm9, %v633_v11 }
  0xb4   : > { %v505_v32 = vpop.permute.xlu1 %504  ;;  %3140 = vmatprep.mubr.msk.bf16.mxu1 %vm654_vm9, %v631_v43 }
  0xb5   : > { %v507_v15 = vpop.permute.xlu0 %506  ;;  %v598_v38 = vsel %vm562_vm7, %v5626_v31, %v505_v32 }
  0xb6   : > { %v601_v13 = vsel %vm562_vm7, %v5625_v19, %v507_v15 }
  0xb8   : > { %v553_v16 = vpop.permute.xlu1 %552 }
  0xb9   : > { %v635_v5 = vsel %vm611_vm8, %v598_v38, %v553_v16  ;;  %v555_v25 = vpop.permute.xlu0 %554 }
  0xba   : > { %3107 = vmatmul.mubr.msk.bf16.gmra.mxu0 %vm654_vm9, %v635_v5  ;;  %v637_v34 = vsel %vm611_vm8, %v601_v13, %v555_v25 }
  0xbb   : > { %3141 = vmatmul.mubr.msk.bf16.gmra.mxu1 %vm654_vm9, %v633_v11  ;;  %3110 = vmatprep.mubr.msk.bf16.mxu0 %vm654_vm9, %v637_v34 }
  0xbc   : > { %v509_v1 = vpop.permute.xlu1 %508  ;;  %3144 = vmatprep.mubr.msk.bf16.mxu1 %vm654_vm9, %v635_v5 }
  0xbd   : > { %v511_v0 = vpop.permute.xlu0 %510  ;;  %v604_v41 = vsel %vm562_vm7, %v5627_v33, %v509_v1 }
  0xbe   : > { %v607_v47 = vsel %vm562_vm7, %v381_v54, %v511_v0 }
  0xc0   : > { %v557_v17 = vpop.permute.xlu1 %556 }
  0xc1   : > { %v639_v44 = vsel %vm611_vm8, %v604_v41, %v557_v17  ;;  %v559_v18 = vpop.permute.xlu0 %558 }
  0xc2   : > { %3111 = vmatmul.mubr.msk.bf16.gmra.mxu0 %vm654_vm9, %v639_v44  ;;  %v641_v2 = vsel %vm611_vm8, %v607_v47, %v559_v18 }
  0xc3   : > { %3145 = vmatmul.mubr.msk.bf16.gmra.mxu1 %vm654_vm9, %v637_v34  ;;  %3114 = vmatprep.mubr.msk.bf16.mxu0 %vm654_vm9, %v641_v2 }
  0xc4   : > { %v513_v30 = vpop.permute.xlu1 %512  ;;  %3148 = vmatprep.mubr.msk.bf16.mxu1 %vm654_vm9, %v639_v44 }
  0xc5   : > { %v610_v61 = vsel %vm562_vm7, %v382_v4, %v513_v30 }
  0xc8   : > { %v561_v56 = vpop.permute.xlu1 %560 }
  0xc9   : > { %v643_v58 = vsel %vm611_vm8, %v610_v61, %v561_v56 }
  0xca   : > { %3115 = vmatmul.mubr.msk.bf16.gmra.mxu0 %vm654_vm9, %v643_v58 }
  0xcb   : > { %3149 = vmatmul.mubr.msk.bf16.gmra.mxu1 %vm654_vm9, %v641_v2  ;;  %3154 = vmatprep.mubr.msk.bf16.mxu0 %vm654_vm9, %v3800_v62 }
  0xd2   : > { %3155 = vmatmul.mubr.msk.bf16.vlgmr.msra.gmra.mxu0 %vm654_vm9, %v3807_v21 }
  0xd3   : > { %3158 = vmatprep.mubr.msk.bf16.mxu0 %vm654_vm9, %v3827_v24 }
  0xda   : > { %3159 = vmatmul.mubr.msk.bf16.gmra.mxu0 %vm654_vm9, %v3832_v26 }
  0xdb   : > { %3162 = vmatprep.mubr.msk.bf16.mxu0 %vm654_vm9, %v3853_v6 }
  0xe2   : > { %3163 = vmatmul.mubr.msk.bf16.gmra.mxu0 %vm654_vm9, %v3858_v52 }
  0xe3   : > { %3166 = vmatprep.mubr.msk.bf16.mxu0 %vm654_vm9, %v627_v27 }
  0xea   : > { %3167 = vmatmul.mubr.msk.bf16.gmra.mxu0 %vm654_vm9, %v629_v40 }
  0xeb   : > { %3170 = vmatprep.mubr.msk.bf16.mxu0 %vm654_vm9, %v631_v43 }
  0xf2   : > { %3171 = vmatmul.mubr.msk.bf16.gmra.mxu0 %vm654_vm9, %v633_v11 }
  0xf3   : > { %3174 = vmatprep.mubr.msk.bf16.mxu0 %vm654_vm9, %v635_v5 }
  0xfa   : > { %3175 = vmatmul.mubr.msk.bf16.gmra.mxu0 %vm654_vm9, %v637_v34 }
  0xfb   : > { %3178 = vmatprep.mubr.msk.bf16.mxu0 %vm654_vm9, %v639_v44 }
 0x102   : > { %3179 = vmatmul.mubr.msk.bf16.gmra.mxu0 %vm654_vm9, %v641_v2 }
 0x103   : > { %3182 = vmatprep.mubr.msk.bf16.mxu0 %vm654_vm9, %v643_v58 }
 0x10a   : > { %3183 = vmatmul.mubr.msk.bf16.gmra.mxu0 %vm654_vm9, %v641_v2 }
 0x152   : > { %v3088_v4 = vpop.f32.mrf.mxu0 }
 0x153   : > { %v3122_v20 = vpop.f32.mrf.mxu1 }
 0x154   : > { %v725_v54 = vpop.f32.mrf.mxu0  ;;  %v903_v41 = vadd.f32 %v3122_v20, %v3088_v4 }
 0x155   : > { %v894_v46 = vpop.f32.mrf.mxu1 }
 0x156   : > { %v3089_v62 = vpop.f32.mrf.mxu0  ;;  %v895_v0 = vadd.f32 %v894_v46, %v725_v54 }
 0x157   : > { %v3123_v21 = vpop.f32.mrf.mxu1 }
 0x158   : > { %v728_v22 = vpop.f32.mrf.mxu0  ;;  %v906_v18 = vadd.f32 %v3123_v21, %v3089_v62 }
 0x159   : > { %v897_v45 = vpop.f32.mrf.mxu1 }
 0x15a   : > { %v3970_v49 = vpop.f32.mrf.mxu0  ;;  %v898_v2 = vadd.f32 %v897_v45, %v728_v22 }
 0x15b   : > { %v3126_v24 = vpop.f32.mrf.mxu1 }
 0x15c   : > { %v741_v39 = vpop.f32.mrf.mxu0  ;;  %v919_v45 = vadd.f32 %v3126_v24, %v3970_v49 }
 0x15d   : > { %v910_v42 = vpop.f32.mrf.mxu1 }
 0x15e   : > { %v3972_v23 = vpop.f32.mrf.mxu0  ;;  %v911_v46 = vadd.f32 %v910_v42, %v741_v39 }
 0x15f   : > { %v3127_v60 = vpop.f32.mrf.mxu1 }
 0x160   : > { %v3974_v53 = vpop.f32.mrf.mxu0 }
 0x161   : > { %v913_v50 = vpop.f32.mrf.mxu1 }
 0x162   : > { %v3976_v26 = vpop.f32.mrf.mxu0 }
 0x163   : > { %v3990_v63 = vpop.f32.mrf.mxu1 }
 0x164   : > { %v3978_v51 = vpop.f32.mrf.mxu0 }
 0x165   : > { %v3996_v12 = vpop.f32.mrf.mxu1 }
 0x166   : > { %v3980_v57 = vpop.f32.mrf.mxu0 }
 0x167   : > { %v4002_v40 = vpop.f32.mrf.mxu1 }
 0x168   : > { %v3982_v35 = vpop.f32.mrf.mxu0 }
 0x169   : > { %v4008_v10 = vpop.f32.mrf.mxu1 }
 0x16a   : > { %v3984_v6 = vpop.f32.mrf.mxu0 }
 0x16b   : > { %v4014_v55 = vpop.f32.mrf.mxu1 }
 0x16c   : > { %v3986_v52 = vpop.f32.mrf.mxu0 }
 0x16d   : > { %v4020_v11 = vpop.f32.mrf.mxu1 }
 0x16e   : > { %v3988_v59 = vpop.f32.mrf.mxu0 }
 0x16f   : > { %v4026_v19 = vpop.f32.mrf.mxu1 }
 0x170   : > { %v3992_v3 = vpop.f32.mrf.mxu0 }
 0x171   : > { %v4032_v38 = vpop.f32.mrf.mxu1 }
 0x172   : > { %v3994_v7 = vpop.f32.mrf.mxu0 }
 0x173   : > { %v4038_v25 = vpop.f32.mrf.mxu1 }
 0x174   : > { %v3998_v27 = vpop.f32.mrf.mxu0 }
 0x175   : > { %v4042_v47 = vpop.f32.mrf.mxu1 }
 0x176   : > { %v4000_v48 = vpop.f32.mrf.mxu0 }
 0x177   : > { %v4046_v30 = vpop.f32.mrf.mxu1 }
 0x178   : > { %v4004_v14 = vpop.f32.mrf.mxu0 }
 0x179   : > { %v4056_v4 = vpop.f32.mrf.mxu1 }
 0x17a   : > { %v4006_v9 = vpop.f32.mrf.mxu0 }
 0x17c   : > { %v4010_v8 = vpop.f32.mrf.mxu0 }
 0x17e   : > { %v4012_v28 = vpop.f32.mrf.mxu0 }
 0x180   : > { %v4016_v43 = vpop.f32.mrf.mxu0 }
 0x182   : > { %v4018_v37 = vpop.f32.mrf.mxu0 }
 0x184   : > { %v4022_v32 = vpop.f32.mrf.mxu0 }
 0x186   : > { %v4024_v15 = vpop.f32.mrf.mxu0 }
 0x188   : > { %v4028_v13 = vpop.f32.mrf.mxu0 }
 0x18a   : > { %v4030_v31 = vpop.f32.mrf.mxu0 }
 0x18c   : > { %v4034_v16 = vpop.f32.mrf.mxu0 }
 0x18e   : > { %v4036_v5 = vpop.f32.mrf.mxu0 }
 0x190   : > { %v4040_v34 = vpop.f32.mrf.mxu0 }
 0x192   : > { %v3156_v1 = vpop.f32.mrf.mxu0 }
 0x193   : > { %v4048_v61 = vadd.f32 %v3156_v1, %v903_v41 }
 0x194   : > { %v1065_v33 = vpop.f32.mrf.mxu0 }
 0x195   : > { %v4044_v17 = vadd.f32 %v1065_v33, %v895_v0  ;;  %v1295_v20 = vmul.f32 %v4048_v61, %v4048_v61  ;;  %v1227_v39 = vsel %vm562_vm7, %v4048_v61, 0.0 }
 0x196   : > { %v3157_v44 = vpop.f32.mrf.mxu0 }
 0x197   : > { %v1293_v58 = vmul.f32 %v4044_v17, %v4044_v17  ;;  %v4052_v36 = vadd.f32 %v3157_v44, %v906_v18  ;;  %v1224_v62 = vsel %vm562_vm7, %v4044_v17, 0.0  ;;  %v922_v18 = vadd.f32 %v3127_v60, %v3972_v23 }
 0x198   : > { %v1068_v56 = vpop.f32.mrf.mxu0 }
 0x199   : > { %v4054_v54 = vadd.f32 %v1068_v56, %v898_v2  ;;  %v1325_v0 = vsel %vm562_vm7, %v1293_v58, 0.0  ;;  %v1296_v33 = vmul.f32 %v4052_v36, %v4052_v36  ;;  %v914_v2 = vadd.f32 %v913_v50, %v3974_v53 }
 0x19a   : > { %v3160_v29 = vpop.f32.mrf.mxu0  ;;  %v1229_v58 = vsel %vm562_vm7, %v4052_v36, 0.0 }
 0x19b   : > { %5628 = vst [vmem:[#allocation4_spill] sm:$0xff] %v4054_v54  ;;  %v1225_v21 = vsel %vm562_vm7, %v4054_v54, 0.0  ;;  %v1294_v22 = vmul.f32 %v4054_v54, %v4054_v54  ;;  %v4077_v54 = vpop.f32.mrf.mxu1  ;;  %v1330_v53 = vsel %vm562_vm7, %v1296_v33, 0.0 }
 0x19c   : > { %v1226_v42 = vadd.f32 %v1225_v21, %v1224_v62  ;;  %v1081_v1 = vpop.f32.mrf.mxu0  ;;  %v1328_v62 = vsel %vm562_vm7, %v1295_v20, 0.0  ;;  %v4082_v21 = vadd.f32 %v3160_v29, %v919_v45  ;;  %v927_v20 = vadd.f32 %v3996_v12, %v3978_v51 }
 0x19d   : > { %v1326_v41 = vsel %vm562_vm7, %v1294_v22, 0.0  ;;  %v4073_v44 = vadd.f32 %v1081_v1, %v911_v46 }
 0x19e   : > { %v1228_v56 = vadd.f32 %v1227_v39, %v1226_v42  ;;  %v1327_v49 = vadd.f32 %v1326_v41, %v1325_v0  ;;  %v3161_v24 = vpop.f32.mrf.mxu0  ;;  %v4095_v0 = vpop.f32.mrf.mxu1  ;;  %v1299_v41 = vmul.f32 %v4082_v21, %v4082_v21 }
 0x19f   : > { %v1297_v46 = vmul.f32 %v4073_v44, %v4073_v44  ;;  %v1231_v60 = vsel %vm562_vm7, %v4073_v44, 0.0  ;;  %v4089_v50 = vadd.f32 %v3161_v24, %v922_v18  ;;  %v1235_v24 = vsel %vm562_vm7, %v4082_v21, 0.0 }
 0x1a0   : > { %v1329_v22 = vadd.f32 %v1328_v62, %v1327_v49  ;;  %v1230_v1 = vadd.f32 %v1229_v58, %v1228_v56  ;;  %v1084_v23 = vpop.f32.mrf.mxu0 }
 0x1a1   : > { %v4091_v39 = vadd.f32 %v1084_v23, %v914_v2  ;;  %v1332_v33 = vsel %vm562_vm7, %v1297_v46, 0.0  ;;  %v935_v2 = vadd.f32 %v3990_v63, %v3976_v26  ;;  %v1300_v62 = vmul.f32 %v4089_v50, %v4089_v50 }
 0x1a2   : > { %v1232_v29 = vadd.f32 %v1231_v60, %v1230_v1  ;;  %v1331_v45 = vadd.f32 %v1330_v53, %v1329_v22  ;;  %v3164_v42 = vpop.f32.mrf.mxu0  ;;  %v938_v22 = vadd.f32 %v4002_v40, %v3980_v57  ;;  %v930_v1 = vadd.f32 %v4008_v10, %v3982_v35  ;;  %v4117_v53 = vpop.f32.mrf.mxu1 }
 0x1a3   : > { %v1233_v56 = vsel %vm562_vm7, %v4091_v39, 0.0  ;;  %v1298_v18 = vmul.f32 %v4091_v39, %v4091_v39  ;;  %v1336_v60 = vsel %vm562_vm7, %v1299_v41, 0.0  ;;  %v1338_v35 = vsel %vm562_vm7, %v1300_v62, 0.0 }
 0x1a4   : > { %v1333_v51 = vadd.f32 %v1332_v33, %v1331_v45  ;;  %v1234_v12 = vadd.f32 %v1233_v56, %v1232_v29  ;;  %v1097_v49 = vpop.f32.mrf.mxu0  ;;  %v1237_v29 = vsel %vm562_vm7, %v4089_v50, 0.0  ;;  %v4122_v45 = vadd.f32 %v3164_v42, %v935_v2 }
 0x1a5   : > { %v1334_v58 = vsel %vm562_vm7, %v1298_v18, 0.0  ;;  %v4111_v46 = vadd.f32 %v1097_v49, %v927_v20  ;;  %v943_v41 = vadd.f32 %v4020_v11, %v3986_v52 }
 0x1a6   : > { %v1236_v26 = vadd.f32 %v1235_v24, %v1234_v12  ;;  %v1335_v63 = vadd.f32 %v1334_v58, %v1333_v51  ;;  %v3165_v23 = vpop.f32.mrf.mxu0  ;;  %v4135_v12 = vpop.f32.mrf.mxu1  ;;  %v1303_v49 = vmul.f32 %v4122_v45, %v4122_v45 }
 0x1a7   : > { %v1301_v20 = vmul.f32 %v4111_v46, %v4111_v46  ;;  %v1239_v10 = vsel %vm562_vm7, %v4111_v46, 0.0  ;;  %v4129_v56 = vadd.f32 %v3165_v23, %v938_v22  ;;  %v951_v22 = vadd.f32 %v4014_v55, %v3984_v6 }
 0x1a8   : > { %v1337_v33 = vadd.f32 %v1336_v60, %v1335_v63  ;;  %v1238_v57 = vadd.f32 %v1237_v29, %v1236_v26  ;;  %v1100_v40 = vpop.f32.mrf.mxu0  ;;  %v1243_v26 = vsel %vm562_vm7, %v4122_v45, 0.0  ;;  %v954_v29 = vadd.f32 %v4026_v19, %v3988_v59 }
 0x1a9   : > { %v4131_v18 = vadd.f32 %v1100_v40, %v930_v1  ;;  %v1340_v24 = vsel %vm562_vm7, %v1301_v20, 0.0  ;;  %v1304_v63 = vmul.f32 %v4129_v56, %v4129_v56  ;;  %v946_v20 = vadd.f32 %v4032_v38, %v3992_v3 }
 0x1aa   : > { %v1240_v42 = vadd.f32 %v1239_v10, %v1238_v57  ;;  %v1339_v2 = vadd.f32 %v1338_v35, %v1337_v33  ;;  %v3168_v51 = vpop.f32.mrf.mxu0  ;;  %v4157_v57 = vpop.f32.mrf.mxu1  ;;  %v1344_v40 = vsel %vm562_vm7, %v1303_v49, 0.0  ;;  %v1245_v35 = vsel %vm562_vm7, %v4129_v56, 0.0 }
 0x1ab   : > { %v1241_v62 = vsel %vm562_vm7, %v4131_v18, 0.0  ;;  %v1302_v58 = vmul.f32 %v4131_v18, %v4131_v18  ;;  %v4162_v10 = vadd.f32 %v3168_v51, %v951_v22  ;;  %v1346_v3 = vsel %vm562_vm7, %v1304_v63, 0.0 }
 0x1ac   : > { %v1341_v52 = vadd.f32 %v1340_v24, %v1339_v2  ;;  %v1242_v11 = vadd.f32 %v1241_v62, %v1240_v42  ;;  %v1113_v1 = vpop.f32.mrf.mxu0  ;;  %v959_v49 = vadd.f32 %v4042_v47, %v3998_v27  ;;  %v4175_v22 = vpop.f32.mrf.mxu1  ;;  %v967_v63 = vadd.f32 %v4038_v25, %v3994_v7 }
 0x1ad   : > { %v1342_v23 = vsel %vm562_vm7, %v1302_v58, 0.0  ;;  %v4151_v60 = vadd.f32 %v1113_v1, %v943_v41 }
 0x1ae   : > { %v1244_v6 = vadd.f32 %v1243_v26, %v1242_v11  ;;  %v1343_v55 = vadd.f32 %v1342_v23, %v1341_v52  ;;  %v3169_v33 = vpop.f32.mrf.mxu0  ;;  %v1307_v52 = vmul.f32 %v4162_v10, %v4162_v10 }
 0x1af   : > { %v1305_v41 = vmul.f32 %v4151_v60, %v4151_v60  ;;  %v1247_v38 = vsel %vm562_vm7, %v4151_v60, 0.0  ;;  %v4169_v2 = vadd.f32 %v3169_v33, %v954_v29  ;;  %v1251_v29 = vsel %vm562_vm7, %v4162_v10, 0.0 }
 0x1b0   : > { %v1345_v42 = vadd.f32 %v1344_v40, %v1343_v55  ;;  %v1246_v59 = vadd.f32 %v1245_v35, %v1244_v6  ;;  %v1116_v19 = vpop.f32.mrf.mxu0  ;;  %v970_v33 = vadd.f32 %v4046_v30, %v4000_v48  ;;  %v962_v40 = vadd.f32 %v4056_v4, %v4004_v14 }
 0x1b1   : > { %v4171_v24 = vadd.f32 %v1116_v19, %v946_v20  ;;  %v1348_v11 = vsel %vm562_vm7, %v1305_v41, 0.0  ;;  %v1308_v20 = vmul.f32 %v4169_v2, %v4169_v2  ;;  %v4197_v41 = vpop.f32.mrf.mxu1 }
 0x1b2   : > { %v1248_v51 = vadd.f32 %v1247_v38, %v1246_v59  ;;  %v1347_v62 = vadd.f32 %v1346_v3, %v1345_v42  ;;  %v3172_v58 = vpop.f32.mrf.mxu0  ;;  %v1352_v42 = vsel %vm562_vm7, %v1307_v52, 0.0  ;;  %v1253_v59 = vsel %vm562_vm7, %v4169_v2, 0.0 }
 0x1b3   : > { %v1249_v1 = vsel %vm562_vm7, %v4171_v24, 0.0  ;;  %v1306_v26 = vmul.f32 %v4171_v24, %v4171_v24  ;;  %v4202_v19 = vadd.f32 %v3172_v58, %v967_v63  ;;  %v1354_v14 = vsel %vm562_vm7, %v1308_v20, 0.0 }
 0x1b4   : > { %v1349_v27 = vadd.f32 %v1348_v11, %v1347_v62  ;;  %v1250_v47 = vadd.f32 %v1249_v1, %v1248_v51  ;;  %v1129_v23 = vpop.f32.mrf.mxu0  ;;  %v975_v62 = vadd.f32 %v4095_v0, %v4010_v8  ;;  %v993_v1 = vpop.f32.mrf.mxu1  ;;  %v983_v8 = vadd.f32 %v4077_v54, %v4006_v9 }
 0x1b5   : > { %v1350_v6 = vsel %vm562_vm7, %v1306_v26, 0.0  ;;  %v4191_v55 = vadd.f32 %v1129_v23, %v959_v49  ;;  %v1311_v26 = vmul.f32 %v4202_v19, %v4202_v19  ;;  %v3307_v23 = vld [vmem:[%s5610_s2 + $0x4] sm:$0xfc]   ;;  %v986_v0 = vadd.f32 %v4117_v53, %v4012_v28 }
 0x1b6   : > { %v1252_v7 = vadd.f32 %v1251_v29, %v1250_v47  ;;  %v1351_v25 = vadd.f32 %v1350_v6, %v1349_v27  ;;  %v3173_v35 = vpop.f32.mrf.mxu0  ;;  %v1938_v28 = vrot.slane %v3307_v23, 2  ;;  %v3150_v53 = vpop.f32.mrf.mxu1 }
 0x1b7   : > { %v1309_v3 = vmul.f32 %v4191_v55, %v4191_v55  ;;  %v1255_v4 = vsel %vm562_vm7, %v4191_v55, 0.0  ;;  %v4209_v49 = vadd.f32 %v3173_v35, %v970_v33  ;;  %v1259_v33 = vsel %vm562_vm7, %v4202_v19, 0.0 }
 0x1b8   : > { %v1353_v38 = vadd.f32 %v1352_v42, %v1351_v25  ;;  %v1254_v48 = vadd.f32 %v1253_v59, %v1252_v7  ;;  %v1132_v30 = vpop.f32.mrf.mxu0  ;;  %v978_v35 = vadd.f32 %v4135_v12, %v4016_v43  ;;  %v1360_v59 = vsel %vm562_vm7, %v1311_v26, 0.0  ;;  %3291 = vmatprep.subr.msk.bf16.mxu1 %vm687_vm0, %v1938_v28 }
 0x1b9   : > { %v4211_v51 = vadd.f32 %v1132_v30, %v962_v40  ;;  %v1356_v63 = vsel %vm562_vm7, %v1309_v3, 0.0  ;;  %v1312_v40 = vmul.f32 %v4209_v49, %v4209_v49  ;;  %v1261_v3 = vsel %vm562_vm7, %v4209_v49, 0.0 }
 0x1ba   : > { %v1256_v58 = vadd.f32 %v1255_v4, %v1254_v48  ;;  %v1355_v52 = vadd.f32 %v1354_v14, %v1353_v38  ;;  %v3176_v11 = vpop.f32.mrf.mxu0  ;;  %v1972_v43 = vsel %vm687_vm0, %v1938_v28, 0 }
 0x1bb   : > { %v1257_v27 = vsel %vm562_vm7, %v4211_v51, 0.0  ;;  %v1310_v47 = vmul.f32 %v4211_v51, %v4211_v51  ;;  %v4241_v38 = vadd.f32 %v3176_v11, %v983_v8  ;;  %v1362_v12 = vsel %vm562_vm7, %v1312_v40, 0.0  ;;  %3187 = vmatpush3.bf16.msra.mxu1 %v1972_v43 }
 0x1bc   : > { %v1357_v29 = vadd.f32 %v1356_v63, %v1355_v52  ;;  %v1258_v20 = vadd.f32 %v1257_v27, %v1256_v58  ;;  %v1145_v6 = vpop.f32.mrf.mxu0  ;;  %v991_v11 = vadd.f32 %v4175_v22, %v4022_v32 }
 0x1bd   : > { %v1358_v7 = vsel %vm562_vm7, %v1310_v47, 0.0  ;;  %v4234_v25 = vadd.f32 %v1145_v6, %v975_v62  ;;  %v1006_v47 = vpop.f32.mrf.mxu1  ;;  %v1315_v23 = vmul.f32 %v4241_v38, %v4241_v38 }
 0x1be   : > { %v1260_v9 = vadd.f32 %v1259_v33, %v1258_v20  ;;  %v1359_v54 = vadd.f32 %v1358_v7, %v1357_v29  ;;  %v3177_v42 = vpop.f32.mrf.mxu0  ;;  %v999_v20 = vadd.f32 %v4157_v57, %v4018_v37  ;;  %v1267_v33 = vsel %vm562_vm7, %v4241_v38, 0.0 }
 0x1bf   : > { %v1313_v48 = vmul.f32 %v4234_v25, %v4234_v25  ;;  %v1263_v62 = vsel %vm562_vm7, %v4234_v25, 0.0  ;;  %v4250_v58 = vadd.f32 %v3177_v42, %v986_v0  ;;  %v3151_v28 = vpop.f32.mrf.mxu1 }
 0x1c0   : > { %v1361_v30 = vadd.f32 %v1360_v59, %v1359_v54  ;;  %v1262_v14 = vadd.f32 %v1261_v3, %v1260_v9  ;;  %v1148_v4 = vpop.f32.mrf.mxu0  ;;  %v1002_v9 = vadd.f32 %v4197_v41, %v4024_v15  ;;  %v994_v54 = vadd.f32 %v993_v1, %v4028_v13 }
 0x1c1   : > { %v4252_v52 = vadd.f32 %v1148_v4, %v978_v35  ;;  %v1364_v8 = vsel %vm562_vm7, %v1313_v48, 0.0  ;;  %v1316_v40 = vmul.f32 %v4250_v58, %v4250_v58  ;;  %v1368_v59 = vsel %vm562_vm7, %v1315_v23, 0.0 }
 0x1c2   : > { %v1264_v26 = vadd.f32 %v1263_v62, %v1262_v14  ;;  %v1363_v63 = vadd.f32 %v1362_v12, %v1361_v30  ;;  %v3180_v27 = vpop.f32.mrf.mxu0  ;;  %v1269_v3 = vsel %vm562_vm7, %v4250_v58, 0.0  ;;  %v1007_v12 = vadd.f32 %v1006_v47, %v4034_v16 }
 0x1c3   : > { %v1265_v29 = vsel %vm562_vm7, %v4252_v52, 0.0  ;;  %v1314_v0 = vmul.f32 %v4252_v52, %v4252_v52  ;;  %v4278_v48 = vadd.f32 %v3180_v27, %v999_v20  ;;  %v1370_v15 = vsel %vm562_vm7, %v1316_v40, 0.0 }
 0x1c4   : > { %v1365_v6 = vadd.f32 %v1364_v8, %v1363_v63  ;;  %v1266_v32 = vadd.f32 %v1265_v29, %v1264_v26  ;;  %v1161_v22 = vpop.f32.mrf.mxu0  ;;  %v1009_v63 = vpop.f32.mrf.mxu1  ;;  %v1018_v40 = vadd.f32 %v3151_v28, %v4036_v5 }
 0x1c5   : > { %v1366_v7 = vsel %vm562_vm7, %v1314_v0, 0.0  ;;  %v4270_v35 = vadd.f32 %v1161_v22, %v991_v11  ;;  %v1319_v27 = vmul.f32 %v4278_v48, %v4278_v48  ;;  %v1015_v0 = vadd.f32 %v3150_v53, %v4030_v31 }
 0x1c6   : > { %v1268_v42 = vadd.f32 %v1267_v33, %v1266_v32  ;;  %v1367_v37 = vadd.f32 %v1366_v7, %v1365_v6  ;;  %v3181_v57 = vpop.f32.mrf.mxu0  ;;  %v1275_v47 = vsel %vm562_vm7, %v4278_v48, 0.0  ;;  %v1010_v7 = vadd.f32 %v1009_v63, %v4040_v34 }
 0x1c7   : > { %v1317_v30 = vmul.f32 %v4270_v35, %v4270_v35  ;;  %v1271_v13 = vsel %vm562_vm7, %v4270_v35, 0.0  ;;  %v4285_v41 = vadd.f32 %v3181_v57, %v1002_v9  ;;  %v1376_v53 = vsel %vm562_vm7, %v1319_v27, 0.0 }
 0x1c8   : > { %v1369_v14 = vadd.f32 %v1368_v59, %v1367_v37  ;;  %v1270_v4 = vadd.f32 %v1269_v3, %v1268_v42  ;;  %v1164_v43 = vpop.f32.mrf.mxu0 }
 0x1c9   : > { %v4287_v1 = vadd.f32 %v1164_v43, %v994_v54  ;;  %v1372_v23 = vsel %vm562_vm7, %v1317_v30, 0.0  ;;  %v1320_v32 = vmul.f32 %v4285_v41, %v4285_v41  ;;  %v1277_v42 = vsel %vm562_vm7, %v4285_v41, 0.0 }
 0x1ca   : > { %v1272_v62 = vadd.f32 %v1271_v13, %v1270_v4  ;;  %v1371_v11 = vadd.f32 %v1370_v15, %v1369_v14  ;;  %v3184_v26 = vpop.f32.mrf.mxu0 }
 0x1cb   : > { %v1273_v8 = vsel %vm562_vm7, %v4287_v1, 0.0  ;;  %v1318_v29 = vmul.f32 %v4287_v1, %v4287_v1  ;;  %v4310_v37 = vadd.f32 %v3184_v26, %v1015_v0  ;;  %v1378_v5 = vsel %vm562_vm7, %v1320_v32, 0.0 }
 0x1cc   : > { %v1373_v20 = vadd.f32 %v1372_v23, %v1371_v11  ;;  %v1274_v6 = vadd.f32 %v1273_v8, %v1272_v62  ;;  %v1177_v16 = vpop.f32.mrf.mxu0 }
 0x1cd   : > { %v1374_v22 = vsel %vm562_vm7, %v1318_v29, 0.0  ;;  %v4303_v33 = vadd.f32 %v1177_v16, %v1007_v12  ;;  %v1323_v15 = vmul.f32 %v4310_v37, %v4310_v37  ;;  %v1283_v63 = vsel %vm562_vm7, %v4310_v37, 0.0 }
 0x1ce   : > { %v1276_v9 = vadd.f32 %v1275_v47, %v1274_v6  ;;  %v1375_v54 = vadd.f32 %v1374_v22, %v1373_v20  ;;  %v3185_v31 = vpop.f32.mrf.mxu0 }
 0x1cf   : > { %v1321_v57 = vmul.f32 %v4303_v33, %v4303_v33  ;;  %v1279_v34 = vsel %vm562_vm7, %v4303_v33, 0.0  ;;  %v4317_v28 = vadd.f32 %v3185_v31, %v1018_v40  ;;  %v1384_v0 = vsel %vm562_vm7, %v1323_v15, 0.0 }
 0x1d0   : > { %v1377_v59 = vadd.f32 %v1376_v53, %v1375_v54  ;;  %v1278_v3 = vadd.f32 %v1277_v42, %v1276_v9  ;;  %v1180_v30 = vpop.f32.mrf.mxu0 }
 0x1d1   : > { %v4319_v14 = vadd.f32 %v1180_v30, %v1010_v7  ;;  %v1380_v13 = vsel %vm562_vm7, %v1321_v57, 0.0  ;;  %v1324_v27 = vmul.f32 %v4317_v28, %v4317_v28  ;;  %v1285_v20 = vsel %vm562_vm7, %v4317_v28, 0.0 }
 0x1d2   : > { %v1280_v4 = vadd.f32 %v1279_v34, %v1278_v3  ;;  %v1379_v43 = vadd.f32 %v1378_v5, %v1377_v59 }
 0x1d3   : > { %v1281_v12 = vsel %vm562_vm7, %v4319_v14, 0.0  ;;  %v1322_v62 = vmul.f32 %v4319_v14, %v4319_v14  ;;  %v1386_v47 = vsel %vm562_vm7, %v1324_v27, 0.0 }
 0x1d4   : > { %v1381_v11 = vadd.f32 %v1380_v13, %v1379_v43  ;;  %v1282_v26 = vadd.f32 %v1281_v12, %v1280_v4 }
 0x1d5   : > { %v1382_v23 = vsel %vm562_vm7, %v1322_v62, 0.0 }
 0x1d6   : > { %v1284_v8 = vadd.f32 %v1283_v63, %v1282_v26  ;;  %v1383_v29 = vadd.f32 %v1382_v23, %v1381_v11 }
 0x1d8   : > { %v1286_v6 = vadd.f32 %v1285_v20, %v1284_v8  ;;  %v1385_v16 = vadd.f32 %v1384_v0, %v1383_v29 }
 0x1da   : > { %v1287_v32 = vrot.slane %v1286_v6, 4  ;;  %v1387_v22 = vadd.f32 %v1386_v47, %v1385_v16 }
 0x1dc   : > { %v1288_v40 = vadd.f32 %v1287_v32, %v1286_v6  ;;  %v1388_v7 = vrot.slane %v1387_v22, 4 }
 0x1de   : > { %v1289_v9 = vrot.slane %v1288_v40, 2  ;;  %v1389_v54 = vadd.f32 %v1388_v7, %v1387_v22 }
 0x1e0   : > { %v1290_v31 = vadd.f32 %v1289_v9, %v1288_v40  ;;  %v1390_v53 = vrot.slane %v1389_v54, 2 }
 0x1e2   : > { %v1291_v42 = vrot.slane %v1290_v31, 1  ;;  %v1391_v57 = vadd.f32 %v1390_v53, %v1389_v54  ;;  %v3308_v53 = vld [vmem:[%s5610_s2] sm:$0x3f]  }
 0x1e3   : > { %3292 = vmatprep.subr.msk.bf16.mxu0 %vm687_vm0, %v3308_v53 }
 0x1e4   : > { %v1292_v59 = vadd.f32 %v1291_v42, %v1290_v31  ;;  %v1392_v3 = vrot.slane %v1391_v57, 1  ;;  %v2141_v42 = vsel %vm687_vm0, %v3308_v53, 0 }
 0x1e5   : > { %3221 = vmatpush3.bf16.msra.mxu0 %v2141_v42 }
 0x1e6   : > { %v1393_v30 = vadd.f32 %v1392_v3, %v1391_v57  ;;  %v4337_v5 = vmul.f32 0.00390625, %v1292_v59  ;;  %v5629_v59 = vld [vmem:[#allocation4_spill] sm:$0xff] }
 0x1e8   : > { %v1395_v34 = vmul.f32 0.00390625, %v1393_v30  ;;  %v1396_v4 = vmul.f32 %v4337_v5, %v4337_v5  ;;  %v1408_v13 = vsub.f32 %v4131_v18, %v4337_v5  ;;  %v1411_v62 = vsub.f32 %v4151_v60, %v4337_v5 }
 0x1e9   : > { %v1412_v11 = vsub.f32 %v4171_v24, %v4337_v5  ;;  %v1413_v26 = vsub.f32 %v4162_v10, %v4337_v5  ;;  %v1414_v63 = vsub.f32 %v4169_v2, %v4337_v5  ;;  %v1415_v27 = vsub.f32 %v4191_v55, %v4337_v5 }
 0x1ea   : > { %v1397_v15 = vsub.f32 %v1395_v34, %v1396_v4  ;;  %v1416_v23 = vsub.f32 %v4211_v51, %v4337_v5  ;;  %v1417_v8 = vsub.f32 %v4202_v19, %v4337_v5  ;;  %v1418_v0 = vsub.f32 %v4209_v49, %v4337_v5 }
 0x1eb   : > { %v1419_v20 = vsub.f32 %v4234_v25, %v4337_v5  ;;  %v1420_v6 = vsub.f32 %v4252_v52, %v4337_v5  ;;  %v1421_v16 = vsub.f32 %v4241_v38, %v4337_v5  ;;  %v1422_v47 = vsub.f32 %v4250_v58, %v4337_v5 }
 0x1ec   : > { %v1398_v12 = vmax.f32 %v1397_v15, 0.0  ;;  %v1425_v40 = vsub.f32 %v4278_v48, %v4337_v5  ;;  %v1426_v7 = vsub.f32 %v4285_v41, %v4337_v5  ;;  %v1399_v57 = vsub.f32 %v4044_v17, %v4337_v5 }
 0x1ed   : > { %v1400_v3 = vsub.f32 %v5629_v59, %v4337_v5  ;;  %v1401_v30 = vsub.f32 %v4048_v61, %v4337_v5  ;;  %v1402_v34 = vsub.f32 %v4052_v36, %v4337_v5  ;;  %v1403_v4 = vsub.f32 %v4073_v44, %v4337_v5 }
 0x1ee   : > { %v1431_v29 = vadd.f32 1e-05, %v1398_v12  ;;  %v1404_v15 = vsub.f32 %v4091_v39, %v4337_v5  ;;  %v1405_v12 = vsub.f32 %v4082_v21, %v4337_v5  ;;  %v1406_v17 = vsub.f32 %v4089_v50, %v4337_v5 }
 0x1ef   : > { %v1407_v61 = vsub.f32 %v4111_v46, %v4337_v5  ;;  %v1409_v36 = vsub.f32 %v4122_v45, %v4337_v5  ;;  %v1410_v44 = vsub.f32 %v4129_v56, %v4337_v5  ;;  %v4423_v45 = vld [vmem:[%s5610_s2 + $0xc] sm:$0x3f]   ;;  %v5631_v48 = vsub.f32 %v4270_v35, %v4337_v5 }
 0x1f0   : > { %3310 = vrsqrt.f32 %v1431_v29  ;;  %3293 = vmatprep.subr.msk.bf16.mxu1 %vm687_vm0, %v4423_v45 }
 0x1fd   : > { %v4402_v29 = vpop.eup %3310 }
 0x1fe   : > { %v1435_v53 = vmul.f32 %v4402_v29, %v1401_v30  ;;  %v1436_v39 = vmul.f32 %v4402_v29, %v1402_v34  ;;  %v1433_v21 = vmul.f32 %v4402_v29, %v1399_v57  ;;  %v1434_v42 = vmul.f32 %v4402_v29, %v1400_v3 }
 0x1ff   : > { %v1439_v59 = vmul.f32 %v4402_v29, %v1405_v12  ;;  %v1440_v50 = vmul.f32 %v4402_v29, %v1406_v17  ;;  %v1437_v46 = vmul.f32 %v4402_v29, %v1403_v4  ;;  %v1438_v43 = vmul.f32 %v4402_v29, %v1404_v15 }
 0x200   : > { %v1467_v56 = vmax.f32 %v1435_v53, 0.0  ;;  %v1468_v30 = vmax.f32 %v1436_v39, 0.0  ;;  %v1465_v34 = vmax.f32 %v1433_v21, 0.0  ;;  %v1466_v9 = vmax.f32 %v1434_v42, 0.0 }
 0x201   : > { %v1471_v57 = vmax.f32 %v1439_v59, 0.0  ;;  %v1472_v31 = vmax.f32 %v1440_v50, 0.0  ;;  %v1469_v3 = vmax.f32 %v1437_v46, 0.0  ;;  %v1470_v54 = vmax.f32 %v1438_v43, 0.0 }
 0x202   : > { %v1498_v12 = vpack.c.bf16 %v1468_v30, %v1467_v56  ;;  %v1497_v4 = vpack.c.bf16 %v1466_v9, %v1465_v34  ;;  %v1443_v15 = vmul.f32 %v4402_v29, %v1409_v36  ;;  %v1444_v17 = vmul.f32 %v4402_v29, %v1410_v44 }
 0x203   : > { %v1500_v22 = vpack.c.bf16 %v1472_v31, %v1471_v57  ;;  %v1499_v32 = vpack.c.bf16 %v1470_v54, %v1469_v3  ;;  %v1441_v53 = vmul.f32 %v4402_v29, %v1407_v61  ;;  %v1442_v39 = vmul.f32 %v4402_v29, %v1408_v13 }
 0x204   : > { %1769 = vrot.lane.b32.xlu1 %v1498_v12, %s3354_s22  ;;  %1771 = vrot.lane.b32.xlu0 %v1497_v4, %s3354_s22  ;;  %v4436_v43 = vshll.u32 %v1498_v12, 16  ;;  %v4438_v9 = vshll.u32 %v1497_v4, 16  ;;  %v4440_v36 = vshrl.u32 %v1498_v12, 16  ;;  %v4442_v44 = vshrl.u32 %v1497_v4, 16 }
 0x205   : > { %v4444_v54 = vshll.u32 %v1500_v22, 16  ;;  %v4446_v31 = vshll.u32 %v1499_v32, 16  ;;  %v1475_v61 = vmax.f32 %v1443_v15, 0.0  ;;  %v1476_v21 = vmax.f32 %v1444_v17, 0.0 }
 0x206   : > { %v1673_v18 = vrot.slane %v4436_v43, 1  ;;  %v1675_v13 = vrot.slane %v4438_v9, 1  ;;  %v1473_v50 = vmax.f32 %v1441_v53, 0.0  ;;  %v1474_v46 = vmax.f32 %v1442_v39, 0.0 }
 0x207   : > { %v1679_v42 = vrot.slane %v4444_v54, 1  ;;  %v1677_v59 = vrot.slane %v4446_v31, 1  ;;  %v1502_v34 = vpack.c.bf16 %v1476_v21, %v1475_v61  ;;  %v1447_v57 = vmul.f32 %v4402_v29, %v1413_v26 }
 0x208   : > { %v1674_v56 = vor.u32 %v1673_v18, %v4440_v36  ;;  %v1676_v30 = vor.u32 %v1675_v13, %v4442_v44  ;;  %v4458_v3 = vshrl.u32 %v1500_v22, 16  ;;  %v1501_v12 = vpack.c.bf16 %v1474_v46, %v1473_v50 }
 0x209   : > { %v1448_v4 = vmul.f32 %v4402_v29, %v1414_v63  ;;  %v4470_v39 = vshrl.u32 %v1499_v32, 16  ;;  %v4472_v10 = vshll.u32 %v1502_v34, 16  ;;  %v1479_v18 = vmax.f32 %v1447_v57, 0.0 }
 0x20a   : > { %v1737_v17 = vsel %vm3431_vm3, %v1674_v56, %v4436_v43  ;;  %v1738_v53 = vsel %vm3431_vm3, %v1676_v30, %v4438_v9  ;;  %v1680_v2 = vor.u32 %v1679_v42, %v4458_v3  ;;  %v4477_v26 = vshll.u32 %v1501_v12, 16 }
 0x20b   : > { %1817 = vrot.lane.b32.xlu1 %v1737_v17, %s3355_s23  ;;  %1819 = vrot.lane.b32.xlu0 %v1738_v53, %s3355_s23  ;;  %v1678_v63 = vor.u32 %v1677_v59, %v4470_v39  ;;  %v1480_v13 = vmax.f32 %v1448_v4, 0.0  ;;  %v1445_v61 = vmul.f32 %v4402_v29, %v1411_v62  ;;  %v1446_v21 = vmul.f32 %v4402_v29, %v1412_v11 }
 0x20c   : > { %v1451_v42 = vmul.f32 %v4402_v29, %v1417_v8  ;;  %v1452_v59 = vmul.f32 %v4402_v29, %v1418_v0  ;;  %v1683_v50 = vrot.slane %v4472_v10, 1  ;;  %v1449_v24 = vmul.f32 %v4402_v29, %v1415_v27 }
 0x20d   : > { %v4497_v60 = vpack.c.bf16 %v1480_v13, %v1479_v18  ;;  %v1477_v62 = vmax.f32 %v1445_v61, 0.0  ;;  %v1681_v19 = vrot.slane %v4477_v26, 1  ;;  %v1478_v11 = vmax.f32 %v1446_v21, 0.0 }
 0x20e   : > { %v1483_v49 = vmax.f32 %v1451_v42, 0.0  ;;  %v1484_v8 = vmax.f32 %v1452_v59, 0.0  ;;  %v1740_v0 = vsel %vm3431_vm3, %v1680_v2, %v4444_v54  ;;  %v1739_v46 = vsel %vm3431_vm3, %v1678_v63, %v4446_v31 }
 0x20f   : > { %1775 = vrot.lane.b32.xlu1 %v1500_v22, %s3354_s22  ;;  %1773 = vrot.lane.b32.xlu0 %v1499_v32, %s3354_s22  ;;  %v4512_v55 = vshrl.u32 %v1502_v34, 16  ;;  %v1450_v27 = vmul.f32 %v4402_v29, %v1416_v23  ;;  %v4518_v32 = vshrl.u32 %v1501_v12, 16  ;;  %v1503_v22 = vpack.c.bf16 %v1478_v11, %v1477_v62 }
 0x210   : > { %v4520_v56 = vpack.c.bf16 %v1484_v8, %v1483_v49  ;;  %v1481_v30 = vmax.f32 %v1449_v24, 0.0  ;;  %v4523_v57 = vshll.u32 %v4497_v60, 16  ;;  %v1455_v17 = vmul.f32 %v4402_v29, %v1421_v16 }
 0x211   : > { %v1482_v4 = vmax.f32 %v1450_v27, 0.0  ;;  %v1456_v51 = vmul.f32 %v4402_v29, %v1422_v47  ;;  %v1684_v23 = vor.u32 %v1683_v50, %v4512_v55  ;;  %v1682_v53 = vor.u32 %v1681_v19, %v4518_v32 }
 0x212   : > { %v4537_v2 = vshll.u32 %v1503_v22, 16  ;;  %v1487_v38 = vmax.f32 %v1455_v17, 0.0  ;;  %v1453_v58 = vmul.f32 %v4402_v29, %v1419_v20  ;;  %v1454_v16 = vmul.f32 %v4402_v29, %v1420_v6 }
 0x213   : > { %1823 = vrot.lane.b32.xlu1 %v1740_v0, %s3355_s23  ;;  %1821 = vrot.lane.b32.xlu0 %v1739_v46, %s3355_s23  ;;  %v4539_v63 = vpack.c.bf16 %v1482_v4, %v1481_v30  ;;  %v1488_v18 = vmax.f32 %v1456_v51, 0.0  ;;  %v1687_v47 = vrot.slane %v4523_v57, 1  ;;  %v4551_v13 = vshll.u32 %v4520_v56, 16 }
 0x214   : > { %v1742_v25 = vsel %vm3431_vm3, %v1684_v23, %v4472_v10  ;;  %v1485_v52 = vmax.f32 %v1453_v58, 0.0  ;;  %v1486_v6 = vmax.f32 %v1454_v16, 0.0  ;;  %v1741_v21 = vsel %vm3431_vm3, %v1682_v53, %v4477_v26 }
 0x215   : > { %v4553_v61 = vpack.c.bf16 %v1488_v18, %v1487_v38  ;;  %v4561_v20 = vshll.u32 %v4539_v63, 16  ;;  %v4567_v42 = vshrl.u32 %v4497_v60, 16  ;;  %v4574_v59 = vshrl.u32 %v1503_v22, 16 }
 0x216   : > { %v4577_v50 = vshrl.u32 %v4520_v56, 16  ;;  %v4579_v62 = vpack.c.bf16 %v1486_v6, %v1485_v52  ;;  %v1460_v24 = vmul.f32 %v4402_v29, %v1426_v7  ;;  %v1691_v11 = vrot.slane %v4551_v13, 1 }
 0x217   : > { %1779 = vrot.lane.b32.xlu1 %v1502_v34, %s3354_s22  ;;  %1777 = vrot.lane.b32.xlu0 %v1501_v12, %s3354_s22  ;;  %v1685_v34 = vrot.slane %v4537_v2, 1  ;;  %v1459_v12 = vmul.f32 %v4402_v29, %v1425_v40  ;;  %v1688_v19 = vor.u32 %v1687_v47, %v4567_v42  ;;  %v1457_v40 = vmul.f32 %v4402_v29, %v5631_v48 }
 0x218   : > { %v4594_v8 = vshrl.u32 %v4539_v63, 16  ;;  %v1689_v41 = vrot.slane %v4561_v20, 1  ;;  %v1492_v7 = vmax.f32 %v1460_v24, 0.0  ;;  %v5632_v0 = vsub.f32 %v4287_v1, %v4337_v5 }
 0x219   : > { %v1491_v49 = vmax.f32 %v1459_v12, 0.0  ;;  %v1686_v27 = vor.u32 %v1685_v34, %v4574_v59  ;;  %v4603_v35 = vshll.u32 %v4553_v61, 16  ;;  %v1489_v30 = vmax.f32 %v1457_v40, 0.0 }
 0x21a   : > { %v1458_v46 = vmul.f32 %v4402_v29, %v5632_v0  ;;  %v5633_v4 = vsub.f32 %v4310_v37, %v4337_v5  ;;  %v4610_v51 = vshll.u32 %v4579_v62, 16  ;;  %v5634_v1 = vsub.f32 %v4317_v28, %v4337_v5 }
 0x21b   : > { %1827 = vrot.lane.b32.xlu1 %v1742_v25, %s3355_s23  ;;  %1825 = vrot.lane.b32.xlu0 %v1741_v21, %s3355_s23  ;;  %v4612_v23 = vpack.c.bf16 %v1492_v7, %v1491_v49  ;;  %v5635_v58 = vsub.f32 %v4303_v33, %v4337_v5  ;;  %v5636_v37 = vsub.f32 %v4319_v14, %v4337_v5  ;;  %v1577_v34 = vrot.slane %v4440_v36, 7 }
 0x21c   : > { %v1463_v17 = vmul.f32 %v4402_v29, %v5633_v4  ;;  %v1490_v53 = vmax.f32 %v1458_v46, 0.0  ;;  %v1464_v38 = vmul.f32 %v4402_v29, %v5634_v1  ;;  %v1692_v28 = vor.u32 %v1691_v11, %v4577_v50 }
 0x21d   : > { %v1461_v16 = vmul.f32 %v4402_v29, %v5635_v58  ;;  %v1462_v47 = vmul.f32 %v4402_v29, %v5636_v37  ;;  %v1690_v25 = vor.u32 %v1689_v41, %v4594_v8  ;;  %v1744_v14 = vsel %vm3431_vm3, %v1688_v19, %v4523_v57 }
 0x21e   : > { %v1495_v18 = vmax.f32 %v1463_v17, 0.0  ;;  %v4631_v52 = vpack.c.bf16 %v1490_v53, %v1489_v30  ;;  %v1496_v6 = vmax.f32 %v1464_v38, 0.0  ;;  %v1743_v5 = vsel %vm3431_vm3, %v1686_v27, %v4537_v2 }
 0x21f   : > { %1783 = vrot.lane.b32.xlu1 %v4497_v60, %s3354_s22  ;;  %1781 = vrot.lane.b32.xlu0 %v1503_v22, %s3354_s22  ;;  %v1493_v33 = vmax.f32 %v1461_v16, 0.0  ;;  %v1494_v21 = vmax.f32 %v1462_v47, 0.0  ;;  %v1695_v29 = vrot.slane %v4603_v35, 1  ;;  %v1693_v60 = vrot.slane %v4610_v51, 1 }
 0x220   : > { %v4642_v22 = vpack.c.bf16 %v1496_v6, %v1495_v18  ;;  %v4647_v24 = vor.u32 %v4436_v43, %v1577_v34  ;;  %v1581_v11 = vrot.slane %v4442_v44, 7  ;;  %v4653_v19 = vshrl.u32 %v4553_v61, 16 }
 0x221   : > { %v4644_v12 = vpack.c.bf16 %v1494_v21, %v1493_v33  ;;  %v4656_v49 = vshrl.u32 %v4579_v62, 16  ;;  %v1589_v48 = vrot.slane %v4458_v3, 7  ;;  %v1746_v40 = vsel %vm3431_vm3, %v1692_v28, %v4551_v13 }
 0x222   : > { %v1745_v43 = vsel %vm3431_vm3, %v1690_v25, %v4561_v20  ;;  %v1696_v41 = vor.u32 %v1695_v29, %v4653_v19  ;;  %v1657_v46 = vsel %vm3560_vm6, %v4440_v36, %v4647_v24  ;;  %v4672_v27 = vor.u32 %v4438_v9, %v1581_v11 }
 0x223   : > { %1831 = vrot.lane.b32.xlu1 %v1744_v14, %s3355_s23  ;;  %1829 = vrot.lane.b32.xlu0 %v1743_v5, %s3355_s23  ;;  %v1694_v7 = vor.u32 %v1693_v60, %v4656_v49  ;;  %v4675_v30 = vshrl.u32 %v4612_v23, 16  ;;  %v4678_v4 = vshll.u32 %v4612_v23, 16  ;;  %v4681_v17 = vor.u32 %v4444_v54, %v1589_v48 }
 0x224   : > { %v1585_v53 = vrot.slane %v4470_v39, 7  ;;  %v4689_v9 = vshrl.u32 %v4631_v52, 16  ;;  %v1658_v1 = vsel %vm3560_vm6, %v4442_v44, %v4672_v27  ;;  %v1597_v38 = vrot.slane %v4512_v55, 7 }
 0x225   : > { %v1593_v54 = vrot.slane %v4518_v32, 7  ;;  %v1626_v18 = vshll.u32 %v4631_v52, 16  ;;  %v4699_v58 = vshrl.u32 %v4642_v22, 16  ;;  %v1605_v47 = vrot.slane %v4567_v42, 7 }
 0x226   : > { %v4709_v16 = vor.u32 %v4472_v10, %v1597_v38  ;;  %v1601_v28 = vrot.slane %v4574_v59, 7  ;;  %v4717_v25 = vshrl.u32 %v4644_v12, 16  ;;  %v1638_v6 = vshll.u32 %v4642_v22, 16 }
 0x227   : > { %1787 = vrot.lane.b32.xlu1 %v4520_v56, %s3354_s22  ;;  %1785 = vrot.lane.b32.xlu0 %v4539_v63, %s3354_s22  ;;  %v1660_v56 = vsel %vm3560_vm6, %v4458_v3, %v4681_v17  ;;  %v4706_v63 = vor.u32 %v4446_v31, %v1585_v53  ;;  %v4712_v37 = vor.u32 %v4477_v26, %v1593_v54  ;;  %v1613_v10 = vrot.slane %v4577_v50, 7 }
 0x228   : > { %v1662_v26 = vsel %vm3560_vm6, %v4512_v55, %v4709_v16  ;;  %v4736_v21 = vor.u32 %v4523_v57, %v1605_v47  ;;  %v1609_v34 = vrot.slane %v4594_v8, 7  ;;  %v4740_v14 = vor.u32 %v4537_v2, %v1601_v28 }
 0x229   : > { %v1659_v31 = vsel %vm3560_vm6, %v4470_v39, %v4706_v63  ;;  %v1661_v33 = vsel %vm3560_vm6, %v4518_v32, %v4712_v37  ;;  %v4743_v5 = vor.u32 %v4551_v13, %v1613_v10  ;;  %v1621_v29 = vrot.slane %v4653_v19, 7 }
 0x22a   : > { %v1617_v60 = vrot.slane %v4656_v49, 7  ;;  %v1664_v11 = vsel %vm3560_vm6, %v4567_v42, %v4736_v21  ;;  %v4752_v57 = vor.u32 %v4561_v20, %v1609_v34  ;;  %v1629_v48 = vrot.slane %v4675_v30, 7 }
 0x22b   : > { %1835 = vrot.lane.b32.xlu1 %v1746_v40, %s3355_s23  ;;  %1833 = vrot.lane.b32.xlu0 %v1745_v43, %s3355_s23  ;;  %v1625_v2 = vrot.slane %v4689_v9, 7  ;;  %v1663_v13 = vsel %vm3560_vm6, %v4574_v59, %v4740_v14  ;;  %v1666_v40 = vsel %vm3560_vm6, %v4577_v50, %v4743_v5  ;;  %v4765_v43 = vor.u32 %v4603_v35, %v1621_v29 }
 0x22c   : > { %v4768_v20 = vor.u32 %v4610_v51, %v1617_v60  ;;  %v1665_v53 = vsel %vm3560_vm6, %v4594_v8, %v4752_v57  ;;  %v4779_v38 = vor.u32 %v4678_v4, %v1629_v48  ;;  %v1637_v47 = vrot.slane %v4699_v58, 7 }
 0x22d   : > { %v4781_v54 = vor.u32 %v1626_v18, %v1625_v2  ;;  %v1634_v28 = vshll.u32 %v4644_v12, 16  ;;  %v1633_v10 = vrot.slane %v4717_v25, 7  ;;  %v1748_v34 = vsel %vm3431_vm3, %v1696_v41, %v4603_v35 }
 0x22e   : > { %v1670_v29 = vsel %vm3560_vm6, %v4675_v30, %v4779_v38  ;;  %v4805_v48 = vor.u32 %v1638_v6, %v1637_v47  ;;  %v1747_v2 = vsel %vm3431_vm3, %v1694_v7, %v4610_v51  ;;  %v5638_v8 = vsel %vm3560_vm6, %v4653_v19, %v4765_v43 }
 0x22f   : > { %1791 = vrot.lane.b32.xlu1 %v4553_v61, %s3354_s22  ;;  %1789 = vrot.lane.b32.xlu0 %v4579_v62, %s3354_s22  ;;  %v1669_v60 = vsel %vm3560_vm6, %v4689_v9, %v4781_v54  ;;  %v1699_v62 = vrot.slane %v4678_v4, 1  ;;  %v1697_v61 = vrot.slane %v1626_v18, 1  ;;  %v4811_v35 = vor.u32 %v1634_v28, %v1633_v10 }
 0x230   : > { %v1701_v41 = vrot.slane %v1634_v28, 1 }
 0x231   : > { %v1671_v47 = vsel %vm3560_vm6, %v4717_v25, %v4811_v35  ;;  %v1700_v51 = vor.u32 %v1699_v62, %v4675_v30  ;;  %v1698_v7 = vor.u32 %v1697_v61, %v4689_v9  ;;  %v5640_v9 = vsel %vm3560_vm6, %v4699_v58, %v4805_v48 }
 0x233   : > { %1839 = vrot.lane.b32.xlu1 %v1748_v34, %s3355_s23  ;;  %1837 = vrot.lane.b32.xlu0 %v1747_v2, %s3355_s23  ;;  %v1750_v10 = vsel %vm3431_vm3, %v1700_v51, %v4678_v4  ;;  %v1749_v34 = vsel %vm3431_vm3, %v1698_v7, %v1626_v18  ;;  %v1703_v2 = vrot.slane %v1638_v6, 1  ;;  %v2312_v51 = vsel %vm687_vm0, %v4423_v45, 0 }
 0x235   : > { %v1704_v61 = vor.u32 %v1703_v2, %v4699_v58 }
 0x237   : > { %1795 = vrot.lane.b32.xlu1 %v4612_v23, %s3354_s22  ;;  %1793 = vrot.lane.b32.xlu0 %v4631_v52, %s3354_s22  ;;  %v1702_v23 = vor.u32 %v1701_v41, %v4717_v25  ;;  %v1752_v52 = vsel %vm3431_vm3, %v1704_v61, %v1638_v6 }
 0x239   : > { %v1751_v4 = vsel %vm3431_vm3, %v1702_v23, %v1634_v28 }
 0x23b   : > { %1843 = vrot.lane.b32.xlu1 %v1750_v10, %s3355_s23  ;;  %1841 = vrot.lane.b32.xlu0 %v1749_v34, %s3355_s23 }
 0x23f   : > { %1799 = vrot.lane.b32.xlu1 %v4642_v22, %s3354_s22  ;;  %1797 = vrot.lane.b32.xlu0 %v4644_v12, %s3354_s22 }
 0x243   : > { %1847 = vrot.lane.b32.xlu1 %v1752_v52, %s3355_s23  ;;  %1845 = vrot.lane.b32.xlu0 %v1751_v4, %s3355_s23 }
 0x276   : > { %v1770_v18 = vpop.permute.xlu1 %1769  ;;  %v1772_v62 = vpop.permute.xlu0 %1771 }
 0x277   : > { %v1851_v22 = vsel %vm562_vm7, %v1657_v46, %v1770_v18  ;;  %v1854_v15 = vsel %vm562_vm7, %v1658_v1, %v1772_v62 }
 0x27d   : > { %v1818_v12 = vpop.permute.xlu1 %1817  ;;  %v1820_v6 = vpop.permute.xlu0 %1819 }
 0x27e   : > { %v4861_v28 = vsel %vm611_vm8, %v1851_v22, %v1818_v12  ;;  %v1900_v41 = vsel %vm611_vm8, %v1854_v15, %v1820_v6 }
 0x27f   : > { %3188 = vmatprep.mubr.msk.bf16.mxu1 %vm654_vm9, %v1900_v41  ;;  %3222 = vmatprep.mubr.msk.bf16.mxu0 %vm654_vm9, %v4861_v28 }
 0x280   : > { %3189 = vmatmul.mubr.msk.bf16.vlgmr.msra.gmra.mxu1 %vm654_vm9, %v4861_v28  ;;  %3223 = vmatmul.mubr.msk.bf16.vlgmr.msra.gmra.mxu0 %vm654_vm9, %v1900_v41 }
 0x281   : > { %3255 = vmatpush3.bf16.msra.mxu1 %v2312_v51  ;;  %v1776_v36 = vpop.permute.xlu1 %1775  ;;  %v1774_v44 = vpop.permute.xlu0 %1773  ;;  %3226 = vmatprep.mubr.msk.bf16.mxu0 %vm654_vm9, %v4861_v28 }
 0x282   : > { %v1860_v45 = vsel %vm562_vm7, %v1660_v56, %v1776_v36  ;;  %v1857_v24 = vsel %vm562_vm7, %v1659_v31, %v1774_v44 }
 0x285   : > { %v1824_v46 = vpop.permute.xlu1 %1823  ;;  %v1822_v27 = vpop.permute.xlu0 %1821 }
 0x286   : > { %v4887_v1 = vsel %vm611_vm8, %v1860_v45, %v1824_v46  ;;  %v4890_v7 = vsel %vm611_vm8, %v1857_v24, %v1822_v27 }
 0x287   : > { %3192 = vmatprep.mubr.msk.bf16.mxu1 %vm654_vm9, %v4890_v7 }
 0x288   : > { %3193 = vmatmul.mubr.msk.bf16.gmra.mxu1 %vm654_vm9, %v4887_v1  ;;  %3227 = vmatmul.mubr.msk.bf16.gmra.mxu0 %vm654_vm9, %v4890_v7 }
 0x289   : > { %v1780_v3 = vpop.permute.xlu1 %1779  ;;  %v1778_v39 = vpop.permute.xlu0 %1777  ;;  %3230 = vmatprep.mubr.msk.bf16.mxu0 %vm654_vm9, %v4887_v1 }
 0x28a   : > { %v1866_v17 = vsel %vm562_vm7, %v1662_v26, %v1780_v3  ;;  %v1863_v56 = vsel %vm562_vm7, %v1661_v33, %v1778_v39 }
 0x28d   : > { %v1828_v63 = vpop.permute.xlu1 %1827  ;;  %v1826_v31 = vpop.permute.xlu0 %1825 }
 0x28e   : > { %v4913_v10 = vsel %vm611_vm8, %v1866_v17, %v1828_v63  ;;  %v4916_v34 = vsel %vm611_vm8, %v1863_v56, %v1826_v31 }
 0x28f   : > { %3196 = vmatprep.mubr.msk.bf16.mxu1 %vm654_vm9, %v4916_v34 }
 0x290   : > { %3197 = vmatmul.mubr.msk.bf16.gmra.mxu1 %vm654_vm9, %v4913_v10  ;;  %3231 = vmatmul.mubr.msk.bf16.gmra.mxu0 %vm654_vm9, %v4916_v34 }
 0x291   : > { %v1784_v55 = vpop.permute.xlu1 %1783  ;;  %v1782_v32 = vpop.permute.xlu0 %1781  ;;  %3234 = vmatprep.mubr.msk.bf16.mxu0 %vm654_vm9, %v4913_v10 }
 0x292   : > { %v1872_v16 = vsel %vm562_vm7, %v1664_v11, %v1784_v55  ;;  %v1869_v37 = vsel %vm562_vm7, %v1663_v13, %v1782_v32 }
 0x295   : > { %v1832_v26 = vpop.permute.xlu1 %1831  ;;  %v1830_v33 = vpop.permute.xlu0 %1829 }
 0x296   : > { %v1912_v2 = vsel %vm611_vm8, %v1872_v16, %v1832_v26  ;;  %v1910_v61 = vsel %vm611_vm8, %v1869_v37, %v1830_v33 }
 0x297   : > { %3200 = vmatprep.mubr.msk.bf16.mxu1 %vm654_vm9, %v1910_v61 }
 0x298   : > { %3201 = vmatmul.mubr.msk.bf16.gmra.mxu1 %vm654_vm9, %v1912_v2  ;;  %3235 = vmatmul.mubr.msk.bf16.gmra.mxu0 %vm654_vm9, %v1910_v61 }
 0x299   : > { %v1788_v42 = vpop.permute.xlu1 %1787  ;;  %v1786_v21 = vpop.permute.xlu0 %1785  ;;  %3238 = vmatprep.mubr.msk.bf16.mxu0 %vm654_vm9, %v1912_v2 }
 0x29a   : > { %v1878_v59 = vsel %vm562_vm7, %v1666_v40, %v1788_v42  ;;  %v1875_v14 = vsel %vm562_vm7, %v1665_v53, %v1786_v21  ;;  %v5639_v40 = vsel %vm3560_vm6, %v4656_v49, %v4768_v20 }
 0x29d   : > { %v1836_v11 = vpop.permute.xlu1 %1835  ;;  %v1834_v13 = vpop.permute.xlu0 %1833 }
 0x29e   : > { %v1916_v23 = vsel %vm611_vm8, %v1878_v59, %v1836_v11  ;;  %v1914_v52 = vsel %vm611_vm8, %v1875_v14, %v1834_v13 }
 0x29f   : > { %3204 = vmatprep.mubr.msk.bf16.mxu1 %vm654_vm9, %v1914_v52 }
 0x2a0   : > { %3205 = vmatmul.mubr.msk.bf16.gmra.mxu1 %vm654_vm9, %v1916_v23  ;;  %3239 = vmatmul.mubr.msk.bf16.gmra.mxu0 %vm654_vm9, %v1914_v52 }
 0x2a1   : > { %v1792_v50 = vpop.permute.xlu1 %1791  ;;  %v1790_v5 = vpop.permute.xlu0 %1789  ;;  %3242 = vmatprep.mubr.msk.bf16.mxu0 %vm654_vm9, %v1916_v23 }
 0x2a2   : > { %v1884_v57 = vsel %vm562_vm7, %v5638_v8, %v1792_v50  ;;  %v1881_v53 = vsel %vm562_vm7, %v5639_v40, %v1790_v5 }
 0x2a5   : > { %v1840_v4 = vpop.permute.xlu1 %1839  ;;  %v1838_v18 = vpop.permute.xlu0 %1837 }
 0x2a6   : > { %v1920_v62 = vsel %vm611_vm8, %v1884_v57, %v1840_v4  ;;  %v1918_v22 = vsel %vm611_vm8, %v1881_v53, %v1838_v18 }
 0x2a7   : > { %3208 = vmatprep.mubr.msk.bf16.mxu1 %vm654_vm9, %v1918_v22 }
 0x2a8   : > { %3209 = vmatmul.mubr.msk.bf16.gmra.mxu1 %vm654_vm9, %v1920_v62  ;;  %3243 = vmatmul.mubr.msk.bf16.gmra.mxu0 %vm654_vm9, %v1918_v22 }
 0x2a9   : > { %v1796_v19 = vpop.permute.xlu1 %1795  ;;  %v1794_v43 = vpop.permute.xlu0 %1793  ;;  %3246 = vmatprep.mubr.msk.bf16.mxu0 %vm654_vm9, %v1920_v62 }
 0x2aa   : > { %v1890_v49 = vsel %vm562_vm7, %v1670_v29, %v1796_v19  ;;  %v1887_v20 = vsel %vm562_vm7, %v1669_v60, %v1794_v43 }
 0x2ad   : > { %v1844_v15 = vpop.permute.xlu1 %1843  ;;  %v1842_v12 = vpop.permute.xlu0 %1841 }
 0x2ae   : > { %v1924_v6 = vsel %vm611_vm8, %v1890_v49, %v1844_v15  ;;  %v1922_v41 = vsel %vm611_vm8, %v1887_v20, %v1842_v12 }
 0x2af   : > { %3212 = vmatprep.mubr.msk.bf16.mxu1 %vm654_vm9, %v1922_v41 }
 0x2b0   : > { %3213 = vmatmul.mubr.msk.bf16.gmra.mxu1 %vm654_vm9, %v1924_v6  ;;  %3247 = vmatmul.mubr.msk.bf16.gmra.mxu0 %vm654_vm9, %v1922_v41 }
 0x2b1   : > { %v1800_v30 = vpop.permute.xlu1 %1799  ;;  %v1798_v38 = vpop.permute.xlu0 %1797  ;;  %3250 = vmatprep.mubr.msk.bf16.mxu0 %vm654_vm9, %v1924_v6 }
 0x2b2   : > { %v1896_v54 = vsel %vm562_vm7, %v5640_v9, %v1800_v30  ;;  %v1893_v29 = vsel %vm562_vm7, %v1671_v47, %v1798_v38 }
 0x2b5   : > { %v1848_v60 = vpop.permute.xlu1 %1847  ;;  %v1846_v51 = vpop.permute.xlu0 %1845 }
 0x2b6   : > { %v1928_v36 = vsel %vm611_vm8, %v1896_v54, %v1848_v60  ;;  %v1926_v44 = vsel %vm611_vm8, %v1893_v29, %v1846_v51 }
 0x2b7   : > { %3216 = vmatprep.mubr.msk.bf16.mxu1 %vm654_vm9, %v1926_v44 }
 0x2b8   : > { %3217 = vmatmul.mubr.msk.bf16.gmra.mxu1 %vm654_vm9, %v1928_v36  ;;  %3251 = vmatmul.mubr.msk.bf16.gmra.mxu0 %vm654_vm9, %v1926_v44 }
 0x2b9   : > { %3256 = vmatprep.mubr.msk.bf16.mxu1 %vm654_vm9, %v4861_v28 }
 0x2c0   : > { %3257 = vmatmul.mubr.msk.bf16.vlgmr.msra.gmra.mxu1 %vm654_vm9, %v4890_v7 }
 0x2c1   : > { %3260 = vmatprep.mubr.msk.bf16.mxu1 %vm654_vm9, %v4887_v1 }
 0x2c8   : > { %3261 = vmatmul.mubr.msk.bf16.gmra.mxu1 %vm654_vm9, %v4916_v34 }
 0x2c9   : > { %3264 = vmatprep.mubr.msk.bf16.mxu1 %vm654_vm9, %v4913_v10 }
 0x2d0   : > { %3265 = vmatmul.mubr.msk.bf16.gmra.mxu1 %vm654_vm9, %v1910_v61 }
 0x2d1   : > { %3268 = vmatprep.mubr.msk.bf16.mxu1 %vm654_vm9, %v1912_v2 }
 0x2d8   : > { %3269 = vmatmul.mubr.msk.bf16.gmra.mxu1 %vm654_vm9, %v1914_v52 }
 0x2d9   : > { %3272 = vmatprep.mubr.msk.bf16.mxu1 %vm654_vm9, %v1916_v23 }
 0x2e0   : > { %3273 = vmatmul.mubr.msk.bf16.gmra.mxu1 %vm654_vm9, %v1918_v22 }
 0x2e1   : > { %3276 = vmatprep.mubr.msk.bf16.mxu1 %vm654_vm9, %v1920_v62 }
 0x2e8   : > { %3277 = vmatmul.mubr.msk.bf16.gmra.mxu1 %vm654_vm9, %v1922_v41 }
 0x2e9   : > { %3280 = vmatprep.mubr.msk.bf16.mxu1 %vm654_vm9, %v1924_v6 }
 0x2f0   : > { %3281 = vmatmul.mubr.msk.bf16.gmra.mxu1 %vm654_vm9, %v1926_v44 }
 0x2f1   : > { %3284 = vmatprep.mubr.msk.bf16.mxu1 %vm654_vm9, %v1928_v36 }
 0x2f8   : > { %3285 = vmatmul.mubr.msk.bf16.gmra.mxu1 %vm654_vm9, %v1926_v44 }
 0x340   : > { %v3190_v0 = vpop.f32.mrf.mxu1  ;;  %v3224_v58 = vpop.f32.mrf.mxu0 }
 0x341   : > { %v2186_v6 = vadd.f32 %v3224_v58, %v3190_v0 }
 0x342   : > { %v2008_v25 = vpop.f32.mrf.mxu1  ;;  %v2177_v48 = vpop.f32.mrf.mxu0 }
 0x343   : > { %v2178_v20 = vadd.f32 %v2177_v48, %v2008_v25 }
 0x344   : > { %v3191_v35 = vpop.f32.mrf.mxu1  ;;  %v3225_v47 = vpop.f32.mrf.mxu0 }
 0x345   : > { %v2189_v38 = vadd.f32 %v3225_v47, %v3191_v35 }
 0x346   : > { %v2011_v28 = vpop.f32.mrf.mxu1  ;;  %v2180_v24 = vpop.f32.mrf.mxu0 }
 0x347   : > { %v2181_v9 = vadd.f32 %v2180_v24, %v2011_v28 }
 0x348   : > { %v5036_v45 = vpop.f32.mrf.mxu1  ;;  %v3228_v1 = vpop.f32.mrf.mxu0 }
 0x349   : > { %v2202_v24 = vadd.f32 %v3228_v1, %v5036_v45 }
 0x34a   : > { %v2024_v46 = vpop.f32.mrf.mxu1  ;;  %v2193_v39 = vpop.f32.mrf.mxu0 }
 0x34b   : > { %v2194_v25 = vadd.f32 %v2193_v39, %v2024_v46 }
 0x34c   : > { %v5038_v27 = vpop.f32.mrf.mxu1  ;;  %v3229_v63 = vpop.f32.mrf.mxu0 }
 0x34e   : > { %v5040_v7 = vpop.f32.mrf.mxu1  ;;  %v2196_v34 = vpop.f32.mrf.mxu0 }
 0x350   : > { %v5042_v3 = vpop.f32.mrf.mxu1  ;;  %v5056_v16 = vpop.f32.mrf.mxu0 }
 0x352   : > { %v5044_v17 = vpop.f32.mrf.mxu1  ;;  %v5062_v33 = vpop.f32.mrf.mxu0 }
 0x354   : > { %v5046_v56 = vpop.f32.mrf.mxu1  ;;  %v5068_v42 = vpop.f32.mrf.mxu0 }
 0x356   : > { %v5048_v31 = vpop.f32.mrf.mxu1  ;;  %v5074_v14 = vpop.f32.mrf.mxu0 }
 0x358   : > { %v5050_v10 = vpop.f32.mrf.mxu1  ;;  %v5080_v23 = vpop.f32.mrf.mxu0 }
 0x35a   : > { %v5052_v55 = vpop.f32.mrf.mxu1  ;;  %v5086_v5 = vpop.f32.mrf.mxu0 }
 0x35c   : > { %v5054_v32 = vpop.f32.mrf.mxu1  ;;  %v5092_v40 = vpop.f32.mrf.mxu0 }
 0x35e   : > { %v5058_v37 = vpop.f32.mrf.mxu1  ;;  %v5098_v18 = vpop.f32.mrf.mxu0 }
 0x360   : > { %v5060_v26 = vpop.f32.mrf.mxu1  ;;  %v5104_v19 = vpop.f32.mrf.mxu0 }
 0x362   : > { %v5064_v2 = vpop.f32.mrf.mxu1  ;;  %v5108_v15 = vpop.f32.mrf.mxu0 }
 0x364   : > { %v5066_v61 = vpop.f32.mrf.mxu1  ;;  %v5112_v54 = vpop.f32.mrf.mxu0 }
 0x366   : > { %v5070_v21 = vpop.f32.mrf.mxu1  ;;  %v5122_v0 = vpop.f32.mrf.mxu0 }
 0x368   : > { %v5072_v59 = vpop.f32.mrf.mxu1 }
 0x36a   : > { %v5076_v11 = vpop.f32.mrf.mxu1 }
 0x36c   : > { %v5078_v13 = vpop.f32.mrf.mxu1 }
 0x36e   : > { %v5082_v52 = vpop.f32.mrf.mxu1 }
 0x370   : > { %v5084_v50 = vpop.f32.mrf.mxu1 }
 0x372   : > { %v5088_v8 = vpop.f32.mrf.mxu1 }
 0x374   : > { %v5090_v57 = vpop.f32.mrf.mxu1 }
 0x376   : > { %v5094_v53 = vpop.f32.mrf.mxu1 }
 0x378   : > { %v5096_v4 = vpop.f32.mrf.mxu1 }
 0x37a   : > { %v5100_v62 = vpop.f32.mrf.mxu1 }
 0x37c   : > { %v5102_v22 = vpop.f32.mrf.mxu1 }
 0x37e   : > { %v5106_v43 = vpop.f32.mrf.mxu1 }
 0x380   : > { %v3258_v49 = vpop.f32.mrf.mxu1 }
 0x381   : > { %v5114_v29 = vadd.f32 %v3258_v49, %v2186_v6 }
 0x382   : > { %v2348_v12 = vpop.f32.mrf.mxu1 }
 0x383   : > { %v5110_v41 = vadd.f32 %v2348_v12, %v2178_v20  ;;  %v2578_v58 = vmul.f32 %v5114_v29, %v5114_v29  ;;  %v2510_v46 = vsel %vm562_vm7, %v5114_v29, 0.0 }
 0x384   : > { %v3259_v30 = vpop.f32.mrf.mxu1 }
 0x385   : > { %v2576_v51 = vmul.f32 %v5110_v41, %v5110_v41  ;;  %v5118_v36 = vadd.f32 %v3259_v30, %v2189_v38  ;;  %v2507_v35 = vsel %vm562_vm7, %v5110_v41, 0.0  ;;  %v2205_v38 = vadd.f32 %v3229_v63, %v5038_v27 }
 0x386   : > { %v2351_v60 = vpop.f32.mrf.mxu1 }
 0x387   : > { %v5120_v44 = vadd.f32 %v2351_v60, %v2181_v9  ;;  %v2608_v20 = vsel %vm562_vm7, %v2576_v51, 0.0  ;;  %v2579_v12 = vmul.f32 %v5118_v36, %v5118_v36  ;;  %v2197_v9 = vadd.f32 %v2196_v34, %v5040_v7 }
 0x388   : > { %v3262_v48 = vpop.f32.mrf.mxu1  ;;  %v2512_v51 = vsel %vm562_vm7, %v5118_v36, 0.0 }
 0x389   : > { %5641 = vst [vmem:[#allocation4_spill] sm:$0xff] %v5120_v44  ;;  %v2508_v47 = vsel %vm562_vm7, %v5120_v44, 0.0  ;;  %v2577_v28 = vmul.f32 %v5120_v44, %v5120_v44  ;;  %v5143_v44 = vpop.f32.mrf.mxu0  ;;  %v2613_v7 = vsel %vm562_vm7, %v2579_v12, 0.0 }
 0x38a   : > { %v2509_v39 = vadd.f32 %v2508_v47, %v2507_v35  ;;  %v2364_v49 = vpop.f32.mrf.mxu1  ;;  %v2611_v35 = vsel %vm562_vm7, %v2578_v58, 0.0  ;;  %v5148_v47 = vadd.f32 %v3262_v48, %v2202_v24  ;;  %v2210_v58 = vadd.f32 %v5062_v33, %v5044_v17 }
 0x38b   : > { %v2609_v6 = vsel %vm562_vm7, %v2577_v28, 0.0  ;;  %v5139_v30 = vadd.f32 %v2364_v49, %v2194_v25 }
 0x38c   : > { %v2511_v60 = vadd.f32 %v2510_v46, %v2509_v39  ;;  %v2610_v45 = vadd.f32 %v2609_v6, %v2608_v20  ;;  %v3263_v1 = vpop.f32.mrf.mxu1  ;;  %v5161_v20 = vpop.f32.mrf.mxu0  ;;  %v2582_v6 = vmul.f32 %v5148_v47, %v5148_v47 }
 0x38d   : > { %v2580_v25 = vmul.f32 %v5139_v30, %v5139_v30  ;;  %v2514_v63 = vsel %vm562_vm7, %v5139_v30, 0.0  ;;  %v5155_v34 = vadd.f32 %v3263_v1, %v2205_v38  ;;  %v2518_v1 = vsel %vm562_vm7, %v5148_v47, 0.0 }
 0x38e   : > { %v2612_v28 = vadd.f32 %v2611_v35, %v2610_v45  ;;  %v2513_v49 = vadd.f32 %v2512_v51, %v2511_v60  ;;  %v2367_v27 = vpop.f32.mrf.mxu1 }
 0x38f   : > { %v5157_v46 = vadd.f32 %v2367_v27, %v2197_v9  ;;  %v2615_v12 = vsel %vm562_vm7, %v2580_v25, 0.0  ;;  %v2218_v9 = vadd.f32 %v5056_v16, %v5042_v3  ;;  %v2583_v35 = vmul.f32 %v5155_v34, %v5155_v34 }
 0x390   : > { %v2515_v48 = vadd.f32 %v2514_v63, %v2513_v49  ;;  %v2614_v24 = vadd.f32 %v2613_v7, %v2612_v28  ;;  %v3266_v39 = vpop.f32.mrf.mxu1  ;;  %v2221_v28 = vadd.f32 %v5068_v42, %v5046_v56  ;;  %v2213_v49 = vadd.f32 %v5074_v14, %v5048_v31  ;;  %v5183_v7 = vpop.f32.mrf.mxu0 }
 0x391   : > { %v2516_v60 = vsel %vm562_vm7, %v5157_v46, 0.0  ;;  %v2581_v38 = vmul.f32 %v5157_v46, %v5157_v46  ;;  %v2619_v63 = vsel %vm562_vm7, %v2582_v6, 0.0  ;;  %v2621_v31 = vsel %vm562_vm7, %v2583_v35, 0.0 }
 0x392   : > { %v2616_v17 = vadd.f32 %v2615_v12, %v2614_v24  ;;  %v2517_v33 = vadd.f32 %v2516_v60, %v2515_v48  ;;  %v2380_v45 = vpop.f32.mrf.mxu1  ;;  %v2520_v48 = vsel %vm562_vm7, %v5155_v34, 0.0  ;;  %v5188_v24 = vadd.f32 %v3266_v39, %v2218_v9 }
 0x393   : > { %v2617_v51 = vsel %vm562_vm7, %v2581_v38, 0.0  ;;  %v5177_v25 = vadd.f32 %v2380_v45, %v2210_v58  ;;  %v2226_v6 = vadd.f32 %v5086_v5, %v5052_v55 }
 0x394   : > { %v2519_v3 = vadd.f32 %v2518_v1, %v2517_v33  ;;  %v2618_v16 = vadd.f32 %v2617_v51, %v2616_v17  ;;  %v3267_v27 = vpop.f32.mrf.mxu1  ;;  %v5201_v33 = vpop.f32.mrf.mxu0  ;;  %v2586_v45 = vmul.f32 %v5188_v24, %v5188_v24 }
 0x395   : > { %v2584_v58 = vmul.f32 %v5177_v25, %v5177_v25  ;;  %v2522_v14 = vsel %vm562_vm7, %v5177_v25, 0.0  ;;  %v5195_v60 = vadd.f32 %v3267_v27, %v2221_v28  ;;  %v2234_v28 = vadd.f32 %v5080_v23, %v5050_v10 }
 0x396   : > { %v2620_v12 = vadd.f32 %v2619_v63, %v2618_v16  ;;  %v2521_v56 = vadd.f32 %v2520_v48, %v2519_v3  ;;  %v2383_v42 = vpop.f32.mrf.mxu1  ;;  %v2526_v3 = vsel %vm562_vm7, %v5188_v24, 0.0  ;;  %v2237_v48 = vadd.f32 %v5092_v40, %v5054_v32 }
 0x397   : > { %v5197_v38 = vadd.f32 %v2383_v42, %v2213_v49  ;;  %v2623_v1 = vsel %vm562_vm7, %v2584_v58, 0.0  ;;  %v2587_v16 = vmul.f32 %v5195_v60, %v5195_v60  ;;  %v2229_v58 = vadd.f32 %v5098_v18, %v5058_v37 }
 0x398   : > { %v2523_v39 = vadd.f32 %v2522_v14, %v2521_v56  ;;  %v2622_v9 = vadd.f32 %v2621_v31, %v2620_v12  ;;  %v3270_v17 = vpop.f32.mrf.mxu1  ;;  %v5223_v56 = vpop.f32.mrf.mxu0  ;;  %v2627_v42 = vsel %vm562_vm7, %v2586_v45, 0.0  ;;  %v2528_v31 = vsel %vm562_vm7, %v5195_v60, 0.0 }
 0x399   : > { %v2524_v35 = vsel %vm562_vm7, %v5197_v38, 0.0  ;;  %v2585_v51 = vmul.f32 %v5197_v38, %v5197_v38  ;;  %v5228_v14 = vadd.f32 %v3270_v17, %v2234_v28  ;;  %v2629_v37 = vsel %vm562_vm7, %v2587_v16, 0.0 }
 0x39a   : > { %v2624_v55 = vadd.f32 %v2623_v1, %v2622_v9  ;;  %v2525_v5 = vadd.f32 %v2524_v35, %v2523_v39  ;;  %v2396_v49 = vpop.f32.mrf.mxu1  ;;  %v2242_v45 = vadd.f32 %v5108_v15, %v5064_v2  ;;  %v5241_v28 = vpop.f32.mrf.mxu0  ;;  %v2250_v16 = vadd.f32 %v5104_v19, %v5060_v26 }
 0x39b   : > { %v2625_v27 = vsel %vm562_vm7, %v2585_v51, 0.0  ;;  %v5217_v63 = vadd.f32 %v2396_v49, %v2226_v6 }
 0x39c   : > { %v2527_v10 = vadd.f32 %v2526_v3, %v2525_v5  ;;  %v2626_v23 = vadd.f32 %v2625_v27, %v2624_v55  ;;  %v3271_v12 = vpop.f32.mrf.mxu1  ;;  %v2590_v55 = vmul.f32 %v5228_v14, %v5228_v14 }
 0x39d   : > { %v2588_v6 = vmul.f32 %v5217_v63, %v5217_v63  ;;  %v2530_v18 = vsel %vm562_vm7, %v5217_v63, 0.0  ;;  %v5235_v9 = vadd.f32 %v3271_v12, %v2237_v48  ;;  %v2534_v48 = vsel %vm562_vm7, %v5228_v14, 0.0 }
 0x39e   : > { %v2628_v39 = vadd.f32 %v2627_v42, %v2626_v23  ;;  %v2529_v32 = vadd.f32 %v2528_v31, %v2527_v10  ;;  %v2399_v40 = vpop.f32.mrf.mxu1  ;;  %v2253_v12 = vadd.f32 %v5112_v54, %v5066_v61  ;;  %v2245_v42 = vadd.f32 %v5122_v0, %v5070_v21 }
 0x39f   : > { %v5237_v1 = vadd.f32 %v2399_v40, %v2229_v58  ;;  %v2631_v5 = vsel %vm562_vm7, %v2588_v6, 0.0  ;;  %v2591_v58 = vmul.f32 %v5235_v9, %v5235_v9  ;;  %v5263_v6 = vpop.f32.mrf.mxu0 }
 0x3a0   : > { %v2531_v17 = vadd.f32 %v2530_v18, %v2529_v32  ;;  %v2630_v35 = vadd.f32 %v2629_v37, %v2628_v39  ;;  %v3274_v51 = vpop.f32.mrf.mxu1  ;;  %v2635_v39 = vsel %vm562_vm7, %v2590_v55, 0.0  ;;  %v2536_v32 = vsel %vm562_vm7, %v5235_v9, 0.0 }
 0x3a1   : > { %v2532_v49 = vsel %vm562_vm7, %v5237_v1, 0.0  ;;  %v2589_v3 = vmul.f32 %v5237_v1, %v5237_v1  ;;  %v5268_v40 = vadd.f32 %v3274_v51, %v2250_v16  ;;  %v2637_v21 = vsel %vm562_vm7, %v2591_v58, 0.0 }
 0x3a2   : > { %v2632_v2 = vadd.f32 %v2631_v5, %v2630_v35  ;;  %v2533_v15 = vadd.f32 %v2532_v49, %v2531_v17  ;;  %v2412_v27 = vpop.f32.mrf.mxu1  ;;  %v2258_v35 = vadd.f32 %v5161_v20, %v5076_v11  ;;  %v2276_v49 = vpop.f32.mrf.mxu0 }
 0x3a3   : > { %v2633_v10 = vsel %vm562_vm7, %v2589_v3, 0.0  ;;  %v5257_v23 = vadd.f32 %v2412_v27, %v2242_v45  ;;  %v2594_v3 = vmul.f32 %v5268_v40, %v5268_v40  ;;  %v2266_v27 = vadd.f32 %v5143_v44, %v5072_v59 }
 0x3a4   : > { %v2535_v26 = vadd.f32 %v2534_v48, %v2533_v15  ;;  %v2634_v19 = vadd.f32 %v2633_v10, %v2632_v2  ;;  %v3275_v31 = vpop.f32.mrf.mxu1  ;;  %v2542_v58 = vsel %vm562_vm7, %v5268_v40, 0.0 }
 0x3a5   : > { %v2592_v37 = vmul.f32 %v5257_v23, %v5257_v23  ;;  %v2538_v0 = vsel %vm562_vm7, %v5257_v23, 0.0  ;;  %v5275_v45 = vadd.f32 %v3275_v31, %v2253_v12 }
 0x3a6   : > { %v2636_v18 = vadd.f32 %v2635_v39, %v2634_v19  ;;  %v2537_v61 = vadd.f32 %v2536_v32, %v2535_v26  ;;  %v2415_v54 = vpop.f32.mrf.mxu1  ;;  %v2269_v26 = vadd.f32 %v5183_v7, %v5078_v13  ;;  %v2261_v19 = vadd.f32 %v5201_v33, %v5082_v52  ;;  %v3252_v39 = vpop.f32.mrf.mxu0 }
 0x3a7   : > { %v5277_v17 = vadd.f32 %v2415_v54, %v2245_v42  ;;  %v2639_v16 = vsel %vm562_vm7, %v2592_v37, 0.0  ;;  %v2595_v10 = vmul.f32 %v5275_v45, %v5275_v45  ;;  %v2643_v32 = vsel %vm562_vm7, %v2594_v3, 0.0 }
 0x3a8   : > { %v2539_v51 = vadd.f32 %v2538_v0, %v2537_v61  ;;  %v2638_v55 = vadd.f32 %v2637_v21, %v2636_v18  ;;  %v3278_v5 = vpop.f32.mrf.mxu1  ;;  %v2544_v37 = vsel %vm562_vm7, %v5275_v45, 0.0  ;;  %v2289_v3 = vpop.f32.mrf.mxu0 }
 0x3a9   : > { %v2540_v2 = vsel %vm562_vm7, %v5277_v17, 0.0  ;;  %v2593_v15 = vmul.f32 %v5277_v17, %v5277_v17  ;;  %v5304_v18 = vadd.f32 %v3278_v5, %v2266_v27  ;;  %v2645_v7 = vsel %vm562_vm7, %v2595_v10, 0.0 }
 0x3aa   : > { %v2640_v48 = vadd.f32 %v2639_v16, %v2638_v55  ;;  %v2541_v11 = vadd.f32 %v2540_v2, %v2539_v51  ;;  %v2428_v20 = vpop.f32.mrf.mxu1 }
 0x3ab   : > { %v2641_v12 = vsel %vm562_vm7, %v2593_v15, 0.0  ;;  %v5295_v42 = vadd.f32 %v2428_v20, %v2258_v35  ;;  %v2274_v35 = vadd.f32 %v5241_v28, %v5088_v8  ;;  %v2598_v16 = vmul.f32 %v5304_v18, %v5304_v18 }
 0x3ac   : > { %v2543_v59 = vadd.f32 %v2542_v58, %v2541_v11  ;;  %v2642_v44 = vadd.f32 %v2641_v12, %v2640_v48  ;;  %v3279_v31 = vpop.f32.mrf.mxu1  ;;  %v2282_v48 = vadd.f32 %v5223_v56, %v5084_v50  ;;  %v2550_v20 = vsel %vm562_vm7, %v5304_v18, 0.0 }
 0x3ad   : > { %v2596_v61 = vmul.f32 %v5295_v42, %v5295_v42  ;;  %v2546_v52 = vsel %vm562_vm7, %v5295_v42, 0.0  ;;  %v5311_v33 = vadd.f32 %v3279_v31, %v2269_v26  ;;  %v2285_v26 = vadd.f32 %v5263_v6, %v5090_v57 }
 0x3ae   : > { %v2644_v54 = vadd.f32 %v2643_v32, %v2642_v44  ;;  %v2545_v21 = vadd.f32 %v2544_v37, %v2543_v59  ;;  %v2431_v13 = vpop.f32.mrf.mxu1  ;;  %v3253_v44 = vpop.f32.mrf.mxu0  ;;  %v2651_v31 = vsel %vm562_vm7, %v2598_v16, 0.0 }
 0x3af   : > { %v5313_v0 = vadd.f32 %v2431_v13, %v2261_v19  ;;  %v2647_v2 = vsel %vm562_vm7, %v2596_v61, 0.0  ;;  %v2599_v58 = vmul.f32 %v5311_v33, %v5311_v33  ;;  %v2277_v19 = vadd.f32 %v2276_v49, %v5094_v53 }
 0x3b0   : > { %v2547_v51 = vadd.f32 %v2546_v52, %v2545_v21  ;;  %v2646_v55 = vadd.f32 %v2645_v7, %v2644_v54  ;;  %v3282_v5 = vpop.f32.mrf.mxu1  ;;  %v2552_v32 = vsel %vm562_vm7, %v5311_v33, 0.0  ;;  %v2290_v7 = vadd.f32 %v2289_v3, %v5100_v62 }
 0x3b1   : > { %v2548_v15 = vsel %vm562_vm7, %v5313_v0, 0.0  ;;  %v2597_v27 = vmul.f32 %v5313_v0, %v5313_v0  ;;  %v5339_v37 = vadd.f32 %v3282_v5, %v2282_v48  ;;  %v2653_v57 = vsel %vm562_vm7, %v2599_v58, 0.0 }
 0x3b2   : > { %v2648_v11 = vadd.f32 %v2647_v2, %v2646_v55  ;;  %v2549_v8 = vadd.f32 %v2548_v15, %v2547_v51  ;;  %v2444_v28 = vpop.f32.mrf.mxu1  ;;  %v2292_v55 = vpop.f32.mrf.mxu0  ;;  %v2301_v58 = vadd.f32 %v3253_v44, %v5102_v22 }
 0x3b3   : > { %v2649_v10 = vsel %vm562_vm7, %v2597_v27, 0.0  ;;  %v5331_v12 = vadd.f32 %v2444_v28, %v2274_v35  ;;  %v2602_v5 = vmul.f32 %v5339_v37, %v5339_v37  ;;  %v2298_v27 = vadd.f32 %v3252_v39, %v5096_v4 }
 0x3b4   : > { %v2551_v59 = vadd.f32 %v2550_v20, %v2549_v8  ;;  %v2650_v50 = vadd.f32 %v2649_v10, %v2648_v11  ;;  %v3283_v56 = vpop.f32.mrf.mxu1  ;;  %v2558_v3 = vsel %vm562_vm7, %v5339_v37, 0.0  ;;  %v2293_v10 = vadd.f32 %v2292_v55, %v5106_v43 }
 0x3b5   : > { %v2600_v61 = vmul.f32 %v5331_v12, %v5331_v12  ;;  %v2554_v53 = vsel %vm562_vm7, %v5331_v12, 0.0  ;;  %v5346_v6 = vadd.f32 %v3283_v56, %v2285_v26  ;;  %v2659_v39 = vsel %vm562_vm7, %v2602_v5, 0.0 }
 0x3b6   : > { %v2652_v54 = vadd.f32 %v2651_v31, %v2650_v50  ;;  %v2553_v21 = vadd.f32 %v2552_v32, %v2551_v59  ;;  %v2447_v13 = vpop.f32.mrf.mxu1 }
 0x3b7   : > { %v5348_v49 = vadd.f32 %v2447_v13, %v2277_v19  ;;  %v2655_v16 = vsel %vm562_vm7, %v2600_v61, 0.0  ;;  %v2603_v8 = vmul.f32 %v5346_v6, %v5346_v6  ;;  %v2560_v59 = vsel %vm562_vm7, %v5346_v6, 0.0 }
 0x3b8   : > { %v2555_v52 = vadd.f32 %v2554_v53, %v2553_v21  ;;  %v2654_v35 = vadd.f32 %v2653_v57, %v2652_v54  ;;  %v3286_v51 = vpop.f32.mrf.mxu1 }
 0x3b9   : > { %v2556_v2 = vsel %vm562_vm7, %v5348_v49, 0.0  ;;  %v2601_v15 = vmul.f32 %v5348_v49, %v5348_v49  ;;  %v5371_v50 = vadd.f32 %v3286_v51, %v2298_v27  ;;  %v2661_v22 = vsel %vm562_vm7, %v2603_v8, 0.0 }
 0x3ba   : > { %v2656_v48 = vadd.f32 %v2655_v16, %v2654_v35  ;;  %v2557_v11 = vadd.f32 %v2556_v2, %v2555_v52  ;;  %v2460_v62 = vpop.f32.mrf.mxu1 }
 0x3bb   : > { %v2657_v28 = vsel %vm562_vm7, %v2601_v15, 0.0  ;;  %v5364_v20 = vadd.f32 %v2460_v62, %v2290_v7  ;;  %v2606_v57 = vmul.f32 %v5371_v50, %v5371_v50  ;;  %v2566_v55 = vsel %vm562_vm7, %v5371_v50, 0.0 }
 0x3bc   : > { %v2559_v26 = vadd.f32 %v2558_v3, %v2557_v11  ;;  %v2658_v19 = vadd.f32 %v2657_v28, %v2656_v48  ;;  %v3287_v4 = vpop.f32.mrf.mxu1 }
 0x3bd   : > { %v2604_v56 = vmul.f32 %v5364_v20, %v5364_v20  ;;  %v2562_v43 = vsel %vm562_vm7, %v5364_v20, 0.0  ;;  %v5378_v44 = vadd.f32 %v3287_v4, %v2301_v58  ;;  %v2667_v27 = vsel %vm562_vm7, %v2606_v57, 0.0 }
 0x3be   : > { %v2660_v31 = vadd.f32 %v2659_v39, %v2658_v19  ;;  %v2561_v32 = vadd.f32 %v2560_v59, %v2559_v26  ;;  %v2463_v61 = vpop.f32.mrf.mxu1 }
 0x3bf   : > { %v5380_v54 = vadd.f32 %v2463_v61, %v2293_v10  ;;  %v2663_v53 = vsel %vm562_vm7, %v2604_v56, 0.0  ;;  %v2607_v5 = vmul.f32 %v5378_v44, %v5378_v44  ;;  %v2568_v48 = vsel %vm562_vm7, %v5378_v44, 0.0 }
 0x3c0   : > { %v2563_v21 = vadd.f32 %v2562_v43, %v2561_v32  ;;  %v2662_v13 = vadd.f32 %v2661_v22, %v2660_v31 }
 0x3c1   : > { %v2564_v7 = vsel %vm562_vm7, %v5380_v54, 0.0  ;;  %v2605_v52 = vmul.f32 %v5380_v54, %v5380_v54  ;;  %v2669_v3 = vsel %vm562_vm7, %v2607_v5, 0.0 }
 0x3c2   : > { %v2664_v35 = vadd.f32 %v2663_v53, %v2662_v13  ;;  %v2565_v51 = vadd.f32 %v2564_v7, %v2563_v21 }
 0x3c3   : > { %v2665_v16 = vsel %vm562_vm7, %v2605_v52, 0.0 }
 0x3c4   : > { %v2567_v2 = vadd.f32 %v2566_v55, %v2565_v51  ;;  %v2666_v15 = vadd.f32 %v2665_v16, %v2664_v35 }
 0x3c6   : > { %v2569_v11 = vadd.f32 %v2568_v48, %v2567_v2  ;;  %v2668_v62 = vadd.f32 %v2667_v27, %v2666_v15 }
 0x3c8   : > { %v2570_v8 = vrot.slane %v2569_v11, 4  ;;  %v2670_v28 = vadd.f32 %v2669_v3, %v2668_v62 }
 0x3ca   : > { %v2571_v58 = vadd.f32 %v2570_v8, %v2569_v11  ;;  %v2671_v10 = vrot.slane %v2670_v28, 4 }
 0x3cc   : > { %v2572_v26 = vrot.slane %v2571_v58, 2  ;;  %v2672_v19 = vadd.f32 %v2671_v10, %v2670_v28 }
 0x3ce   : > { %v2573_v4 = vadd.f32 %v2572_v26, %v2571_v58  ;;  %v2673_v39 = vrot.slane %v2672_v19, 2 }
 0x3d0   : > { %v2574_v59 = vrot.slane %v2573_v4, 1  ;;  %v2674_v56 = vadd.f32 %v2673_v39, %v2672_v19 }
 0x3d2   : > { %v2575_v31 = vadd.f32 %v2574_v59, %v2573_v4  ;;  %v2675_v32 = vrot.slane %v2674_v56, 1 }
 0x3d4   : > { %v2676_v61 = vadd.f32 %v2675_v32, %v2674_v56  ;;  %v5398_v22 = vmul.f32 0.00390625, %v2575_v31 }
 0x3d6   : > { %v2678_v43 = vmul.f32 0.00390625, %v2676_v61  ;;  %v2679_v21 = vmul.f32 %v5398_v22, %v5398_v22  ;;  %v2691_v57 = vsub.f32 %v5197_v38, %v5398_v22  ;;  %v2694_v53 = vsub.f32 %v5217_v63, %v5398_v22 }
 0x3d7   : > { %v2695_v52 = vsub.f32 %v5237_v1, %v5398_v22  ;;  %v2696_v35 = vsub.f32 %v5228_v14, %v5398_v22  ;;  %v2697_v51 = vsub.f32 %v5235_v9, %v5398_v22  ;;  %v2698_v55 = vsub.f32 %v5257_v23, %v5398_v22 }
 0x3d8   : > { %v2680_v13 = vsub.f32 %v2678_v43, %v2679_v21  ;;  %v2699_v5 = vsub.f32 %v5277_v17, %v5398_v22  ;;  %v2700_v38 = vsub.f32 %v5268_v40, %v5398_v22  ;;  %v2701_v63 = vsub.f32 %v5275_v45, %v5398_v22 }
 0x3d9   : > { %v2702_v1 = vsub.f32 %v5295_v42, %v5398_v22  ;;  %v2704_v14 = vsub.f32 %v5304_v18, %v5398_v22  ;;  %v2705_v9 = vsub.f32 %v5311_v33, %v5398_v22  ;;  %v2706_v23 = vsub.f32 %v5331_v12, %v5398_v22  ;;  %v5642_v12 = vld [vmem:[#allocation4_spill] sm:$0xff] }
 0x3da   : > { %v2681_v7 = vmax.f32 %v2680_v13, 0.0  ;;  %v2708_v17 = vsub.f32 %v5339_v37, %v5398_v22  ;;  %v2709_v40 = vsub.f32 %v5346_v6, %v5398_v22  ;;  %v2710_v45 = vsub.f32 %v5364_v20, %v5398_v22 }
 0x3db   : > { %v2712_v42 = vsub.f32 %v5371_v50, %v5398_v22  ;;  %v2713_v18 = vsub.f32 %v5378_v44, %v5398_v22  ;;  %v2682_v33 = vsub.f32 %v5110_v41, %v5398_v22  ;;  %v2683_v37 = vsub.f32 %v5642_v12, %v5398_v22 }
 0x3dc   : > { %v2714_v16 = vadd.f32 1e-05, %v2681_v7  ;;  %v2684_v6 = vsub.f32 %v5114_v29, %v5398_v22  ;;  %v2685_v20 = vsub.f32 %v5118_v36, %v5398_v22  ;;  %v2686_v50 = vsub.f32 %v5139_v30, %v5398_v22 }
 0x3dd   : > { %v2687_v44 = vsub.f32 %v5157_v46, %v5398_v22  ;;  %v2688_v2 = vsub.f32 %v5148_v47, %v5398_v22  ;;  %v2689_v41 = vsub.f32 %v5155_v34, %v5398_v22  ;;  %v2690_v15 = vsub.f32 %v5177_v25, %v5398_v22 }
 0x3de   : > { %3312 = vrsqrt.f32 %v2714_v16  ;;  %v2692_v29 = vsub.f32 %v5188_v24, %v5398_v22  ;;  %v2693_v36 = vsub.f32 %v5195_v60, %v5398_v22  ;;  %v2703_v30 = vsub.f32 %v5313_v0, %v5398_v22 }
 0x3df   : > { %v2707_v46 = vsub.f32 %v5348_v49, %v5398_v22  ;;  %v2711_v47 = vsub.f32 %v5380_v54, %v5398_v22 }
 0x3eb   : > { %v3313_v27 = vpop.eup %3312 }
 0x3ec   : > { %v2716_v34 = vmul.f32 %v3313_v27, %v2682_v33  ;;  %v2717_v48 = vmul.f32 %v3313_v27, %v2683_v37  ;;  %v2718_v11 = vmul.f32 %v3313_v27, %v2684_v6  ;;  %v2719_v25 = vmul.f32 %v3313_v27, %v2685_v20  ;;  %v3322_v33 = vld [vmem:[%s3398_s21 + $0x40] sm:$0xff]  ;;  %v3323_v37 = vld [vmem:[%s3398_s21 + $0x48] sm:$0xff]  ;;  %v3324_v20 = vld [vmem:[%s3398_s21 + $0x50] sm:$0xff] }
 0x3ed   : > { %v2720_v62 = vmul.f32 %v3313_v27, %v2686_v50  ;;  %v2721_v3 = vmul.f32 %v3313_v27, %v2687_v44  ;;  %v2722_v24 = vmul.f32 %v3313_v27, %v2688_v2  ;;  %v2723_v8 = vmul.f32 %v3313_v27, %v2689_v41  ;;  %v3325_v44 = vld [vmem:[%s3398_s21 + $0x58] sm:$0xff]  ;;  %v3326_v41 = vld [vmem:[%s3398_s21 + $0x60] sm:$0xff] }
 0x3ee   : > { %v2724_v28 = vmul.f32 %v3313_v27, %v2690_v15  ;;  %v2725_v58 = vmul.f32 %v3313_v27, %v2691_v57  ;;  %v2726_v60 = vmul.f32 %v3313_v27, %v2692_v29  ;;  %v2727_v10 = vmul.f32 %v3313_v27, %v2693_v36  ;;  %v3327_v29 = vld [vmem:[%s3398_s21 + $0x68] sm:$0xff]  ;;  %v3328_v36 = vld [vmem:[%s3398_s21 + $0x70] sm:$0xff] }
 0x3ef   : > { %v2728_v26 = vmul.f32 %v3313_v27, %v2694_v53  ;;  %v2729_v0 = vmul.f32 %v3313_v27, %v2695_v52  ;;  %v2730_v19 = vmul.f32 %v3313_v27, %v2696_v35  ;;  %v2731_v49 = vmul.f32 %v3313_v27, %v2697_v51  ;;  %v3314_v35 = vld [vmem:[%s3398_s21] sm:$0xff] }
 0x3f0   : > { %v2732_v4 = vmul.f32 %v3313_v27, %v2698_v55  ;;  %v2733_v39 = vmul.f32 %v3313_v27, %v2699_v5  ;;  %v2734_v54 = vmul.f32 %v3313_v27, %v2700_v38  ;;  %v2735_v59 = vmul.f32 %v3313_v27, %v2701_v63  ;;  %v3315_v55 = vld [vmem:[%s3398_s21 + $0x8] sm:$0xff]  ;;  %v3316_v38 = vld [vmem:[%s3398_s21 + $0x10] sm:$0xff] }
 0x3f1   : > { %v5466_v56 = vmul.f32 %v3313_v27, %v2702_v1  ;;  %v5468_v31 = vmul.f32 %v3313_v27, %v2703_v30  ;;  %v5470_v32 = vmul.f32 %v3313_v27, %v2704_v14  ;;  %v5472_v61 = vmul.f32 %v3313_v27, %v2705_v9  ;;  %v3317_v1 = vld [vmem:[%s3398_s21 + $0x18] sm:$0xff]  ;;  %v3318_v9 = vld [vmem:[%s3398_s21 + $0x20] sm:$0xff] }
 0x3f2   : > { %v5474_v22 = vmul.f32 %v3313_v27, %v2706_v23  ;;  %v5476_v43 = vmul.f32 %v3313_v27, %v2707_v46  ;;  %v5478_v21 = vmul.f32 %v3313_v27, %v2708_v17  ;;  %v5480_v13 = vmul.f32 %v3313_v27, %v2709_v40  ;;  %v3319_v17 = vld [vmem:[%s3398_s21 + $0x28] sm:$0xff]  ;;  %v3329_v46 = vld [vmem:[%s3398_s21 + $0x78] sm:$0xff] }
 0x3f3   : > { %v5489_v57 = vmul.f32 %v3313_v27, %v2710_v45  ;;  %v5491_v53 = vmul.f32 %v3313_v27, %v2711_v47  ;;  %v5493_v7 = vmul.f32 %v3313_v27, %v2712_v42  ;;  %v5495_v52 = vmul.f32 %v3313_v27, %v2713_v18  ;;  %v3320_v45 = vld [vmem:[%s3398_s21 + $0x30] sm:$0xff]  ;;  %v3321_v18 = vld [vmem:[%s3398_s21 + $0x38] sm:$0xff] }
 0x3f4   : > { %v2748_v51 = vadd.f32 %v3314_v35, %v2716_v34  ;;  %v2749_v5 = vadd.f32 %v3315_v55, %v2717_v48  ;;  %v2750_v63 = vadd.f32 %v3316_v38, %v2718_v11  ;;  %v2751_v14 = vadd.f32 %v3317_v1, %v2719_v25  ;;  %v3330_v34 = vld [vmem:[%s3398_s21 + $0x80] sm:$0xff]  ;;  %v3331_v11 = vld [vmem:[%s3398_s21 + $0x88] sm:$0xff]  ;;  %v3344_v35 = vld [vmem:[%s3398_s21 + $0xf0] sm:$0xff] }
 0x3f5   : > { %v2752_v23 = vadd.f32 %v3318_v9, %v2720_v62  ;;  %v2753_v40 = vadd.f32 %v3319_v17, %v2721_v3  ;;  %v2754_v42 = vadd.f32 %v3320_v45, %v2722_v24  ;;  %v2755_v16 = vadd.f32 %v3321_v18, %v2723_v8  ;;  %v3332_v62 = vld [vmem:[%s3398_s21 + $0x90] sm:$0xff]  ;;  %v3333_v24 = vld [vmem:[%s3398_s21 + $0x98] sm:$0xff] }
 0x3f6   : > { %v2756_v12 = vadd.f32 %v3322_v33, %v2724_v28  ;;  %v2757_v6 = vadd.f32 %v3323_v37, %v2725_v58  ;;  %v2758_v50 = vadd.f32 %v3324_v20, %v2726_v60  ;;  %v2759_v2 = vadd.f32 %v3325_v44, %v2727_v10  ;;  %2780 = vst.msk [vmem:[%s5487_s7] sm:$0xff] %vm562_vm7, %v2748_v51  ;;  %v3334_v28 = vld [vmem:[%s3398_s21 + $0xa0] sm:$0xff]  ;;  %v3335_v60 = vld [vmem:[%s3398_s21 + $0xa8] sm:$0xff]  ;;  %v3345_v55 = vld [vmem:[%s3398_s21 + $0xf8] sm:$0xff] }
 0x3f7   : > { %2781 = vst.msk [vmem:[%s5487_s7 + $0x8] sm:$0xff] %vm562_vm7, %v2749_v5  ;;  %2782 = vst.msk [vmem:[%s5487_s7 + $0x10] sm:$0xff] %vm562_vm7, %v2750_v63  ;;  %v2760_v15 = vadd.f32 %v3326_v41, %v2728_v26  ;;  %v2761_v27 = vadd.f32 %v3327_v29, %v2729_v0  ;;  %v2762_v30 = vadd.f32 %v3328_v36, %v2730_v19  ;;  %v3336_v26 = vld [vmem:[%s3398_s21 + $0xb0] sm:$0xff]  ;;  %v3337_v19 = vld [vmem:[%s3398_s21 + $0xb8] sm:$0xff] }
 0x3f8   : > { %2783 = vst.msk [vmem:[%s5487_s7 + $0x18] sm:$0xff] %vm562_vm7, %v2751_v14  ;;  %v2763_v47 = vadd.f32 %v3329_v46, %v2731_v49  ;;  %2784 = vst.msk [vmem:[%s5487_s7 + $0x20] sm:$0xff] %vm562_vm7, %v2752_v23  ;;  %v2764_v48 = vadd.f32 %v3330_v34, %v2732_v4  ;;  %v2765_v25 = vadd.f32 %v3331_v11, %v2733_v39  ;;  %v3338_v4 = vld [vmem:[%s3398_s21 + $0xc0] sm:$0xff] }
 0x3f9   : > { %2785 = vst.msk [vmem:[%s5487_s7 + $0x28] sm:$0xff] %vm562_vm7, %v2753_v40  ;;  %2786 = vst.msk [vmem:[%s5487_s7 + $0x30] sm:$0xff] %vm562_vm7, %v2754_v42  ;;  %v2766_v3 = vadd.f32 %v3332_v62, %v2734_v54  ;;  %v2767_v8 = vadd.f32 %v3333_v24, %v2735_v59  ;;  %v2768_v58 = vadd.f32 %v3334_v28, %v5466_v56  ;;  %v3339_v54 = vld [vmem:[%s3398_s21 + $0xc8] sm:$0xff]  ;;  %v3340_v56 = vld [vmem:[%s3398_s21 + $0xd0] sm:$0xff] }
 0x3fa   : > { %2787 = vst.msk [vmem:[%s5487_s7 + $0x38] sm:$0xff] %vm562_vm7, %v2755_v16  ;;  %2788 = vst.msk [vmem:[%s5487_s7 + $0x40] sm:$0xff] %vm562_vm7, %v2756_v12  ;;  %v2769_v10 = vadd.f32 %v3335_v60, %v5468_v31  ;;  %v2770_v0 = vadd.f32 %v3336_v26, %v5470_v32  ;;  %v2771_v49 = vadd.f32 %v3337_v19, %v5472_v61  ;;  %v3341_v32 = vld [vmem:[%s3398_s21 + $0xd8] sm:$0xff] }
 0x3fb   : > { %2789 = vst.msk [vmem:[%s5487_s7 + $0x48] sm:$0xff] %vm562_vm7, %v2757_v6  ;;  %2790 = vst.msk [vmem:[%s5487_s7 + $0x50] sm:$0xff] %vm562_vm7, %v2758_v50  ;;  %v2772_v39 = vadd.f32 %v3338_v4, %v5474_v22  ;;  %v2773_v59 = vadd.f32 %v3339_v54, %v5476_v43  ;;  %v2774_v31 = vadd.f32 %v3340_v56, %v5478_v21  ;;  %v3342_v22 = vld [vmem:[%s3398_s21 + $0xe0] sm:$0xff]  ;;  %v3343_v21 = vld [vmem:[%s3398_s21 + $0xe8] sm:$0xff] }
 0x3fc   : > { %2791 = vst.msk [vmem:[%s5487_s7 + $0x58] sm:$0xff] %vm562_vm7, %v2759_v2  ;;  %2792 = vst.msk [vmem:[%s5487_s7 + $0x60] sm:$0xff] %vm562_vm7, %v2760_v15  ;;  %v2775_v61 = vadd.f32 %v3341_v32, %v5480_v13  ;;  %v2776_v43 = vadd.f32 %v3342_v22, %v5489_v57  ;;  %v2777_v13 = vadd.f32 %v3343_v21, %v5491_v53 }
 0x3fd   : > { %2793 = vst.msk [vmem:[%s5487_s7 + $0x68] sm:$0xff] %vm562_vm7, %v2761_v27  ;;  %2794 = vst.msk [vmem:[%s5487_s7 + $0x70] sm:$0xff] %vm562_vm7, %v2762_v30  ;;  %v2778_v51 = vadd.f32 %v3344_v35, %v5493_v7  ;;  %v2779_v5 = vadd.f32 %v3345_v55, %v5495_v52 }
 0x3fe   : > { %2795 = vst.msk [vmem:[%s5487_s7 + $0x78] sm:$0xff] %vm562_vm7, %v2763_v47  ;;  %2796 = vst.msk [vmem:[%s5487_s7 + $0x80] sm:$0xff] %vm562_vm7, %v2764_v48 }
 0x3ff   : > { %2797 = vst.msk [vmem:[%s5487_s7 + $0x88] sm:$0xff] %vm562_vm7, %v2765_v25  ;;  %2798 = vst.msk [vmem:[%s5487_s7 + $0x90] sm:$0xff] %vm562_vm7, %v2766_v3 }
 0x400   : > { %2799 = vst.msk [vmem:[%s5487_s7 + $0x98] sm:$0xff] %vm562_vm7, %v2767_v8  ;;  %2800 = vst.msk [vmem:[%s5487_s7 + $0xa0] sm:$0xff] %vm562_vm7, %v2768_v58 }
 0x401   : > { %2801 = vst.msk [vmem:[%s5487_s7 + $0xa8] sm:$0xff] %vm562_vm7, %v2769_v10  ;;  %2802 = vst.msk [vmem:[%s5487_s7 + $0xb0] sm:$0xff] %vm562_vm7, %v2770_v0 }
 0x402   : > { %2803 = vst.msk [vmem:[%s5487_s7 + $0xb8] sm:$0xff] %vm562_vm7, %v2771_v49  ;;  %2804 = vst.msk [vmem:[%s5487_s7 + $0xc0] sm:$0xff] %vm562_vm7, %v2772_v39 }
 0x403   : > { %2805 = vst.msk [vmem:[%s5487_s7 + $0xc8] sm:$0xff] %vm562_vm7, %v2773_v59  ;;  %2806 = vst.msk [vmem:[%s5487_s7 + $0xd0] sm:$0xff] %vm562_vm7, %v2774_v31 }
 0x404   : > { %2807 = vst.msk [vmem:[%s5487_s7 + $0xd8] sm:$0xff] %vm562_vm7, %v2775_v61  ;;  %2808 = vst.msk [vmem:[%s5487_s7 + $0xe0] sm:$0xff] %vm562_vm7, %v2776_v43 }
 0x405   : > { %2809 = vst.msk [vmem:[%s5487_s7 + $0xe8] sm:$0xff] %vm562_vm7, %v2777_v13  ;;  %2810 = vst.msk [vmem:[%s5487_s7 + $0xf0] sm:$0xff] %vm562_vm7, %v2778_v51 }
 0x406   : > { %2811 = vst.msk [vmem:[%s5487_s7 + $0xf8] sm:$0xff] %vm562_vm7, %v2779_v5 }
 0x407 PF: > { %s13_s12 = sadd.s32 1, %s3352_s12  }
 0x408   : > { %p10_p4 = scmp.ge.s32.totalorder %s13_s12, 4  }
 0x40a   :  { %12 = sbr.rel (!%p10_p4) target bundleno = 1 (0x1), region = 62 }

// kernel: tpu_custom_call.1
= control target key start
LH: loop header
LB: loop body
LE: loop exit
PB: predicated region body
PF: predicated region fallthrough
CT: control target
= control target key end

     0   :  { %s3376_s12 = smov 0   ;;  %s5608_s0 = inlined_call_operand.vmem [shape: f32[2,16,16,4], index: 0, kind: input, shape index: {}]   ;;  %s5609_s1 = inlined_call_operand.vmem [shape: bf16[36,4], index: 1, kind: input, shape index: {}]   ;;  %s5610_s2 = inlined_call_operand.vmem [shape: bf16[36,4], index: 2, kind: input, shape index: {}]   ;;  %s5611_s3 = inlined_call_operand.vmem [shape: f32[2,16,16,4], index: 3, kind: output, shape index: {}]  }
   0x1 LB: > { %s2867_s13 = sadd.s32 4294967295, %s3352_s12   ;;  %p2871_p0 = scmp.ge.s32.totalorder %s3352_s12, 1  ;;  %s3352_s12 = sphi %s3376_s12, %s13_s12  }
   0x2   : > { %p137_p1 = scmp.lt.s32.totalorder %s3352_s12, 3 }
   0x4   : > { %p138_p2 = pnand %p2871_p0, %p137_p1 }
   0x6   : > { %141 = sbr.rel (%p138_p2) target bundleno = 1031 (0x407), region = 32 }
   0xb   : > { %p161_p3 = scmp.lt.s32.totalorder %s2867_s13, 1  ;;  %v3304_v0 = vld [vmem:[%s5609_s1 + $0x4] sm:$0xfc]   ;;  %vm687_vm0 = vcmask 1045504   ;;  %v3305_v2 = vld [vmem:[%s5609_s1] sm:$0x3f]  }
   0xc   : > { %v653_v1 = vrot.slane %v3304_v0, 2  ;;  %3289 = vmatprep.subr.msk.bf16.mxu1 %vm687_vm0, %v3305_v2  ;;  %v858_v7 = vsel %vm687_vm0, %v3305_v2, 0  ;;  %vm447_vm1 = vcmask 1047552   ;;  %s3354_s22 = smov 4   ;;  %vm448_vm2 = vsmask.f32 7424 }
   0xd   : > { %s5644_s13 = smov (!%p161_p3, %s2867_s13), 1  ;;  %3119 = vmatpush3.bf16.msra.mxu1 %v858_v7  ;;  %vm3431_vm3 = vmand %vm447_vm1, %vm448_vm2  ;;  %v5618_v29 = vmov 0  ;;  %s3355_s23 = smov 8   ;;  %v3469_v49 = vld [vmem:[%s5609_s1 + $0xc] sm:$0x3f]   ;;  %vm364_vm4 = vcmask 1040384  }
   0xe   : > { %s2980_s16 = sshll.u32 %s5644_s13, 8  ;;  %3288 = vmatprep.subr.msk.bf16.mxu0 %vm687_vm0, %v653_v1  ;;  %v689_v6 = vsel %vm687_vm0, %v653_v1, 0  ;;  %v5619_v29 = vsel %vm3431_vm3, 4294967295, %v5618_v29  ;;  %vm365_vm5 = vsmask.f32 256  ;;  %vm562_vm7 = vcmask 31744  }
   0xf   : > { %s3398_s21 = scalar_lea.vmem %s5608_s0, %s2980_s16  ;;  %3085 = vmatpush3.bf16.msra.mxu0 %v689_v6  ;;  %5620 = vst [vmem:[#allocation2_spill] sm:$0xff] %v5619_v29  ;;  %vm3560_vm6 = vmand %vm364_vm4, %vm365_vm5  ;;  %vm611_vm8 = vcmask 64512   ;;  %vm654_vm9 = vcmask 97280   ;;  %s5487_s7 = scalar_lea.vmem %s5611_s3, %s2980_s16 }
  0x10   : > { %v172_v3 = vld [vmem:[%s3398_s21] sm:$0xff]  ;;  %v173_v4 = vld [vmem:[%s3398_s21 + $0x8] sm:$0xff]  ;;  %v174_v5 = vld [vmem:[%s3398_s21 + $0x10] sm:$0xff]  ;;  %3290 = vmatprep.subr.msk.bf16.mxu0 %vm687_vm0, %v3469_v49 }
  0x11   : > { %v204_v8 = vpack.c.bf16 %v173_v4, %v172_v3  ;;  %v175_v9 = vld [vmem:[%s3398_s21 + $0x18] sm:$0xff]  ;;  %v176_v10 = vld [vmem:[%s3398_s21 + $0x20] sm:$0xff]  ;;  %v177_v11 = vld [vmem:[%s3398_s21 + $0x28] sm:$0xff] }
  0x12   : > { %v205_v12 = vpack.c.bf16 %v175_v9, %v174_v5  ;;  %v206_v13 = vpack.c.bf16 %v177_v11, %v176_v10  ;;  %v178_v14 = vld [vmem:[%s3398_s21 + $0x30] sm:$0xff]  ;;  %v179_v15 = vld [vmem:[%s3398_s21 + $0x38] sm:$0xff]  ;;  %v180_v16 = vld [vmem:[%s3398_s21 + $0x40] sm:$0xff] }
  0x13   : > { %484 = vrot.lane.b32.xlu0 %v204_v8, %s3354_s22  ;;  %v3414_v17 = vshrl.u32 %v204_v8, 16  ;;  %v3416_v18 = vshll.u32 %v204_v8, 16  ;;  %v207_v19 = vpack.c.bf16 %v179_v15, %v178_v14  ;;  %v181_v20 = vld [vmem:[%s3398_s21 + $0x48] sm:$0xff]  ;;  %v182_v27 = vld [vmem:[%s3398_s21 + $0x50] sm:$0xff]  ;;  %v183_v28 = vld [vmem:[%s3398_s21 + $0x58] sm:$0xff] }
  0x14   : > { %v3419_v21 = vshrl.u32 %v205_v12, 16  ;;  %v3421_v22 = vshrl.u32 %v206_v13, 16  ;;  %v3423_v23 = vshll.u32 %v205_v12, 16  ;;  %v3425_v24 = vshll.u32 %v206_v13, 16  ;;  %v184_v32 = vld [vmem:[%s3398_s21 + $0x60] sm:$0xff]  ;;  %v185_v33 = vld [vmem:[%s3398_s21 + $0x68] sm:$0xff] }
  0x15   : > { %v385_v25 = vrot.slane %v3416_v18, 1  ;;  %v208_v26 = vpack.c.bf16 %v181_v20, %v180_v16  ;;  %v3441_v35 = vshll.u32 %v207_v19, 16  ;;  %v3447_v39 = vpack.c.bf16 %v183_v28, %v182_v27  ;;  %v186_v43 = vld [vmem:[%s3398_s21 + $0x70] sm:$0xff]  ;;  %v187_v44 = vld [vmem:[%s3398_s21 + $0x78] sm:$0xff]  ;;  %v188_v45 = vld [vmem:[%s3398_s21 + $0x80] sm:$0xff] }
  0x16   : > { %v383_v30 = vrot.slane %v3423_v23, 1  ;;  %v387_v31 = vrot.slane %v3425_v24, 1  ;;  %v3452_v41 = vpack.c.bf16 %v185_v33, %v184_v32  ;;  %v3455_v42 = vshrl.u32 %v207_v19, 16  ;;  %v189_v48 = vld [vmem:[%s3398_s21 + $0x88] sm:$0xff]  ;;  %v190_v61 = vld [vmem:[%s3398_s21 + $0x90] sm:$0xff]  ;;  %v191_v62 = vld [vmem:[%s3398_s21 + $0x98] sm:$0xff] }
  0x17   : > { %482 = vrot.lane.b32.xlu0 %v205_v12, %s3354_s22  ;;  %v386_v34 = vor.u32 %v385_v25, %v3414_v17  ;;  %v3445_v38 = vshll.u32 %v208_v26, 16  ;;  %v389_v47 = vrot.slane %v3441_v35, 1  ;;  %v3474_v51 = vshrl.u32 %v208_v26, 16  ;;  %v192_v5 = vld [vmem:[%s3398_s21 + $0xa0] sm:$0xff]  ;;  %v193_v6 = vld [vmem:[%s3398_s21 + $0xa8] sm:$0xff]  ;;  %v194_v12 = vld [vmem:[%s3398_s21 + $0xb0] sm:$0xff] }
  0x18   : > { %v384_v36 = vor.u32 %v383_v30, %v3419_v21  ;;  %v388_v37 = vor.u32 %v387_v31, %v3421_v22  ;;  %v3478_v53 = vshll.u32 %v3447_v39, 16  ;;  %v3481_v54 = vshll.u32 %v3452_v41, 16  ;;  %v196_v33 = vld [vmem:[%s3398_s21 + $0xc0] sm:$0xff] }
  0x19   : > { %v451_v40 = vsel %vm3431_vm3, %v386_v34, %v3416_v18  ;;  %v391_v52 = vrot.slane %v3445_v38, 1  ;;  %v3483_v55 = vpack.c.bf16 %v187_v44, %v186_v43  ;;  %v3488_v56 = vpack.c.bf16 %v189_v48, %v188_v45  ;;  %v197_v34 = vld [vmem:[%s3398_s21 + $0xc8] sm:$0xff] }
  0x1a   : > { %532 = vrot.lane.b32.xlu1 %v451_v40, %s3355_s23  ;;  %v450_v46 = vsel %vm3431_vm3, %v384_v36, %v3423_v23  ;;  %v452_v50 = vsel %vm3431_vm3, %v388_v37, %v3425_v24  ;;  %v390_v57 = vor.u32 %v389_v47, %v3455_v42  ;;  %v3494_v59 = vshrl.u32 %v3447_v39, 16 }
  0x1b   : > { %486 = vrot.lane.b32.xlu0 %v206_v13, %s3354_s22  ;;  %v392_v58 = vor.u32 %v391_v52, %v3474_v51  ;;  %v393_v60 = vrot.slane %v3478_v53, 1  ;;  %v3500_v63 = vshrl.u32 %v3452_v41, 16  ;;  %v395_v0 = vrot.slane %v3481_v54, 1  ;;  %v195_v13 = vld [vmem:[%s3398_s21 + $0xb8] sm:$0xff] }
  0x1c   : > { %v3504_v1 = vshll.u32 %v3483_v55, 16  ;;  %v3508_v2 = vshll.u32 %v3488_v56, 16  ;;  %v453_v3 = vsel %vm3431_vm3, %v390_v57, %v3441_v35  ;;  %v3514_v4 = vpack.c.bf16 %v191_v62, %v190_v61 }
  0x1d   : > { %v454_v7 = vsel %vm3431_vm3, %v392_v58, %v3445_v38  ;;  %v394_v8 = vor.u32 %v393_v60, %v3494_v59  ;;  %v396_v9 = vor.u32 %v395_v0, %v3500_v63  ;;  %v3524_v10 = vshrl.u32 %v3483_v55, 16 }
  0x1e   : > { %530 = vrot.lane.b32.xlu1 %v450_v46, %s3355_s23  ;;  %v397_v11 = vrot.slane %v3504_v1, 1  ;;  %v3531_v14 = vshrl.u32 %v3488_v56, 16  ;;  %v399_v15 = vrot.slane %v3508_v2, 1  ;;  %v3534_v16 = vpack.c.bf16 %v193_v6, %v192_v5 }
  0x1f   : > { %534 = vrot.lane.b32.xlu0 %v452_v50, %s3355_s23  ;;  %v3541_v20 = vshll.u32 %v3514_v4, 16  ;;  %v455_v25 = vsel %vm3431_vm3, %v394_v8, %v3478_v53  ;;  %v288_v27 = vrot.slane %v3414_v17, 7  ;;  %v284_v28 = vrot.slane %v3419_v21, 7 }
  0x20   : > { %v456_v30 = vsel %vm3431_vm3, %v396_v9, %v3481_v54  ;;  %v398_v31 = vor.u32 %v397_v11, %v3524_v10  ;;  %v3555_v32 = vshrl.u32 %v3534_v16, 16  ;;  %v5621_v36 = vmov 0  ;;  %v199_v11 = vld [vmem:[%s3398_s21 + $0xd8] sm:$0xff] }
  0x21   : > { %v5622_v36 = vsel %vm3560_vm6, 4294967295, %v5621_v36  ;;  %v292_v37 = vrot.slane %v3421_v22, 7  ;;  %v400_v40 = vor.u32 %v399_v15, %v3531_v14  ;;  %v3569_v43 = vshll.u32 %v3534_v16, 16 }
  0x22   : > { %488 = vrot.lane.b32.xlu1 %v207_v19, %s3354_s22  ;;  %v3538_v19 = vshrl.u32 %v3514_v4, 16  ;;  %5623 = vst [vmem:[#allocation3_spill] sm:$0xff] %v5622_v36  ;;  %v3572_v44 = vor.u32 %v3416_v18, %v288_v27  ;;  %v3575_v45 = vor.u32 %v3423_v23, %v284_v28  ;;  %v401_v46 = vrot.slane %v3541_v20, 1 }
  0x23   : > { %490 = vrot.lane.b32.xlu0 %v208_v26, %s3354_s22  ;;  %v3546_v26 = vpack.c.bf16 %v195_v13, %v194_v12  ;;  %v296_v48 = vrot.slane %v3455_v42, 7  ;;  %v3587_v50 = vpack.c.bf16 %v197_v34, %v196_v33  ;;  %v304_v58 = vrot.slane %v3494_v59, 7 }
  0x24   : > { %v368_v18 = vsel %vm3560_vm6, %v3414_v17, %v3572_v44  ;;  %v367_v23 = vsel %vm3560_vm6, %v3419_v21, %v3575_v45  ;;  %v308_v61 = vrot.slane %v3500_v63, 7  ;;  %v312_v62 = vrot.slane %v3524_v10, 7 }
  0x25   : > { %v3581_v47 = vshrl.u32 %v3546_v26, 16  ;;  %v3599_v52 = vshll.u32 %v3546_v26, 16  ;;  %v3606_v57 = vor.u32 %v3441_v35, %v296_v48  ;;  %v316_v0 = vrot.slane %v3531_v14, 7 }
  0x26   : > { %536 = vrot.lane.b32.xlu1 %v453_v3, %s3355_s23  ;;  %v3622_v3 = vor.u32 %v3478_v53, %v304_v58  ;;  %v320_v5 = vrot.slane %v3538_v19, 7  ;;  %v3634_v8 = vor.u32 %v3504_v1, %v312_v62  ;;  %v198_v53 = vld [vmem:[%s3398_s21 + $0xd0] sm:$0xff]  ;;  %v403_v34 = vrot.slane %v3569_v43, 1  ;;  %v200_v62 = vld [vmem:[%s3398_s21 + $0xe0] sm:$0xff] }
  0x27   : > { %538 = vrot.lane.b32.xlu0 %v454_v7, %s3355_s23  ;;  %v370_v35 = vsel %vm3560_vm6, %v3455_v42, %v3606_v57  ;;  %v3631_v7 = vor.u32 %v3481_v54, %v308_v61  ;;  %v3637_v9 = vor.u32 %v3508_v2, %v316_v0  ;;  %v328_v54 = vrot.slane %v3581_v47, 7 }
  0x28   : > { %v372_v12 = vsel %vm3560_vm6, %v3494_v59, %v3622_v3  ;;  %v3646_v13 = vor.u32 %v3541_v20, %v320_v5  ;;  %v374_v28 = vsel %vm3560_vm6, %v3524_v10, %v3634_v8  ;;  %v333_v48 = vshll.u32 %v3587_v50, 16 }
  0x29   : > { %v373_v27 = vsel %vm3560_vm6, %v3500_v63, %v3631_v7  ;;  %v3683_v33 = vor.u32 %v3599_v52, %v328_v54  ;;  %v404_v5 = vor.u32 %v403_v34, %v3555_v32  ;;  %v202_v54 = vld [vmem:[%s3398_s21 + $0xf0] sm:$0xff]  ;;  %v405_v34 = vrot.slane %v3599_v52, 1 }
  0x2a   : > { %492 = vrot.lane.b32.xlu1 %v3447_v39, %s3354_s22  ;;  %v3584_v39 = vor.u32 %v3425_v24, %v292_v37  ;;  %v217_v37 = vpack.c.bf16 %v199_v11, %v198_v53  ;;  %v5624_v8 = vsel %vm3560_vm6, %v3538_v19, %v3646_v13 }
  0x2b   : > { %494 = vrot.lane.b32.xlu0 %v3452_v41, %s3354_s22  ;;  %v300_v41 = vrot.slane %v3474_v51, 7 }
  0x2c   : > { %v369_v24 = vsel %vm3560_vm6, %v3421_v22, %v3584_v39  ;;  %v3696_v61 = vshrl.u32 %v217_v37, 16 }
  0x2d   : > { %v3611_v60 = vor.u32 %v3445_v38, %v300_v41  ;;  %v324_v38 = vrot.slane %v3555_v32, 7  ;;  %v203_v41 = vld [vmem:[%s3398_s21 + $0xf8] sm:$0xff] }
  0x2e   : > { %540 = vrot.lane.b32.xlu1 %v455_v25, %s3355_s23  ;;  %v457_v25 = vsel %vm3431_vm3, %v398_v31, %v3504_v1  ;;  %v3672_v1 = vshrl.u32 %v3587_v50, 16  ;;  %v336_v53 = vrot.slane %v3696_v61, 7 }
  0x2f   : > { %542 = vrot.lane.b32.xlu0 %v456_v30, %s3355_s23  ;;  %v371_v6 = vsel %vm3560_vm6, %v3474_v51, %v3611_v60  ;;  %v3649_v15 = vor.u32 %v3569_v43, %v324_v38  ;;  %v337_v38 = vshll.u32 %v217_v37, 16 }
  0x30   : > { %v332_v58 = vrot.slane %v3672_v1, 7 }
  0x31   : > { %v377_v31 = vsel %vm3560_vm6, %v3555_v32, %v3649_v15 }
  0x32   : > { %496 = vrot.lane.b32.xlu1 %v3483_v55, %s3354_s22  ;;  %v375_v55 = vsel %vm3560_vm6, %v3531_v14, %v3637_v9  ;;  %v3702_v0 = vor.u32 %v333_v48, %v332_v58 }
  0x33   : > { %498 = vrot.lane.b32.xlu0 %v3488_v56, %s3354_s22  ;;  %v458_v56 = vsel %vm3431_vm3, %v400_v40, %v3508_v2  ;;  %v201_v2 = vld [vmem:[%s3398_s21 + $0xe8] sm:$0xff]  ;;  %v402_v40 = vor.u32 %v401_v46, %v3538_v19 }
  0x34   : > { %v218_v11 = vpack.c.bf16 %v201_v2, %v200_v62  ;;  %v460_v62 = vsel %vm3431_vm3, %v404_v5, %v3569_v43  ;;  %v407_v2 = vrot.slane %v333_v48, 1  ;;  %v5625_v19 = vsel %vm3560_vm6, %v3672_v1, %v3702_v0 }
  0x35   : > { %v459_v46 = vsel %vm3431_vm3, %v402_v40, %v3541_v20  ;;  %v406_v40 = vor.u32 %v405_v34, %v3581_v47 }
  0x36   : > { %544 = vrot.lane.b32.xlu1 %v457_v25, %s3355_s23  ;;  %v3722_v58 = vshrl.u32 %v218_v11, 16  ;;  %v219_v25 = vpack.c.bf16 %v203_v41, %v202_v54  ;;  %v408_v43 = vor.u32 %v407_v2, %v3672_v1 }
  0x37   : > { %546 = vrot.lane.b32.xlu0 %v458_v56, %s3355_s23  ;;  %v3714_v56 = vor.u32 %v337_v38, %v336_v53  ;;  %v461_v34 = vsel %vm3431_vm3, %v406_v40, %v3599_v52 }
  0x38   : > { %v340_v53 = vrot.slane %v3722_v58, 7  ;;  %v3733_v20 = vshrl.u32 %v219_v25, 16  ;;  %v345_v41 = vshll.u32 %v219_v25, 16  ;;  %v462_v2 = vsel %vm3431_vm3, %v408_v43, %v333_v48 }
  0x3a   : > { %500 = vrot.lane.b32.xlu1 %v3514_v4, %s3354_s22  ;;  %v344_v5 = vrot.slane %v3733_v20, 7  ;;  %v413_v48 = vrot.slane %v345_v41, 1 }
  0x3b   : > { %502 = vrot.lane.b32.xlu0 %v3534_v16, %s3354_s22  ;;  %v341_v16 = vshll.u32 %v218_v11, 16 }
  0x3c   : > { %v414_v43 = vor.u32 %v413_v48, %v3733_v20 }
  0x3d   : > { %v3737_v30 = vor.u32 %v341_v16, %v340_v53  ;;  %v411_v53 = vrot.slane %v341_v16, 1 }
  0x3e   : > { %548 = vrot.lane.b32.xlu1 %v459_v46, %s3355_s23  ;;  %v3747_v46 = vor.u32 %v345_v41, %v344_v5 }
  0x3f   : > { %550 = vrot.lane.b32.xlu0 %v460_v62, %s3355_s23  ;;  %v381_v54 = vsel %vm3560_vm6, %v3722_v58, %v3737_v30  ;;  %v409_v62 = vrot.slane %v337_v38, 1 }
  0x40   : > { %v382_v4 = vsel %vm3560_vm6, %v3733_v20, %v3747_v46 }
  0x42   : > { %504 = vrot.lane.b32.xlu1 %v3546_v26, %s3354_s22  ;;  %v410_v26 = vor.u32 %v409_v62, %v3696_v61 }
  0x43   : > { %506 = vrot.lane.b32.xlu0 %v3587_v50, %s3354_s22  ;;  %v412_v50 = vor.u32 %v411_v53, %v3722_v58 }
  0x44   : > { %v463_v52 = vsel %vm3431_vm3, %v410_v26, %v337_v38 }
  0x45   : > { %v464_v40 = vsel %vm3431_vm3, %v412_v50, %v341_v16 }
  0x46   : > { %552 = vrot.lane.b32.xlu1 %v461_v34, %s3355_s23 }
  0x47   : > { %554 = vrot.lane.b32.xlu0 %v462_v2, %s3355_s23 }
  0x4a   : > { %508 = vrot.lane.b32.xlu1 %v217_v37, %s3354_s22  ;;  %v465_v37 = vsel %vm3431_vm3, %v414_v43, %v345_v41 }
  0x4b   : > { %510 = vrot.lane.b32.xlu0 %v218_v11, %s3354_s22 }
  0x4e   : > { %556 = vrot.lane.b32.xlu1 %v463_v52, %s3355_s23 }
  0x4f   : > { %558 = vrot.lane.b32.xlu0 %v464_v40, %s3355_s23 }
  0x52   : > { %512 = vrot.lane.b32.xlu1 %v219_v25, %s3354_s22 }
  0x56   : > { %560 = vrot.lane.b32.xlu1 %v465_v37, %s3355_s23 }
  0x85   : > { %v485_v11 = vpop.permute.xlu0 %484 }
  0x86   : > { %v568_v16 = vsel %vm562_vm7, %v368_v18, %v485_v11  ;;  %v1029_v18 = vsel %vm687_vm0, %v3469_v49, 0 }
  0x89   : > { %v483_v38 = vpop.permute.xlu0 %482 }
  0x8a   : > { %v565_v41 = vsel %vm562_vm7, %v367_v23, %v483_v38 }
  0x8c   : > { %v533_v5 = vpop.permute.xlu1 %532 }
  0x8d   : > { %v615_v25 = vsel %vm611_vm8, %v568_v16, %v533_v5  ;;  %v487_v34 = vpop.permute.xlu0 %486 }
  0x8e   : > { %3086 = vmatprep.mubr.msk.bf16.mxu0 %vm654_vm9, %v615_v25  ;;  %v571_v17 = vsel %vm562_vm7, %v369_v24, %v487_v34 }
  0x90   : > { %v531_v44 = vpop.permute.xlu1 %530 }
  0x91   : > { %v3800_v62 = vsel %vm611_vm8, %v565_v41, %v531_v44  ;;  %v535_v2 = vpop.permute.xlu0 %534 }
  0x92   : > { %3087 = vmatmul.mubr.msk.bf16.vlgmr.msra.gmra.mxu0 %vm654_vm9, %v3800_v62  ;;  %3120 = vmatprep.mubr.msk.bf16.mxu1 %vm654_vm9, %v3800_v62  ;;  %v3807_v21 = vsel %vm611_vm8, %v571_v17, %v535_v2 }
  0x93   : > { %3153 = vmatpush3.bf16.msra.mxu0 %v1029_v18  ;;  %3121 = vmatmul.mubr.msk.bf16.vlgmr.msra.gmra.mxu1 %vm654_vm9, %v615_v25 }
  0x94   : > { %v489_v22 = vpop.permute.xlu1 %488  ;;  %3124 = vmatprep.mubr.msk.bf16.mxu1 %vm654_vm9, %v3800_v62  ;;  %3090 = vmatprep.mubr.msk.bf16.mxu0 %vm654_vm9, %v3807_v21 }
  0x95   : > { %v491_v49 = vpop.permute.xlu0 %490  ;;  %v574_v39 = vsel %vm562_vm7, %v370_v35, %v489_v22 }
  0x96   : > { %v577_v45 = vsel %vm562_vm7, %v371_v6, %v491_v49 }
  0x98   : > { %v537_v23 = vpop.permute.xlu1 %536 }
  0x99   : > { %v3827_v24 = vsel %vm611_vm8, %v574_v39, %v537_v23  ;;  %v539_v53 = vpop.permute.xlu0 %538 }
  0x9a   : > { %3091 = vmatmul.mubr.msk.bf16.gmra.mxu0 %vm654_vm9, %v3827_v24  ;;  %v3832_v26 = vsel %vm611_vm8, %v577_v45, %v539_v53 }
  0x9b   : > { %3125 = vmatmul.mubr.msk.bf16.gmra.mxu1 %vm654_vm9, %v3807_v21  ;;  %3094 = vmatprep.mubr.msk.bf16.mxu0 %vm654_vm9, %v3832_v26 }
  0x9c   : > { %v493_v42 = vpop.permute.xlu1 %492  ;;  %3128 = vmatprep.mubr.msk.bf16.mxu1 %vm654_vm9, %v3827_v24 }
  0x9d   : > { %v495_v51 = vpop.permute.xlu0 %494  ;;  %v580_v60 = vsel %vm562_vm7, %v372_v12, %v493_v42 }
  0x9e   : > { %v583_v57 = vsel %vm562_vm7, %v373_v27, %v495_v51 }
  0xa0   : > { %v541_v35 = vpop.permute.xlu1 %540 }
  0xa1   : > { %v3853_v6 = vsel %vm611_vm8, %v580_v60, %v541_v35  ;;  %v543_v50 = vpop.permute.xlu0 %542 }
  0xa2   : > { %3095 = vmatmul.mubr.msk.bf16.gmra.mxu0 %vm654_vm9, %v3853_v6  ;;  %v3858_v52 = vsel %vm611_vm8, %v583_v57, %v543_v50 }
  0xa3   : > { %3129 = vmatmul.mubr.msk.bf16.gmra.mxu1 %vm654_vm9, %v3832_v26  ;;  %3098 = vmatprep.mubr.msk.bf16.mxu0 %vm654_vm9, %v3858_v52 }
  0xa4   : > { %v497_v59 = vpop.permute.xlu1 %496  ;;  %3132 = vmatprep.mubr.msk.bf16.mxu1 %vm654_vm9, %v3853_v6 }
  0xa5   : > { %v499_v63 = vpop.permute.xlu0 %498  ;;  %v586_v7 = vsel %vm562_vm7, %v374_v28, %v497_v59 }
  0xa6   : > { %v589_v3 = vsel %vm562_vm7, %v375_v55, %v499_v63 }
  0xa8   : > { %v545_v12 = vpop.permute.xlu1 %544 }
  0xa9   : > { %v627_v27 = vsel %vm611_vm8, %v586_v7, %v545_v12  ;;  %v547_v48 = vpop.permute.xlu0 %546 }
  0xaa   : > { %3099 = vmatmul.mubr.msk.bf16.gmra.mxu0 %vm654_vm9, %v627_v27  ;;  %v629_v40 = vsel %vm611_vm8, %v589_v3, %v547_v48 }
  0xab   : > { %3133 = vmatmul.mubr.msk.bf16.gmra.mxu1 %vm654_vm9, %v3858_v52  ;;  %3102 = vmatprep.mubr.msk.bf16.mxu0 %vm654_vm9, %v629_v40 }
  0xac   : > { %v501_v14 = vpop.permute.xlu1 %500  ;;  %3136 = vmatprep.mubr.msk.bf16.mxu1 %vm654_vm9, %v627_v27 }
  0xad   : > { %v503_v9 = vpop.permute.xlu0 %502  ;;  %v592_v28 = vsel %vm562_vm7, %v5624_v8, %v501_v14 }
  0xae   : > { %v595_v10 = vsel %vm562_vm7, %v377_v31, %v503_v9  ;;  %v5626_v31 = vsel %vm3560_vm6, %v3581_v47, %v3683_v33  ;;  %v5627_v33 = vsel %vm3560_vm6, %v3696_v61, %v3714_v56 }
  0xb0   : > { %v549_v55 = vpop.permute.xlu1 %548 }
  0xb1   : > { %v631_v43 = vsel %vm611_vm8, %v592_v28, %v549_v55  ;;  %v551_v37 = vpop.permute.xlu0 %550 }
  0xb2   : > { %3103 = vmatmul.mubr.msk.bf16.gmra.mxu0 %vm654_vm9, %v631_v43  ;;  %v633_v11 = vsel %vm611_vm8, %v595_v10, %v551_v37 }
  0xb3   : > { %3137 = vmatmul.mubr.msk.bf16.gmra.mxu1 %vm654_vm9, %v629_v40  ;;  %3106 = vmatprep.mubr.msk.bf16.mxu0 %vm654_vm9, %v633_v11 }
  0xb4   : > { %v505_v32 = vpop.permute.xlu1 %504  ;;  %3140 = vmatprep.mubr.msk.bf16.mxu1 %vm654_vm9, %v631_v43 }
  0xb5   : > { %v507_v15 = vpop.permute.xlu0 %506  ;;  %v598_v38 = vsel %vm562_vm7, %v5626_v31, %v505_v32 }
  0xb6   : > { %v601_v13 = vsel %vm562_vm7, %v5625_v19, %v507_v15 }
  0xb8   : > { %v553_v16 = vpop.permute.xlu1 %552 }
  0xb9   : > { %v635_v5 = vsel %vm611_vm8, %v598_v38, %v553_v16  ;;  %v555_v25 = vpop.permute.xlu0 %554 }
  0xba   : > { %3107 = vmatmul.mubr.msk.bf16.gmra.mxu0 %vm654_vm9, %v635_v5  ;;  %v637_v34 = vsel %vm611_vm8, %v601_v13, %v555_v25 }
  0xbb   : > { %3141 = vmatmul.mubr.msk.bf16.gmra.mxu1 %vm654_vm9, %v633_v11  ;;  %3110 = vmatprep.mubr.msk.bf16.mxu0 %vm654_vm9, %v637_v34 }
  0xbc   : > { %v509_v1 = vpop.permute.xlu1 %508  ;;  %3144 = vmatprep.mubr.msk.bf16.mxu1 %vm654_vm9, %v635_v5 }
  0xbd   : > { %v511_v0 = vpop.permute.xlu0 %510  ;;  %v604_v41 = vsel %vm562_vm7, %v5627_v33, %v509_v1 }
  0xbe   : > { %v607_v47 = vsel %vm562_vm7, %v381_v54, %v511_v0 }
  0xc0   : > { %v557_v17 = vpop.permute.xlu1 %556 }
  0xc1   : > { %v639_v44 = vsel %vm611_vm8, %v604_v41, %v557_v17  ;;  %v559_v18 = vpop.permute.xlu0 %558 }
  0xc2   : > { %3111 = vmatmul.mubr.msk.bf16.gmra.mxu0 %vm654_vm9, %v639_v44  ;;  %v641_v2 = vsel %vm611_vm8, %v607_v47, %v559_v18 }
  0xc3   : > { %3145 = vmatmul.mubr.msk.bf16.gmra.mxu1 %vm654_vm9, %v637_v34  ;;  %3114 = vmatprep.mubr.msk.bf16.mxu0 %vm654_vm9, %v641_v2 }
  0xc4   : > { %v513_v30 = vpop.permute.xlu1 %512  ;;  %3148 = vmatprep.mubr.msk.bf16.mxu1 %vm654_vm9, %v639_v44 }
  0xc5   : > { %v610_v61 = vsel %vm562_vm7, %v382_v4, %v513_v30 }
  0xc8   : > { %v561_v56 = vpop.permute.xlu1 %560 }
  0xc9   : > { %v643_v58 = vsel %vm611_vm8, %v610_v61, %v561_v56 }
  0xca   : > { %3115 = vmatmul.mubr.msk.bf16.gmra.mxu0 %vm654_vm9, %v643_v58 }
  0xcb   : > { %3149 = vmatmul.mubr.msk.bf16.gmra.mxu1 %vm654_vm9, %v641_v2  ;;  %3154 = vmatprep.mubr.msk.bf16.mxu0 %vm654_vm9, %v3800_v62 }
  0xd2   : > { %3155 = vmatmul.mubr.msk.bf16.vlgmr.msra.gmra.mxu0 %vm654_vm9, %v3807_v21 }
  0xd3   : > { %3158 = vmatprep.mubr.msk.bf16.mxu0 %vm654_vm9, %v3827_v24 }
  0xda   : > { %3159 = vmatmul.mubr.msk.bf16.gmra.mxu0 %vm654_vm9, %v3832_v26 }
  0xdb   : > { %3162 = vmatprep.mubr.msk.bf16.mxu0 %vm654_vm9, %v3853_v6 }
  0xe2   : > { %3163 = vmatmul.mubr.msk.bf16.gmra.mxu0 %vm654_vm9, %v3858_v52 }
  0xe3   : > { %3166 = vmatprep.mubr.msk.bf16.mxu0 %vm654_vm9, %v627_v27 }
  0xea   : > { %3167 = vmatmul.mubr.msk.bf16.gmra.mxu0 %vm654_vm9, %v629_v40 }
  0xeb   : > { %3170 = vmatprep.mubr.msk.bf16.mxu0 %vm654_vm9, %v631_v43 }
  0xf2   : > { %3171 = vmatmul.mubr.msk.bf16.gmra.mxu0 %vm654_vm9, %v633_v11 }
  0xf3   : > { %3174 = vmatprep.mubr.msk.bf16.mxu0 %vm654_vm9, %v635_v5 }
  0xfa   : > { %3175 = vmatmul.mubr.msk.bf16.gmra.mxu0 %vm654_vm9, %v637_v34 }
  0xfb   : > { %3178 = vmatprep.mubr.msk.bf16.mxu0 %vm654_vm9, %v639_v44 }
 0x102   : > { %3179 = vmatmul.mubr.msk.bf16.gmra.mxu0 %vm654_vm9, %v641_v2 }
 0x103   : > { %3182 = vmatprep.mubr.msk.bf16.mxu0 %vm654_vm9, %v643_v58 }
 0x10a   : > { %3183 = vmatmul.mubr.msk.bf16.gmra.mxu0 %vm654_vm9, %v641_v2 }
 0x152   : > { %v3088_v4 = vpop.f32.mrf.mxu0 }
 0x153   : > { %v3122_v20 = vpop.f32.mrf.mxu1 }
 0x154   : > { %v725_v54 = vpop.f32.mrf.mxu0  ;;  %v903_v41 = vadd.f32 %v3122_v20, %v3088_v4 }
 0x155   : > { %v894_v46 = vpop.f32.mrf.mxu1 }
 0x156   : > { %v3089_v62 = vpop.f32.mrf.mxu0  ;;  %v895_v0 = vadd.f32 %v894_v46, %v725_v54 }
 0x157   : > { %v3123_v21 = vpop.f32.mrf.mxu1 }
 0x158   : > { %v728_v22 = vpop.f32.mrf.mxu0  ;;  %v906_v18 = vadd.f32 %v3123_v21, %v3089_v62 }
 0x159   : > { %v897_v45 = vpop.f32.mrf.mxu1 }
 0x15a   : > { %v3970_v49 = vpop.f32.mrf.mxu0  ;;  %v898_v2 = vadd.f32 %v897_v45, %v728_v22 }
 0x15b   : > { %v3126_v24 = vpop.f32.mrf.mxu1 }
 0x15c   : > { %v741_v39 = vpop.f32.mrf.mxu0  ;;  %v919_v45 = vadd.f32 %v3126_v24, %v3970_v49 }
 0x15d   : > { %v910_v42 = vpop.f32.mrf.mxu1 }
 0x15e   : > { %v3972_v23 = vpop.f32.mrf.mxu0  ;;  %v911_v46 = vadd.f32 %v910_v42, %v741_v39 }
 0x15f   : > { %v3127_v60 = vpop.f32.mrf.mxu1 }
 0x160   : > { %v3974_v53 = vpop.f32.mrf.mxu0 }
 0x161   : > { %v913_v50 = vpop.f32.mrf.mxu1 }
 0x162   : > { %v3976_v26 = vpop.f32.mrf.mxu0 }
 0x163   : > { %v3990_v63 = vpop.f32.mrf.mxu1 }
 0x164   : > { %v3978_v51 = vpop.f32.mrf.mxu0 }
 0x165   : > { %v3996_v12 = vpop.f32.mrf.mxu1 }
 0x166   : > { %v3980_v57 = vpop.f32.mrf.mxu0 }
 0x167   : > { %v4002_v40 = vpop.f32.mrf.mxu1 }
 0x168   : > { %v3982_v35 = vpop.f32.mrf.mxu0 }
 0x169   : > { %v4008_v10 = vpop.f32.mrf.mxu1 }
 0x16a   : > { %v3984_v6 = vpop.f32.mrf.mxu0 }
 0x16b   : > { %v4014_v55 = vpop.f32.mrf.mxu1 }
 0x16c   : > { %v3986_v52 = vpop.f32.mrf.mxu0 }
 0x16d   : > { %v4020_v11 = vpop.f32.mrf.mxu1 }
 0x16e   : > { %v3988_v59 = vpop.f32.mrf.mxu0 }
 0x16f   : > { %v4026_v19 = vpop.f32.mrf.mxu1 }
 0x170   : > { %v3992_v3 = vpop.f32.mrf.mxu0 }
 0x171   : > { %v4032_v38 = vpop.f32.mrf.mxu1 }
 0x172   : > { %v3994_v7 = vpop.f32.mrf.mxu0 }
 0x173   : > { %v4038_v25 = vpop.f32.mrf.mxu1 }
 0x174   : > { %v3998_v27 = vpop.f32.mrf.mxu0 }
 0x175   : > { %v4042_v47 = vpop.f32.mrf.mxu1 }
 0x176   : > { %v4000_v48 = vpop.f32.mrf.mxu0 }
 0x177   : > { %v4046_v30 = vpop.f32.mrf.mxu1 }
 0x178   : > { %v4004_v14 = vpop.f32.mrf.mxu0 }
 0x179   : > { %v4056_v4 = vpop.f32.mrf.mxu1 }
 0x17a   : > { %v4006_v9 = vpop.f32.mrf.mxu0 }
 0x17c   : > { %v4010_v8 = vpop.f32.mrf.mxu0 }
 0x17e   : > { %v4012_v28 = vpop.f32.mrf.mxu0 }
 0x180   : > { %v4016_v43 = vpop.f32.mrf.mxu0 }
 0x182   : > { %v4018_v37 = vpop.f32.mrf.mxu0 }
 0x184   : > { %v4022_v32 = vpop.f32.mrf.mxu0 }
 0x186   : > { %v4024_v15 = vpop.f32.mrf.mxu0 }
 0x188   : > { %v4028_v13 = vpop.f32.mrf.mxu0 }
 0x18a   : > { %v4030_v31 = vpop.f32.mrf.mxu0 }
 0x18c   : > { %v4034_v16 = vpop.f32.mrf.mxu0 }
 0x18e   : > { %v4036_v5 = vpop.f32.mrf.mxu0 }
 0x190   : > { %v4040_v34 = vpop.f32.mrf.mxu0 }
 0x192   : > { %v3156_v1 = vpop.f32.mrf.mxu0 }
 0x193   : > { %v4048_v61 = vadd.f32 %v3156_v1, %v903_v41 }
 0x194   : > { %v1065_v33 = vpop.f32.mrf.mxu0 }
 0x195   : > { %v4044_v17 = vadd.f32 %v1065_v33, %v895_v0  ;;  %v1295_v20 = vmul.f32 %v4048_v61, %v4048_v61  ;;  %v1227_v39 = vsel %vm562_vm7, %v4048_v61, 0.0 }
 0x196   : > { %v3157_v44 = vpop.f32.mrf.mxu0 }
 0x197   : > { %v1293_v58 = vmul.f32 %v4044_v17, %v4044_v17  ;;  %v4052_v36 = vadd.f32 %v3157_v44, %v906_v18  ;;  %v1224_v62 = vsel %vm562_vm7, %v4044_v17, 0.0  ;;  %v922_v18 = vadd.f32 %v3127_v60, %v3972_v23 }
 0x198   : > { %v1068_v56 = vpop.f32.mrf.mxu0 }
 0x199   : > { %v4054_v54 = vadd.f32 %v1068_v56, %v898_v2  ;;  %v1325_v0 = vsel %vm562_vm7, %v1293_v58, 0.0  ;;  %v1296_v33 = vmul.f32 %v4052_v36, %v4052_v36  ;;  %v914_v2 = vadd.f32 %v913_v50, %v3974_v53 }
 0x19a   : > { %v3160_v29 = vpop.f32.mrf.mxu0  ;;  %v1229_v58 = vsel %vm562_vm7, %v4052_v36, 0.0 }
 0x19b   : > { %5628 = vst [vmem:[#allocation4_spill] sm:$0xff] %v4054_v54  ;;  %v1225_v21 = vsel %vm562_vm7, %v4054_v54, 0.0  ;;  %v1294_v22 = vmul.f32 %v4054_v54, %v4054_v54  ;;  %v4077_v54 = vpop.f32.mrf.mxu1  ;;  %v1330_v53 = vsel %vm562_vm7, %v1296_v33, 0.0 }
 0x19c   : > { %v1226_v42 = vadd.f32 %v1225_v21, %v1224_v62  ;;  %v1081_v1 = vpop.f32.mrf.mxu0  ;;  %v1328_v62 = vsel %vm562_vm7, %v1295_v20, 0.0  ;;  %v4082_v21 = vadd.f32 %v3160_v29, %v919_v45  ;;  %v927_v20 = vadd.f32 %v3996_v12, %v3978_v51 }
 0x19d   : > { %v1326_v41 = vsel %vm562_vm7, %v1294_v22, 0.0  ;;  %v4073_v44 = vadd.f32 %v1081_v1, %v911_v46 }
 0x19e   : > { %v1228_v56 = vadd.f32 %v1227_v39, %v1226_v42  ;;  %v1327_v49 = vadd.f32 %v1326_v41, %v1325_v0  ;;  %v3161_v24 = vpop.f32.mrf.mxu0  ;;  %v4095_v0 = vpop.f32.mrf.mxu1  ;;  %v1299_v41 = vmul.f32 %v4082_v21, %v4082_v21 }
 0x19f   : > { %v1297_v46 = vmul.f32 %v4073_v44, %v4073_v44  ;;  %v1231_v60 = vsel %vm562_vm7, %v4073_v44, 0.0  ;;  %v4089_v50 = vadd.f32 %v3161_v24, %v922_v18  ;;  %v1235_v24 = vsel %vm562_vm7, %v4082_v21, 0.0 }
 0x1a0   : > { %v1329_v22 = vadd.f32 %v1328_v62, %v1327_v49  ;;  %v1230_v1 = vadd.f32 %v1229_v58, %v1228_v56  ;;  %v1084_v23 = vpop.f32.mrf.mxu0 }
 0x1a1   : > { %v4091_v39 = vadd.f32 %v1084_v23, %v914_v2  ;;  %v1332_v33 = vsel %vm562_vm7, %v1297_v46, 0.0  ;;  %v935_v2 = vadd.f32 %v3990_v63, %v3976_v26  ;;  %v1300_v62 = vmul.f32 %v4089_v50, %v4089_v50 }
 0x1a2   : > { %v1232_v29 = vadd.f32 %v1231_v60, %v1230_v1  ;;  %v1331_v45 = vadd.f32 %v1330_v53, %v1329_v22  ;;  %v3164_v42 = vpop.f32.mrf.mxu0  ;;  %v938_v22 = vadd.f32 %v4002_v40, %v3980_v57  ;;  %v930_v1 = vadd.f32 %v4008_v10, %v3982_v35  ;;  %v4117_v53 = vpop.f32.mrf.mxu1 }
 0x1a3   : > { %v1233_v56 = vsel %vm562_vm7, %v4091_v39, 0.0  ;;  %v1298_v18 = vmul.f32 %v4091_v39, %v4091_v39  ;;  %v1336_v60 = vsel %vm562_vm7, %v1299_v41, 0.0  ;;  %v1338_v35 = vsel %vm562_vm7, %v1300_v62, 0.0 }
 0x1a4   : > { %v1333_v51 = vadd.f32 %v1332_v33, %v1331_v45  ;;  %v1234_v12 = vadd.f32 %v1233_v56, %v1232_v29  ;;  %v1097_v49 = vpop.f32.mrf.mxu0  ;;  %v1237_v29 = vsel %vm562_vm7, %v4089_v50, 0.0  ;;  %v4122_v45 = vadd.f32 %v3164_v42, %v935_v2 }
 0x1a5   : > { %v1334_v58 = vsel %vm562_vm7, %v1298_v18, 0.0  ;;  %v4111_v46 = vadd.f32 %v1097_v49, %v927_v20  ;;  %v943_v41 = vadd.f32 %v4020_v11, %v3986_v52 }
 0x1a6   : > { %v1236_v26 = vadd.f32 %v1235_v24, %v1234_v12  ;;  %v1335_v63 = vadd.f32 %v1334_v58, %v1333_v51  ;;  %v3165_v23 = vpop.f32.mrf.mxu0  ;;  %v4135_v12 = vpop.f32.mrf.mxu1  ;;  %v1303_v49 = vmul.f32 %v4122_v45, %v4122_v45 }
 0x1a7   : > { %v1301_v20 = vmul.f32 %v4111_v46, %v4111_v46  ;;  %v1239_v10 = vsel %vm562_vm7, %v4111_v46, 0.0  ;;  %v4129_v56 = vadd.f32 %v3165_v23, %v938_v22  ;;  %v951_v22 = vadd.f32 %v4014_v55, %v3984_v6 }
 0x1a8   : > { %v1337_v33 = vadd.f32 %v1336_v60, %v1335_v63  ;;  %v1238_v57 = vadd.f32 %v1237_v29, %v1236_v26  ;;  %v1100_v40 = vpop.f32.mrf.mxu0  ;;  %v1243_v26 = vsel %vm562_vm7, %v4122_v45, 0.0  ;;  %v954_v29 = vadd.f32 %v4026_v19, %v3988_v59 }
 0x1a9   : > { %v4131_v18 = vadd.f32 %v1100_v40, %v930_v1  ;;  %v1340_v24 = vsel %vm562_vm7, %v1301_v20, 0.0  ;;  %v1304_v63 = vmul.f32 %v4129_v56, %v4129_v56  ;;  %v946_v20 = vadd.f32 %v4032_v38, %v3992_v3 }
 0x1aa   : > { %v1240_v42 = vadd.f32 %v1239_v10, %v1238_v57  ;;  %v1339_v2 = vadd.f32 %v1338_v35, %v1337_v33  ;;  %v3168_v51 = vpop.f32.mrf.mxu0  ;;  %v4157_v57 = vpop.f32.mrf.mxu1  ;;  %v1344_v40 = vsel %vm562_vm7, %v1303_v49, 0.0  ;;  %v1245_v35 = vsel %vm562_vm7, %v4129_v56, 0.0 }
 0x1ab   : > { %v1241_v62 = vsel %vm562_vm7, %v4131_v18, 0.0  ;;  %v1302_v58 = vmul.f32 %v4131_v18, %v4131_v18  ;;  %v4162_v10 = vadd.f32 %v3168_v51, %v951_v22  ;;  %v1346_v3 = vsel %vm562_vm7, %v1304_v63, 0.0 }
 0x1ac   : > { %v1341_v52 = vadd.f32 %v1340_v24, %v1339_v2  ;;  %v1242_v11 = vadd.f32 %v1241_v62, %v1240_v42  ;;  %v1113_v1 = vpop.f32.mrf.mxu0  ;;  %v959_v49 = vadd.f32 %v4042_v47, %v3998_v27  ;;  %v4175_v22 = vpop.f32.mrf.mxu1  ;;  %v967_v63 = vadd.f32 %v4038_v25, %v3994_v7 }
 0x1ad   : > { %v1342_v23 = vsel %vm562_vm7, %v1302_v58, 0.0  ;;  %v4151_v60 = vadd.f32 %v1113_v1, %v943_v41 }
 0x1ae   : > { %v1244_v6 = vadd.f32 %v1243_v26, %v1242_v11  ;;  %v1343_v55 = vadd.f32 %v1342_v23, %v1341_v52  ;;  %v3169_v33 = vpop.f32.mrf.mxu0  ;;  %v1307_v52 = vmul.f32 %v4162_v10, %v4162_v10 }
 0x1af   : > { %v1305_v41 = vmul.f32 %v4151_v60, %v4151_v60  ;;  %v1247_v38 = vsel %vm562_vm7, %v4151_v60, 0.0  ;;  %v4169_v2 = vadd.f32 %v3169_v33, %v954_v29  ;;  %v1251_v29 = vsel %vm562_vm7, %v4162_v10, 0.0 }
 0x1b0   : > { %v1345_v42 = vadd.f32 %v1344_v40, %v1343_v55  ;;  %v1246_v59 = vadd.f32 %v1245_v35, %v1244_v6  ;;  %v1116_v19 = vpop.f32.mrf.mxu0  ;;  %v970_v33 = vadd.f32 %v4046_v30, %v4000_v48  ;;  %v962_v40 = vadd.f32 %v4056_v4, %v4004_v14 }
 0x1b1   : > { %v4171_v24 = vadd.f32 %v1116_v19, %v946_v20  ;;  %v1348_v11 = vsel %vm562_vm7, %v1305_v41, 0.0  ;;  %v1308_v20 = vmul.f32 %v4169_v2, %v4169_v2  ;;  %v4197_v41 = vpop.f32.mrf.mxu1 }
 0x1b2   : > { %v1248_v51 = vadd.f32 %v1247_v38, %v1246_v59  ;;  %v1347_v62 = vadd.f32 %v1346_v3, %v1345_v42  ;;  %v3172_v58 = vpop.f32.mrf.mxu0  ;;  %v1352_v42 = vsel %vm562_vm7, %v1307_v52, 0.0  ;;  %v1253_v59 = vsel %vm562_vm7, %v4169_v2, 0.0 }
 0x1b3   : > { %v1249_v1 = vsel %vm562_vm7, %v4171_v24, 0.0  ;;  %v1306_v26 = vmul.f32 %v4171_v24, %v4171_v24  ;;  %v4202_v19 = vadd.f32 %v3172_v58, %v967_v63  ;;  %v1354_v14 = vsel %vm562_vm7, %v1308_v20, 0.0 }
 0x1b4   : > { %v1349_v27 = vadd.f32 %v1348_v11, %v1347_v62  ;;  %v1250_v47 = vadd.f32 %v1249_v1, %v1248_v51  ;;  %v1129_v23 = vpop.f32.mrf.mxu0  ;;  %v975_v62 = vadd.f32 %v4095_v0, %v4010_v8  ;;  %v993_v1 = vpop.f32.mrf.mxu1  ;;  %v983_v8 = vadd.f32 %v4077_v54, %v4006_v9 }
 0x1b5   : > { %v1350_v6 = vsel %vm562_vm7, %v1306_v26, 0.0  ;;  %v4191_v55 = vadd.f32 %v1129_v23, %v959_v49  ;;  %v1311_v26 = vmul.f32 %v4202_v19, %v4202_v19  ;;  %v3307_v23 = vld [vmem:[%s5610_s2 + $0x4] sm:$0xfc]   ;;  %v986_v0 = vadd.f32 %v4117_v53, %v4012_v28 }
 0x1b6   : > { %v1252_v7 = vadd.f32 %v1251_v29, %v1250_v47  ;;  %v1351_v25 = vadd.f32 %v1350_v6, %v1349_v27  ;;  %v3173_v35 = vpop.f32.mrf.mxu0  ;;  %v1938_v28 = vrot.slane %v3307_v23, 2  ;;  %v3150_v53 = vpop.f32.mrf.mxu1 }
 0x1b7   : > { %v1309_v3 = vmul.f32 %v4191_v55, %v4191_v55  ;;  %v1255_v4 = vsel %vm562_vm7, %v4191_v55, 0.0  ;;  %v4209_v49 = vadd.f32 %v3173_v35, %v970_v33  ;;  %v1259_v33 = vsel %vm562_vm7, %v4202_v19, 0.0 }
 0x1b8   : > { %v1353_v38 = vadd.f32 %v1352_v42, %v1351_v25  ;;  %v1254_v48 = vadd.f32 %v1253_v59, %v1252_v7  ;;  %v1132_v30 = vpop.f32.mrf.mxu0  ;;  %v978_v35 = vadd.f32 %v4135_v12, %v4016_v43  ;;  %v1360_v59 = vsel %vm562_vm7, %v1311_v26, 0.0  ;;  %3291 = vmatprep.subr.msk.bf16.mxu1 %vm687_vm0, %v1938_v28 }
 0x1b9   : > { %v4211_v51 = vadd.f32 %v1132_v30, %v962_v40  ;;  %v1356_v63 = vsel %vm562_vm7, %v1309_v3, 0.0  ;;  %v1312_v40 = vmul.f32 %v4209_v49, %v4209_v49  ;;  %v1261_v3 = vsel %vm562_vm7, %v4209_v49, 0.0 }
 0x1ba   : > { %v1256_v58 = vadd.f32 %v1255_v4, %v1254_v48  ;;  %v1355_v52 = vadd.f32 %v1354_v14, %v1353_v38  ;;  %v3176_v11 = vpop.f32.mrf.mxu0  ;;  %v1972_v43 = vsel %vm687_vm0, %v1938_v28, 0 }
 0x1bb   : > { %v1257_v27 = vsel %vm562_vm7, %v4211_v51, 0.0  ;;  %v1310_v47 = vmul.f32 %v4211_v51, %v4211_v51  ;;  %v4241_v38 = vadd.f32 %v3176_v11, %v983_v8  ;;  %v1362_v12 = vsel %vm562_vm7, %v1312_v40, 0.0  ;;  %3187 = vmatpush3.bf16.msra.mxu1 %v1972_v43 }
 0x1bc   : > { %v1357_v29 = vadd.f32 %v1356_v63, %v1355_v52  ;;  %v1258_v20 = vadd.f32 %v1257_v27, %v1256_v58  ;;  %v1145_v6 = vpop.f32.mrf.mxu0  ;;  %v991_v11 = vadd.f32 %v4175_v22, %v4022_v32 }
 0x1bd   : > { %v1358_v7 = vsel %vm562_vm7, %v1310_v47, 0.0  ;;  %v4234_v25 = vadd.f32 %v1145_v6, %v975_v62  ;;  %v1006_v47 = vpop.f32.mrf.mxu1  ;;  %v1315_v23 = vmul.f32 %v4241_v38, %v4241_v38 }
 0x1be   : > { %v1260_v9 = vadd.f32 %v1259_v33, %v1258_v20  ;;  %v1359_v54 = vadd.f32 %v1358_v7, %v1357_v29  ;;  %v3177_v42 = vpop.f32.mrf.mxu0  ;;  %v999_v20 = vadd.f32 %v4157_v57, %v4018_v37  ;;  %v1267_v33 = vsel %vm562_vm7, %v4241_v38, 0.0 }
 0x1bf   : > { %v1313_v48 = vmul.f32 %v4234_v25, %v4234_v25  ;;  %v1263_v62 = vsel %vm562_vm7, %v4234_v25, 0.0  ;;  %v4250_v58 = vadd.f32 %v3177_v42, %v986_v0  ;;  %v3151_v28 = vpop.f32.mrf.mxu1 }
 0x1c0   : > { %v1361_v30 = vadd.f32 %v1360_v59, %v1359_v54  ;;  %v1262_v14 = vadd.f32 %v1261_v3, %v1260_v9  ;;  %v1148_v4 = vpop.f32.mrf.mxu0  ;;  %v1002_v9 = vadd.f32 %v4197_v41, %v4024_v15  ;;  %v994_v54 = vadd.f32 %v993_v1, %v4028_v13 }
 0x1c1   : > { %v4252_v52 = vadd.f32 %v1148_v4, %v978_v35  ;;  %v1364_v8 = vsel %vm562_vm7, %v1313_v48, 0.0  ;;  %v1316_v40 = vmul.f32 %v4250_v58, %v4250_v58  ;;  %v1368_v59 = vsel %vm562_vm7, %v1315_v23, 0.0 }
 0x1c2   : > { %v1264_v26 = vadd.f32 %v1263_v62, %v1262_v14  ;;  %v1363_v63 = vadd.f32 %v1362_v12, %v1361_v30  ;;  %v3180_v27 = vpop.f32.mrf.mxu0  ;;  %v1269_v3 = vsel %vm562_vm7, %v4250_v58, 0.0  ;;  %v1007_v12 = vadd.f32 %v1006_v47, %v4034_v16 }
 0x1c3   : > { %v1265_v29 = vsel %vm562_vm7, %v4252_v52, 0.0  ;;  %v1314_v0 = vmul.f32 %v4252_v52, %v4252_v52  ;;  %v4278_v48 = vadd.f32 %v3180_v27, %v999_v20  ;;  %v1370_v15 = vsel %vm562_vm7, %v1316_v40, 0.0 }
 0x1c4   : > { %v1365_v6 = vadd.f32 %v1364_v8, %v1363_v63  ;;  %v1266_v32 = vadd.f32 %v1265_v29, %v1264_v26  ;;  %v1161_v22 = vpop.f32.mrf.mxu0  ;;  %v1009_v63 = vpop.f32.mrf.mxu1  ;;  %v1018_v40 = vadd.f32 %v3151_v28, %v4036_v5 }
 0x1c5   : > { %v1366_v7 = vsel %vm562_vm7, %v1314_v0, 0.0  ;;  %v4270_v35 = vadd.f32 %v1161_v22, %v991_v11  ;;  %v1319_v27 = vmul.f32 %v4278_v48, %v4278_v48  ;;  %v1015_v0 = vadd.f32 %v3150_v53, %v4030_v31 }
 0x1c6   : > { %v1268_v42 = vadd.f32 %v1267_v33, %v1266_v32  ;;  %v1367_v37 = vadd.f32 %v1366_v7, %v1365_v6  ;;  %v3181_v57 = vpop.f32.mrf.mxu0  ;;  %v1275_v47 = vsel %vm562_vm7, %v4278_v48, 0.0  ;;  %v1010_v7 = vadd.f32 %v1009_v63, %v4040_v34 }
 0x1c7   : > { %v1317_v30 = vmul.f32 %v4270_v35, %v4270_v35  ;;  %v1271_v13 = vsel %vm562_vm7, %v4270_v35, 0.0  ;;  %v4285_v41 = vadd.f32 %v3181_v57, %v1002_v9  ;;  %v1376_v53 = vsel %vm562_vm7, %v1319_v27, 0.0 }
 0x1c8   : > { %v1369_v14 = vadd.f32 %v1368_v59, %v1367_v37  ;;  %v1270_v4 = vadd.f32 %v1269_v3, %v1268_v42  ;;  %v1164_v43 = vpop.f32.mrf.mxu0 }
 0x1c9   : > { %v4287_v1 = vadd.f32 %v1164_v43, %v994_v54  ;;  %v1372_v23 = vsel %vm562_vm7, %v1317_v30, 0.0  ;;  %v1320_v32 = vmul.f32 %v4285_v41, %v4285_v41  ;;  %v1277_v42 = vsel %vm562_vm7, %v4285_v41, 0.0 }
 0x1ca   : > { %v1272_v62 = vadd.f32 %v1271_v13, %v1270_v4  ;;  %v1371_v11 = vadd.f32 %v1370_v15, %v1369_v14  ;;  %v3184_v26 = vpop.f32.mrf.mxu0 }
 0x1cb   : > { %v1273_v8 = vsel %vm562_vm7, %v4287_v1, 0.0  ;;  %v1318_v29 = vmul.f32 %v4287_v1, %v4287_v1  ;;  %v4310_v37 = vadd.f32 %v3184_v26, %v1015_v0  ;;  %v1378_v5 = vsel %vm562_vm7, %v1320_v32, 0.0 }
 0x1cc   : > { %v1373_v20 = vadd.f32 %v1372_v23, %v1371_v11  ;;  %v1274_v6 = vadd.f32 %v1273_v8, %v1272_v62  ;;  %v1177_v16 = vpop.f32.mrf.mxu0 }
 0x1cd   : > { %v1374_v22 = vsel %vm562_vm7, %v1318_v29, 0.0  ;;  %v4303_v33 = vadd.f32 %v1177_v16, %v1007_v12  ;;  %v1323_v15 = vmul.f32 %v4310_v37, %v4310_v37  ;;  %v1283_v63 = vsel %vm562_vm7, %v4310_v37, 0.0 }
 0x1ce   : > { %v1276_v9 = vadd.f32 %v1275_v47, %v1274_v6  ;;  %v1375_v54 = vadd.f32 %v1374_v22, %v1373_v20  ;;  %v3185_v31 = vpop.f32.mrf.mxu0 }
 0x1cf   : > { %v1321_v57 = vmul.f32 %v4303_v33, %v4303_v33  ;;  %v1279_v34 = vsel %vm562_vm7, %v4303_v33, 0.0  ;;  %v4317_v28 = vadd.f32 %v3185_v31, %v1018_v40  ;;  %v1384_v0 = vsel %vm562_vm7, %v1323_v15, 0.0 }
 0x1d0   : > { %v1377_v59 = vadd.f32 %v1376_v53, %v1375_v54  ;;  %v1278_v3 = vadd.f32 %v1277_v42, %v1276_v9  ;;  %v1180_v30 = vpop.f32.mrf.mxu0 }
 0x1d1   : > { %v4319_v14 = vadd.f32 %v1180_v30, %v1010_v7  ;;  %v1380_v13 = vsel %vm562_vm7, %v1321_v57, 0.0  ;;  %v1324_v27 = vmul.f32 %v4317_v28, %v4317_v28  ;;  %v1285_v20 = vsel %vm562_vm7, %v4317_v28, 0.0 }
 0x1d2   : > { %v1280_v4 = vadd.f32 %v1279_v34, %v1278_v3  ;;  %v1379_v43 = vadd.f32 %v1378_v5, %v1377_v59 }
 0x1d3   : > { %v1281_v12 = vsel %vm562_vm7, %v4319_v14, 0.0  ;;  %v1322_v62 = vmul.f32 %v4319_v14, %v4319_v14  ;;  %v1386_v47 = vsel %vm562_vm7, %v1324_v27, 0.0 }
 0x1d4   : > { %v1381_v11 = vadd.f32 %v1380_v13, %v1379_v43  ;;  %v1282_v26 = vadd.f32 %v1281_v12, %v1280_v4 }
 0x1d5   : > { %v1382_v23 = vsel %vm562_vm7, %v1322_v62, 0.0 }
 0x1d6   : > { %v1284_v8 = vadd.f32 %v1283_v63, %v1282_v26  ;;  %v1383_v29 = vadd.f32 %v1382_v23, %v1381_v11 }
 0x1d8   : > { %v1286_v6 = vadd.f32 %v1285_v20, %v1284_v8  ;;  %v1385_v16 = vadd.f32 %v1384_v0, %v1383_v29 }
 0x1da   : > { %v1287_v32 = vrot.slane %v1286_v6, 4  ;;  %v1387_v22 = vadd.f32 %v1386_v47, %v1385_v16 }
 0x1dc   : > { %v1288_v40 = vadd.f32 %v1287_v32, %v1286_v6  ;;  %v1388_v7 = vrot.slane %v1387_v22, 4 }
 0x1de   : > { %v1289_v9 = vrot.slane %v1288_v40, 2  ;;  %v1389_v54 = vadd.f32 %v1388_v7, %v1387_v22 }
 0x1e0   : > { %v1290_v31 = vadd.f32 %v1289_v9, %v1288_v40  ;;  %v1390_v53 = vrot.slane %v1389_v54, 2 }
 0x1e2   : > { %v1291_v42 = vrot.slane %v1290_v31, 1  ;;  %v1391_v57 = vadd.f32 %v1390_v53, %v1389_v54  ;;  %v3308_v53 = vld [vmem:[%s5610_s2] sm:$0x3f]  }
 0x1e3   : > { %3292 = vmatprep.subr.msk.bf16.mxu0 %vm687_vm0, %v3308_v53 }
 0x1e4   : > { %v1292_v59 = vadd.f32 %v1291_v42, %v1290_v31  ;;  %v1392_v3 = vrot.slane %v1391_v57, 1  ;;  %v2141_v42 = vsel %vm687_vm0, %v3308_v53, 0 }
 0x1e5   : > { %3221 = vmatpush3.bf16.msra.mxu0 %v2141_v42 }
 0x1e6   : > { %v1393_v30 = vadd.f32 %v1392_v3, %v1391_v57  ;;  %v4337_v5 = vmul.f32 0.00390625, %v1292_v59  ;;  %v5629_v59 = vld [vmem:[#allocation4_spill] sm:$0xff] }
 0x1e8   : > { %v1395_v34 = vmul.f32 0.00390625, %v1393_v30  ;;  %v1396_v4 = vmul.f32 %v4337_v5, %v4337_v5  ;;  %v1408_v13 = vsub.f32 %v4131_v18, %v4337_v5  ;;  %v1411_v62 = vsub.f32 %v4151_v60, %v4337_v5 }
 0x1e9   : > { %v1412_v11 = vsub.f32 %v4171_v24, %v4337_v5  ;;  %v1413_v26 = vsub.f32 %v4162_v10, %v4337_v5  ;;  %v1414_v63 = vsub.f32 %v4169_v2, %v4337_v5  ;;  %v1415_v27 = vsub.f32 %v4191_v55, %v4337_v5 }
 0x1ea   : > { %v1397_v15 = vsub.f32 %v1395_v34, %v1396_v4  ;;  %v1416_v23 = vsub.f32 %v4211_v51, %v4337_v5  ;;  %v1417_v8 = vsub.f32 %v4202_v19, %v4337_v5  ;;  %v1418_v0 = vsub.f32 %v4209_v49, %v4337_v5 }
 0x1eb   : > { %v1419_v20 = vsub.f32 %v4234_v25, %v4337_v5  ;;  %v1420_v6 = vsub.f32 %v4252_v52, %v4337_v5  ;;  %v1421_v16 = vsub.f32 %v4241_v38, %v4337_v5  ;;  %v1422_v47 = vsub.f32 %v4250_v58, %v4337_v5 }
 0x1ec   : > { %v1398_v12 = vmax.f32 %v1397_v15, 0.0  ;;  %v1425_v40 = vsub.f32 %v4278_v48, %v4337_v5  ;;  %v1426_v7 = vsub.f32 %v4285_v41, %v4337_v5  ;;  %v1399_v57 = vsub.f32 %v4044_v17, %v4337_v5 }
 0x1ed   : > { %v1400_v3 = vsub.f32 %v5629_v59, %v4337_v5  ;;  %v1401_v30 = vsub.f32 %v4048_v61, %v4337_v5  ;;  %v1402_v34 = vsub.f32 %v4052_v36, %v4337_v5  ;;  %v1403_v4 = vsub.f32 %v4073_v44, %v4337_v5 }
 0x1ee   : > { %v1431_v29 = vadd.f32 1e-05, %v1398_v12  ;;  %v1404_v15 = vsub.f32 %v4091_v39, %v4337_v5  ;;  %v1405_v12 = vsub.f32 %v4082_v21, %v4337_v5  ;;  %v1406_v17 = vsub.f32 %v4089_v50, %v4337_v5 }
 0x1ef   : > { %v1407_v61 = vsub.f32 %v4111_v46, %v4337_v5  ;;  %v1409_v36 = vsub.f32 %v4122_v45, %v4337_v5  ;;  %v1410_v44 = vsub.f32 %v4129_v56, %v4337_v5  ;;  %v4423_v45 = vld [vmem:[%s5610_s2 + $0xc] sm:$0x3f]   ;;  %v5631_v48 = vsub.f32 %v4270_v35, %v4337_v5 }
 0x1f0   : > { %3310 = vrsqrt.f32 %v1431_v29  ;;  %3293 = vmatprep.subr.msk.bf16.mxu1 %vm687_vm0, %v4423_v45 }
 0x1fd   : > { %v4402_v29 = vpop.eup %3310 }
 0x1fe   : > { %v1435_v53 = vmul.f32 %v4402_v29, %v1401_v30  ;;  %v1436_v39 = vmul.f32 %v4402_v29, %v1402_v34  ;;  %v1433_v21 = vmul.f32 %v4402_v29, %v1399_v57  ;;  %v1434_v42 = vmul.f32 %v4402_v29, %v1400_v3 }
 0x1ff   : > { %v1439_v59 = vmul.f32 %v4402_v29, %v1405_v12  ;;  %v1440_v50 = vmul.f32 %v4402_v29, %v1406_v17  ;;  %v1437_v46 = vmul.f32 %v4402_v29, %v1403_v4  ;;  %v1438_v43 = vmul.f32 %v4402_v29, %v1404_v15 }
 0x200   : > { %v1467_v56 = vmax.f32 %v1435_v53, 0.0  ;;  %v1468_v30 = vmax.f32 %v1436_v39, 0.0  ;;  %v1465_v34 = vmax.f32 %v1433_v21, 0.0  ;;  %v1466_v9 = vmax.f32 %v1434_v42, 0.0 }
 0x201   : > { %v1471_v57 = vmax.f32 %v1439_v59, 0.0  ;;  %v1472_v31 = vmax.f32 %v1440_v50, 0.0  ;;  %v1469_v3 = vmax.f32 %v1437_v46, 0.0  ;;  %v1470_v54 = vmax.f32 %v1438_v43, 0.0 }
 0x202   : > { %v1498_v12 = vpack.c.bf16 %v1468_v30, %v1467_v56  ;;  %v1497_v4 = vpack.c.bf16 %v1466_v9, %v1465_v34  ;;  %v1443_v15 = vmul.f32 %v4402_v29, %v1409_v36  ;;  %v1444_v17 = vmul.f32 %v4402_v29, %v1410_v44 }
 0x203   : > { %v1500_v22 = vpack.c.bf16 %v1472_v31, %v1471_v57  ;;  %v1499_v32 = vpack.c.bf16 %v1470_v54, %v1469_v3  ;;  %v1441_v53 = vmul.f32 %v4402_v29, %v1407_v61  ;;  %v1442_v39 = vmul.f32 %v4402_v29, %v1408_v13 }
 0x204   : > { %1769 = vrot.lane.b32.xlu1 %v1498_v12, %s3354_s22  ;;  %1771 = vrot.lane.b32.xlu0 %v1497_v4, %s3354_s22  ;;  %v4436_v43 = vshll.u32 %v1498_v12, 16  ;;  %v4438_v9 = vshll.u32 %v1497_v4, 16  ;;  %v4440_v36 = vshrl.u32 %v1498_v12, 16  ;;  %v4442_v44 = vshrl.u32 %v1497_v4, 16 }
 0x205   : > { %v4444_v54 = vshll.u32 %v1500_v22, 16  ;;  %v4446_v31 = vshll.u32 %v1499_v32, 16  ;;  %v1475_v61 = vmax.f32 %v1443_v15, 0.0  ;;  %v1476_v21 = vmax.f32 %v1444_v17, 0.0 }
 0x206   : > { %v1673_v18 = vrot.slane %v4436_v43, 1  ;;  %v1675_v13 = vrot.slane %v4438_v9, 1  ;;  %v1473_v50 = vmax.f32 %v1441_v53, 0.0  ;;  %v1474_v46 = vmax.f32 %v1442_v39, 0.0 }
 0x207   : > { %v1679_v42 = vrot.slane %v4444_v54, 1  ;;  %v1677_v59 = vrot.slane %v4446_v31, 1  ;;  %v1502_v34 = vpack.c.bf16 %v1476_v21, %v1475_v61  ;;  %v1447_v57 = vmul.f32 %v4402_v29, %v1413_v26 }
 0x208   : > { %v1674_v56 = vor.u32 %v1673_v18, %v4440_v36  ;;  %v1676_v30 = vor.u32 %v1675_v13, %v4442_v44  ;;  %v4458_v3 = vshrl.u32 %v1500_v22, 16  ;;  %v1501_v12 = vpack.c.bf16 %v1474_v46, %v1473_v50 }
 0x209   : > { %v1448_v4 = vmul.f32 %v4402_v29, %v1414_v63  ;;  %v4470_v39 = vshrl.u32 %v1499_v32, 16  ;;  %v4472_v10 = vshll.u32 %v1502_v34, 16  ;;  %v1479_v18 = vmax.f32 %v1447_v57, 0.0 }
 0x20a   : > { %v1737_v17 = vsel %vm3431_vm3, %v1674_v56, %v4436_v43  ;;  %v1738_v53 = vsel %vm3431_vm3, %v1676_v30, %v4438_v9  ;;  %v1680_v2 = vor.u32 %v1679_v42, %v4458_v3  ;;  %v4477_v26 = vshll.u32 %v1501_v12, 16 }
 0x20b   : > { %1817 = vrot.lane.b32.xlu1 %v1737_v17, %s3355_s23  ;;  %1819 = vrot.lane.b32.xlu0 %v1738_v53, %s3355_s23  ;;  %v1678_v63 = vor.u32 %v1677_v59, %v4470_v39  ;;  %v1480_v13 = vmax.f32 %v1448_v4, 0.0  ;;  %v1445_v61 = vmul.f32 %v4402_v29, %v1411_v62  ;;  %v1446_v21 = vmul.f32 %v4402_v29, %v1412_v11 }
 0x20c   : > { %v1451_v42 = vmul.f32 %v4402_v29, %v1417_v8  ;;  %v1452_v59 = vmul.f32 %v4402_v29, %v1418_v0  ;;  %v1683_v50 = vrot.slane %v4472_v10, 1  ;;  %v1449_v24 = vmul.f32 %v4402_v29, %v1415_v27 }
 0x20d   : > { %v4497_v60 = vpack.c.bf16 %v1480_v13, %v1479_v18  ;;  %v1477_v62 = vmax.f32 %v1445_v61, 0.0  ;;  %v1681_v19 = vrot.slane %v4477_v26, 1  ;;  %v1478_v11 = vmax.f32 %v1446_v21, 0.0 }
 0x20e   : > { %v1483_v49 = vmax.f32 %v1451_v42, 0.0  ;;  %v1484_v8 = vmax.f32 %v1452_v59, 0.0  ;;  %v1740_v0 = vsel %vm3431_vm3, %v1680_v2, %v4444_v54  ;;  %v1739_v46 = vsel %vm3431_vm3, %v1678_v63, %v4446_v31 }
 0x20f   : > { %1775 = vrot.lane.b32.xlu1 %v1500_v22, %s3354_s22  ;;  %1773 = vrot.lane.b32.xlu0 %v1499_v32, %s3354_s22  ;;  %v4512_v55 = vshrl.u32 %v1502_v34, 16  ;;  %v1450_v27 = vmul.f32 %v4402_v29, %v1416_v23  ;;  %v4518_v32 = vshrl.u32 %v1501_v12, 16  ;;  %v1503_v22 = vpack.c.bf16 %v1478_v11, %v1477_v62 }
 0x210   : > { %v4520_v56 = vpack.c.bf16 %v1484_v8, %v1483_v49  ;;  %v1481_v30 = vmax.f32 %v1449_v24, 0.0  ;;  %v4523_v57 = vshll.u32 %v4497_v60, 16  ;;  %v1455_v17 = vmul.f32 %v4402_v29, %v1421_v16 }
 0x211   : > { %v1482_v4 = vmax.f32 %v1450_v27, 0.0  ;;  %v1456_v51 = vmul.f32 %v4402_v29, %v1422_v47  ;;  %v1684_v23 = vor.u32 %v1683_v50, %v4512_v55  ;;  %v1682_v53 = vor.u32 %v1681_v19, %v4518_v32 }
 0x212   : > { %v4537_v2 = vshll.u32 %v1503_v22, 16  ;;  %v1487_v38 = vmax.f32 %v1455_v17, 0.0  ;;  %v1453_v58 = vmul.f32 %v4402_v29, %v1419_v20  ;;  %v1454_v16 = vmul.f32 %v4402_v29, %v1420_v6 }
 0x213   : > { %1823 = vrot.lane.b32.xlu1 %v1740_v0, %s3355_s23  ;;  %1821 = vrot.lane.b32.xlu0 %v1739_v46, %s3355_s23  ;;  %v4539_v63 = vpack.c.bf16 %v1482_v4, %v1481_v30  ;;  %v1488_v18 = vmax.f32 %v1456_v51, 0.0  ;;  %v1687_v47 = vrot.slane %v4523_v57, 1  ;;  %v4551_v13 = vshll.u32 %v4520_v56, 16 }
 0x214   : > { %v1742_v25 = vsel %vm3431_vm3, %v1684_v23, %v4472_v10  ;;  %v1485_v52 = vmax.f32 %v1453_v58, 0.0  ;;  %v1486_v6 = vmax.f32 %v1454_v16, 0.0  ;;  %v1741_v21 = vsel %vm3431_vm3, %v1682_v53, %v4477_v26 }
 0x215   : > { %v4553_v61 = vpack.c.bf16 %v1488_v18, %v1487_v38  ;;  %v4561_v20 = vshll.u32 %v4539_v63, 16  ;;  %v4567_v42 = vshrl.u32 %v4497_v60, 16  ;;  %v4574_v59 = vshrl.u32 %v1503_v22, 16 }
 0x216   : > { %v4577_v50 = vshrl.u32 %v4520_v56, 16  ;;  %v4579_v62 = vpack.c.bf16 %v1486_v6, %v1485_v52  ;;  %v1460_v24 = vmul.f32 %v4402_v29, %v1426_v7  ;;  %v1691_v11 = vrot.slane %v4551_v13, 1 }
 0x217   : > { %1779 = vrot.lane.b32.xlu1 %v1502_v34, %s3354_s22  ;;  %1777 = vrot.lane.b32.xlu0 %v1501_v12, %s3354_s22  ;;  %v1685_v34 = vrot.slane %v4537_v2, 1  ;;  %v1459_v12 = vmul.f32 %v4402_v29, %v1425_v40  ;;  %v1688_v19 = vor.u32 %v1687_v47, %v4567_v42  ;;  %v1457_v40 = vmul.f32 %v4402_v29, %v5631_v48 }
 0x218   : > { %v4594_v8 = vshrl.u32 %v4539_v63, 16  ;;  %v1689_v41 = vrot.slane %v4561_v20, 1  ;;  %v1492_v7 = vmax.f32 %v1460_v24, 0.0  ;;  %v5632_v0 = vsub.f32 %v4287_v1, %v4337_v5 }
 0x219   : > { %v1491_v49 = vmax.f32 %v1459_v12, 0.0  ;;  %v1686_v27 = vor.u32 %v1685_v34, %v4574_v59  ;;  %v4603_v35 = vshll.u32 %v4553_v61, 16  ;;  %v1489_v30 = vmax.f32 %v1457_v40, 0.0 }
 0x21a   : > { %v1458_v46 = vmul.f32 %v4402_v29, %v5632_v0  ;;  %v5633_v4 = vsub.f32 %v4310_v37, %v4337_v5  ;;  %v4610_v51 = vshll.u32 %v4579_v62, 16  ;;  %v5634_v1 = vsub.f32 %v4317_v28, %v4337_v5 }
 0x21b   : > { %1827 = vrot.lane.b32.xlu1 %v1742_v25, %s3355_s23  ;;  %1825 = vrot.lane.b32.xlu0 %v1741_v21, %s3355_s23  ;;  %v4612_v23 = vpack.c.bf16 %v1492_v7, %v1491_v49  ;;  %v5635_v58 = vsub.f32 %v4303_v33, %v4337_v5  ;;  %v5636_v37 = vsub.f32 %v4319_v14, %v4337_v5  ;;  %v1577_v34 = vrot.slane %v4440_v36, 7 }
 0x21c   : > { %v1463_v17 = vmul.f32 %v4402_v29, %v5633_v4  ;;  %v1490_v53 = vmax.f32 %v1458_v46, 0.0  ;;  %v1464_v38 = vmul.f32 %v4402_v29, %v5634_v1  ;;  %v1692_v28 = vor.u32 %v1691_v11, %v4577_v50 }
 0x21d   : > { %v1461_v16 = vmul.f32 %v4402_v29, %v5635_v58  ;;  %v1462_v47 = vmul.f32 %v4402_v29, %v5636_v37  ;;  %v1690_v25 = vor.u32 %v1689_v41, %v4594_v8  ;;  %v1744_v14 = vsel %vm3431_vm3, %v1688_v19, %v4523_v57 }
 0x21e   : > { %v1495_v18 = vmax.f32 %v1463_v17, 0.0  ;;  %v4631_v52 = vpack.c.bf16 %v1490_v53, %v1489_v30  ;;  %v1496_v6 = vmax.f32 %v1464_v38, 0.0  ;;  %v1743_v5 = vsel %vm3431_vm3, %v1686_v27, %v4537_v2 }
 0x21f   : > { %1783 = vrot.lane.b32.xlu1 %v4497_v60, %s3354_s22  ;;  %1781 = vrot.lane.b32.xlu0 %v1503_v22, %s3354_s22  ;;  %v1493_v33 = vmax.f32 %v1461_v16, 0.0  ;;  %v1494_v21 = vmax.f32 %v1462_v47, 0.0  ;;  %v1695_v29 = vrot.slane %v4603_v35, 1  ;;  %v1693_v60 = vrot.slane %v4610_v51, 1 }
 0x220   : > { %v4642_v22 = vpack.c.bf16 %v1496_v6, %v1495_v18  ;;  %v4647_v24 = vor.u32 %v4436_v43, %v1577_v34  ;;  %v1581_v11 = vrot.slane %v4442_v44, 7  ;;  %v4653_v19 = vshrl.u32 %v4553_v61, 16 }
 0x221   : > { %v4644_v12 = vpack.c.bf16 %v1494_v21, %v1493_v33  ;;  %v4656_v49 = vshrl.u32 %v4579_v62, 16  ;;  %v1589_v48 = vrot.slane %v4458_v3, 7  ;;  %v1746_v40 = vsel %vm3431_vm3, %v1692_v28, %v4551_v13 }
 0x222   : > { %v1745_v43 = vsel %vm3431_vm3, %v1690_v25, %v4561_v20  ;;  %v1696_v41 = vor.u32 %v1695_v29, %v4653_v19  ;;  %v1657_v46 = vsel %vm3560_vm6, %v4440_v36, %v4647_v24  ;;  %v4672_v27 = vor.u32 %v4438_v9, %v1581_v11 }
 0x223   : > { %1831 = vrot.lane.b32.xlu1 %v1744_v14, %s3355_s23  ;;  %1829 = vrot.lane.b32.xlu0 %v1743_v5, %s3355_s23  ;;  %v1694_v7 = vor.u32 %v1693_v60, %v4656_v49  ;;  %v4675_v30 = vshrl.u32 %v4612_v23, 16  ;;  %v4678_v4 = vshll.u32 %v4612_v23, 16  ;;  %v4681_v17 = vor.u32 %v4444_v54, %v1589_v48 }
 0x224   : > { %v1585_v53 = vrot.slane %v4470_v39, 7  ;;  %v4689_v9 = vshrl.u32 %v4631_v52, 16  ;;  %v1658_v1 = vsel %vm3560_vm6, %v4442_v44, %v4672_v27  ;;  %v1597_v38 = vrot.slane %v4512_v55, 7 }
 0x225   : > { %v1593_v54 = vrot.slane %v4518_v32, 7  ;;  %v1626_v18 = vshll.u32 %v4631_v52, 16  ;;  %v4699_v58 = vshrl.u32 %v4642_v22, 16  ;;  %v1605_v47 = vrot.slane %v4567_v42, 7 }
 0x226   : > { %v4709_v16 = vor.u32 %v4472_v10, %v1597_v38  ;;  %v1601_v28 = vrot.slane %v4574_v59, 7  ;;  %v4717_v25 = vshrl.u32 %v4644_v12, 16  ;;  %v1638_v6 = vshll.u32 %v4642_v22, 16 }
 0x227   : > { %1787 = vrot.lane.b32.xlu1 %v4520_v56, %s3354_s22  ;;  %1785 = vrot.lane.b32.xlu0 %v4539_v63, %s3354_s22  ;;  %v1660_v56 = vsel %vm3560_vm6, %v4458_v3, %v4681_v17  ;;  %v4706_v63 = vor.u32 %v4446_v31, %v1585_v53  ;;  %v4712_v37 = vor.u32 %v4477_v26, %v1593_v54  ;;  %v1613_v10 = vrot.slane %v4577_v50, 7 }
 0x228   : > { %v1662_v26 = vsel %vm3560_vm6, %v4512_v55, %v4709_v16  ;;  %v4736_v21 = vor.u32 %v4523_v57, %v1605_v47  ;;  %v1609_v34 = vrot.slane %v4594_v8, 7  ;;  %v4740_v14 = vor.u32 %v4537_v2, %v1601_v28 }
 0x229   : > { %v1659_v31 = vsel %vm3560_vm6, %v4470_v39, %v4706_v63  ;;  %v1661_v33 = vsel %vm3560_vm6, %v4518_v32, %v4712_v37  ;;  %v4743_v5 = vor.u32 %v4551_v13, %v1613_v10  ;;  %v1621_v29 = vrot.slane %v4653_v19, 7 }
 0x22a   : > { %v1617_v60 = vrot.slane %v4656_v49, 7  ;;  %v1664_v11 = vsel %vm3560_vm6, %v4567_v42, %v4736_v21  ;;  %v4752_v57 = vor.u32 %v4561_v20, %v1609_v34  ;;  %v1629_v48 = vrot.slane %v4675_v30, 7 }
 0x22b   : > { %1835 = vrot.lane.b32.xlu1 %v1746_v40, %s3355_s23  ;;  %1833 = vrot.lane.b32.xlu0 %v1745_v43, %s3355_s23  ;;  %v1625_v2 = vrot.slane %v4689_v9, 7  ;;  %v1663_v13 = vsel %vm3560_vm6, %v4574_v59, %v4740_v14  ;;  %v1666_v40 = vsel %vm3560_vm6, %v4577_v50, %v4743_v5  ;;  %v4765_v43 = vor.u32 %v4603_v35, %v1621_v29 }
 0x22c   : > { %v4768_v20 = vor.u32 %v4610_v51, %v1617_v60  ;;  %v1665_v53 = vsel %vm3560_vm6, %v4594_v8, %v4752_v57  ;;  %v4779_v38 = vor.u32 %v4678_v4, %v1629_v48  ;;  %v1637_v47 = vrot.slane %v4699_v58, 7 }
 0x22d   : > { %v4781_v54 = vor.u32 %v1626_v18, %v1625_v2  ;;  %v1634_v28 = vshll.u32 %v4644_v12, 16  ;;  %v1633_v10 = vrot.slane %v4717_v25, 7  ;;  %v1748_v34 = vsel %vm3431_vm3, %v1696_v41, %v4603_v35 }
 0x22e   : > { %v1670_v29 = vsel %vm3560_vm6, %v4675_v30, %v4779_v38  ;;  %v4805_v48 = vor.u32 %v1638_v6, %v1637_v47  ;;  %v1747_v2 = vsel %vm3431_vm3, %v1694_v7, %v4610_v51  ;;  %v5638_v8 = vsel %vm3560_vm6, %v4653_v19, %v4765_v43 }
 0x22f   : > { %1791 = vrot.lane.b32.xlu1 %v4553_v61, %s3354_s22  ;;  %1789 = vrot.lane.b32.xlu0 %v4579_v62, %s3354_s22  ;;  %v1669_v60 = vsel %vm3560_vm6, %v4689_v9, %v4781_v54  ;;  %v1699_v62 = vrot.slane %v4678_v4, 1  ;;  %v1697_v61 = vrot.slane %v1626_v18, 1  ;;  %v4811_v35 = vor.u32 %v1634_v28, %v1633_v10 }
 0x230   : > { %v1701_v41 = vrot.slane %v1634_v28, 1 }
 0x231   : > { %v1671_v47 = vsel %vm3560_vm6, %v4717_v25, %v4811_v35  ;;  %v1700_v51 = vor.u32 %v1699_v62, %v4675_v30  ;;  %v1698_v7 = vor.u32 %v1697_v61, %v4689_v9  ;;  %v5640_v9 = vsel %vm3560_vm6, %v4699_v58, %v4805_v48 }
 0x233   : > { %1839 = vrot.lane.b32.xlu1 %v1748_v34, %s3355_s23  ;;  %1837 = vrot.lane.b32.xlu0 %v1747_v2, %s3355_s23  ;;  %v1750_v10 = vsel %vm3431_vm3, %v1700_v51, %v4678_v4  ;;  %v1749_v34 = vsel %vm3431_vm3, %v1698_v7, %v1626_v18  ;;  %v1703_v2 = vrot.slane %v1638_v6, 1  ;;  %v2312_v51 = vsel %vm687_vm0, %v4423_v45, 0 }
 0x235   : > { %v1704_v61 = vor.u32 %v1703_v2, %v4699_v58 }
 0x237   : > { %1795 = vrot.lane.b32.xlu1 %v4612_v23, %s3354_s22  ;;  %1793 = vrot.lane.b32.xlu0 %v4631_v52, %s3354_s22  ;;  %v1702_v23 = vor.u32 %v1701_v41, %v4717_v25  ;;  %v1752_v52 = vsel %vm3431_vm3, %v1704_v61, %v1638_v6 }
 0x239   : > { %v1751_v4 = vsel %vm3431_vm3, %v1702_v23, %v1634_v28 }
 0x23b   : > { %1843 = vrot.lane.b32.xlu1 %v1750_v10, %s3355_s23  ;;  %1841 = vrot.lane.b32.xlu0 %v1749_v34, %s3355_s23 }
 0x23f   : > { %1799 = vrot.lane.b32.xlu1 %v4642_v22, %s3354_s22  ;;  %1797 = vrot.lane.b32.xlu0 %v4644_v12, %s3354_s22 }
 0x243   : > { %1847 = vrot.lane.b32.xlu1 %v1752_v52, %s3355_s23  ;;  %1845 = vrot.lane.b32.xlu0 %v1751_v4, %s3355_s23 }
 0x276   : > { %v1770_v18 = vpop.permute.xlu1 %1769  ;;  %v1772_v62 = vpop.permute.xlu0 %1771 }
 0x277   : > { %v1851_v22 = vsel %vm562_vm7, %v1657_v46, %v1770_v18  ;;  %v1854_v15 = vsel %vm562_vm7, %v1658_v1, %v1772_v62 }
 0x27d   : > { %v1818_v12 = vpop.permute.xlu1 %1817  ;;  %v1820_v6 = vpop.permute.xlu0 %1819 }
 0x27e   : > { %v4861_v28 = vsel %vm611_vm8, %v1851_v22, %v1818_v12  ;;  %v1900_v41 = vsel %vm611_vm8, %v1854_v15, %v1820_v6 }
 0x27f   : > { %3188 = vmatprep.mubr.msk.bf16.mxu1 %vm654_vm9, %v1900_v41  ;;  %3222 = vmatprep.mubr.msk.bf16.mxu0 %vm654_vm9, %v4861_v28 }
 0x280   : > { %3189 = vmatmul.mubr.msk.bf16.vlgmr.msra.gmra.mxu1 %vm654_vm9, %v4861_v28  ;;  %3223 = vmatmul.mubr.msk.bf16.vlgmr.msra.gmra.mxu0 %vm654_vm9, %v1900_v41 }
 0x281   : > { %3255 = vmatpush3.bf16.msra.mxu1 %v2312_v51  ;;  %v1776_v36 = vpop.permute.xlu1 %1775  ;;  %v1774_v44 = vpop.permute.xlu0 %1773  ;;  %3226 = vmatprep.mubr.msk.bf16.mxu0 %vm654_vm9, %v4861_v28 }
 0x282   : > { %v1860_v45 = vsel %vm562_vm7, %v1660_v56, %v1776_v36  ;;  %v1857_v24 = vsel %vm562_vm7, %v1659_v31, %v1774_v44 }
 0x285   : > { %v1824_v46 = vpop.permute.xlu1 %1823  ;;  %v1822_v27 = vpop.permute.xlu0 %1821 }
 0x286   : > { %v4887_v1 = vsel %vm611_vm8, %v1860_v45, %v1824_v46  ;;  %v4890_v7 = vsel %vm611_vm8, %v1857_v24, %v1822_v27 }
 0x287   : > { %3192 = vmatprep.mubr.msk.bf16.mxu1 %vm654_vm9, %v4890_v7 }
 0x288   : > { %3193 = vmatmul.mubr.msk.bf16.gmra.mxu1 %vm654_vm9, %v4887_v1  ;;  %3227 = vmatmul.mubr.msk.bf16.gmra.mxu0 %vm654_vm9, %v4890_v7 }
 0x289   : > { %v1780_v3 = vpop.permute.xlu1 %1779  ;;  %v1778_v39 = vpop.permute.xlu0 %1777  ;;  %3230 = vmatprep.mubr.msk.bf16.mxu0 %vm654_vm9, %v4887_v1 }
 0x28a   : > { %v1866_v17 = vsel %vm562_vm7, %v1662_v26, %v1780_v3  ;;  %v1863_v56 = vsel %vm562_vm7, %v1661_v33, %v1778_v39 }
 0x28d   : > { %v1828_v63 = vpop.permute.xlu1 %1827  ;;  %v1826_v31 = vpop.permute.xlu0 %1825 }
 0x28e   : > { %v4913_v10 = vsel %vm611_vm8, %v1866_v17, %v1828_v63  ;;  %v4916_v34 = vsel %vm611_vm8, %v1863_v56, %v1826_v31 }
 0x28f   : > { %3196 = vmatprep.mubr.msk.bf16.mxu1 %vm654_vm9, %v4916_v34 }
 0x290   : > { %3197 = vmatmul.mubr.msk.bf16.gmra.mxu1 %vm654_vm9, %v4913_v10  ;;  %3231 = vmatmul.mubr.msk.bf16.gmra.mxu0 %vm654_vm9, %v4916_v34 }
 0x291   : > { %v1784_v55 = vpop.permute.xlu1 %1783  ;;  %v1782_v32 = vpop.permute.xlu0 %1781  ;;  %3234 = vmatprep.mubr.msk.bf16.mxu0 %vm654_vm9, %v4913_v10 }
 0x292   : > { %v1872_v16 = vsel %vm562_vm7, %v1664_v11, %v1784_v55  ;;  %v1869_v37 = vsel %vm562_vm7, %v1663_v13, %v1782_v32 }
 0x295   : > { %v1832_v26 = vpop.permute.xlu1 %1831  ;;  %v1830_v33 = vpop.permute.xlu0 %1829 }
 0x296   : > { %v1912_v2 = vsel %vm611_vm8, %v1872_v16, %v1832_v26  ;;  %v1910_v61 = vsel %vm611_vm8, %v1869_v37, %v1830_v33 }
 0x297   : > { %3200 = vmatprep.mubr.msk.bf16.mxu1 %vm654_vm9, %v1910_v61 }
 0x298   : > { %3201 = vmatmul.mubr.msk.bf16.gmra.mxu1 %vm654_vm9, %v1912_v2  ;;  %3235 = vmatmul.mubr.msk.bf16.gmra.mxu0 %vm654_vm9, %v1910_v61 }
 0x299   : > { %v1788_v42 = vpop.permute.xlu1 %1787  ;;  %v1786_v21 = vpop.permute.xlu0 %1785  ;;  %3238 = vmatprep.mubr.msk.bf16.mxu0 %vm654_vm9, %v1912_v2 }
 0x29a   : > { %v1878_v59 = vsel %vm562_vm7, %v1666_v40, %v1788_v42  ;;  %v1875_v14 = vsel %vm562_vm7, %v1665_v53, %v1786_v21  ;;  %v5639_v40 = vsel %vm3560_vm6, %v4656_v49, %v4768_v20 }
 0x29d   : > { %v1836_v11 = vpop.permute.xlu1 %1835  ;;  %v1834_v13 = vpop.permute.xlu0 %1833 }
 0x29e   : > { %v1916_v23 = vsel %vm611_vm8, %v1878_v59, %v1836_v11  ;;  %v1914_v52 = vsel %vm611_vm8, %v1875_v14, %v1834_v13 }
 0x29f   : > { %3204 = vmatprep.mubr.msk.bf16.mxu1 %vm654_vm9, %v1914_v52 }
 0x2a0   : > { %3205 = vmatmul.mubr.msk.bf16.gmra.mxu1 %vm654_vm9, %v1916_v23  ;;  %3239 = vmatmul.mubr.msk.bf16.gmra.mxu0 %vm654_vm9, %v1914_v52 }
 0x2a1   : > { %v1792_v50 = vpop.permute.xlu1 %1791  ;;  %v1790_v5 = vpop.permute.xlu0 %1789  ;;  %3242 = vmatprep.mubr.msk.bf16.mxu0 %vm654_vm9, %v1916_v23 }
 0x2a2   : > { %v1884_v57 = vsel %vm562_vm7, %v5638_v8, %v1792_v50  ;;  %v1881_v53 = vsel %vm562_vm7, %v5639_v40, %v1790_v5 }
 0x2a5   : > { %v1840_v4 = vpop.permute.xlu1 %1839  ;;  %v1838_v18 = vpop.permute.xlu0 %1837 }
 0x2a6   : > { %v1920_v62 = vsel %vm611_vm8, %v1884_v57, %v1840_v4  ;;  %v1918_v22 = vsel %vm611_vm8, %v1881_v53, %v1838_v18 }
 0x2a7   : > { %3208 = vmatprep.mubr.msk.bf16.mxu1 %vm654_vm9, %v1918_v22 }
 0x2a8   : > { %3209 = vmatmul.mubr.msk.bf16.gmra.mxu1 %vm654_vm9, %v1920_v62  ;;  %3243 = vmatmul.mubr.msk.bf16.gmra.mxu0 %vm654_vm9, %v1918_v22 }
 0x2a9   : > { %v1796_v19 = vpop.permute.xlu1 %1795  ;;  %v1794_v43 = vpop.permute.xlu0 %1793  ;;  %3246 = vmatprep.mubr.msk.bf16.mxu0 %vm654_vm9, %v1920_v62 }
 0x2aa   : > { %v1890_v49 = vsel %vm562_vm7, %v1670_v29, %v1796_v19  ;;  %v1887_v20 = vsel %vm562_vm7, %v1669_v60, %v1794_v43 }
 0x2ad   : > { %v1844_v15 = vpop.permute.xlu1 %1843  ;;  %v1842_v12 = vpop.permute.xlu0 %1841 }
 0x2ae   : > { %v1924_v6 = vsel %vm611_vm8, %v1890_v49, %v1844_v15  ;;  %v1922_v41 = vsel %vm611_vm8, %v1887_v20, %v1842_v12 }
 0x2af   : > { %3212 = vmatprep.mubr.msk.bf16.mxu1 %vm654_vm9, %v1922_v41 }
 0x2b0   : > { %3213 = vmatmul.mubr.msk.bf16.gmra.mxu1 %vm654_vm9, %v1924_v6  ;;  %3247 = vmatmul.mubr.msk.bf16.gmra.mxu0 %vm654_vm9, %v1922_v41 }
 0x2b1   : > { %v1800_v30 = vpop.permute.xlu1 %1799  ;;  %v1798_v38 = vpop.permute.xlu0 %1797  ;;  %3250 = vmatprep.mubr.msk.bf16.mxu0 %vm654_vm9, %v1924_v6 }
 0x2b2   : > { %v1896_v54 = vsel %vm562_vm7, %v5640_v9, %v1800_v30  ;;  %v1893_v29 = vsel %vm562_vm7, %v1671_v47, %v1798_v38 }
 0x2b5   : > { %v1848_v60 = vpop.permute.xlu1 %1847  ;;  %v1846_v51 = vpop.permute.xlu0 %1845 }
 0x2b6   : > { %v1928_v36 = vsel %vm611_vm8, %v1896_v54, %v1848_v60  ;;  %v1926_v44 = vsel %vm611_vm8, %v1893_v29, %v1846_v51 }
 0x2b7   : > { %3216 = vmatprep.mubr.msk.bf16.mxu1 %vm654_vm9, %v1926_v44 }
 0x2b8   : > { %3217 = vmatmul.mubr.msk.bf16.gmra.mxu1 %vm654_vm9, %v1928_v36  ;;  %3251 = vmatmul.mubr.msk.bf16.gmra.mxu0 %vm654_vm9, %v1926_v44 }
 0x2b9   : > { %3256 = vmatprep.mubr.msk.bf16.mxu1 %vm654_vm9, %v4861_v28 }
 0x2c0   : > { %3257 = vmatmul.mubr.msk.bf16.vlgmr.msra.gmra.mxu1 %vm654_vm9, %v4890_v7 }
 0x2c1   : > { %3260 = vmatprep.mubr.msk.bf16.mxu1 %vm654_vm9, %v4887_v1 }
 0x2c8   : > { %3261 = vmatmul.mubr.msk.bf16.gmra.mxu1 %vm654_vm9, %v4916_v34 }
 0x2c9   : > { %3264 = vmatprep.mubr.msk.bf16.mxu1 %vm654_vm9, %v4913_v10 }
 0x2d0   : > { %3265 = vmatmul.mubr.msk.bf16.gmra.mxu1 %vm654_vm9, %v1910_v61 }
 0x2d1   : > { %3268 = vmatprep.mubr.msk.bf16.mxu1 %vm654_vm9, %v1912_v2 }
 0x2d8   : > { %3269 = vmatmul.mubr.msk.bf16.gmra.mxu1 %vm654_vm9, %v1914_v52 }
 0x2d9   : > { %3272 = vmatprep.mubr.msk.bf16.mxu1 %vm654_vm9, %v1916_v23 }
 0x2e0   : > { %3273 = vmatmul.mubr.msk.bf16.gmra.mxu1 %vm654_vm9, %v1918_v22 }
 0x2e1   : > { %3276 = vmatprep.mubr.msk.bf16.mxu1 %vm654_vm9, %v1920_v62 }
 0x2e8   : > { %3277 = vmatmul.mubr.msk.bf16.gmra.mxu1 %vm654_vm9, %v1922_v41 }
 0x2e9   : > { %3280 = vmatprep.mubr.msk.bf16.mxu1 %vm654_vm9, %v1924_v6 }
 0x2f0   : > { %3281 = vmatmul.mubr.msk.bf16.gmra.mxu1 %vm654_vm9, %v1926_v44 }
 0x2f1   : > { %3284 = vmatprep.mubr.msk.bf16.mxu1 %vm654_vm9, %v1928_v36 }
 0x2f8   : > { %3285 = vmatmul.mubr.msk.bf16.gmra.mxu1 %vm654_vm9, %v1926_v44 }
 0x340   : > { %v3190_v0 = vpop.f32.mrf.mxu1  ;;  %v3224_v58 = vpop.f32.mrf.mxu0 }
 0x341   : > { %v2186_v6 = vadd.f32 %v3224_v58, %v3190_v0 }
 0x342   : > { %v2008_v25 = vpop.f32.mrf.mxu1  ;;  %v2177_v48 = vpop.f32.mrf.mxu0 }
 0x343   : > { %v2178_v20 = vadd.f32 %v2177_v48, %v2008_v25 }
 0x344   : > { %v3191_v35 = vpop.f32.mrf.mxu1  ;;  %v3225_v47 = vpop.f32.mrf.mxu0 }
 0x345   : > { %v2189_v38 = vadd.f32 %v3225_v47, %v3191_v35 }
 0x346   : > { %v2011_v28 = vpop.f32.mrf.mxu1  ;;  %v2180_v24 = vpop.f32.mrf.mxu0 }
 0x347   : > { %v2181_v9 = vadd.f32 %v2180_v24, %v2011_v28 }
 0x348   : > { %v5036_v45 = vpop.f32.mrf.mxu1  ;;  %v3228_v1 = vpop.f32.mrf.mxu0 }
 0x349   : > { %v2202_v24 = vadd.f32 %v3228_v1, %v5036_v45 }
 0x34a   : > { %v2024_v46 = vpop.f32.mrf.mxu1  ;;  %v2193_v39 = vpop.f32.mrf.mxu0 }
 0x34b   : > { %v2194_v25 = vadd.f32 %v2193_v39, %v2024_v46 }
 0x34c   : > { %v5038_v27 = vpop.f32.mrf.mxu1  ;;  %v3229_v63 = vpop.f32.mrf.mxu0 }
 0x34e   : > { %v5040_v7 = vpop.f32.mrf.mxu1  ;;  %v2196_v34 = vpop.f32.mrf.mxu0 }
 0x350   : > { %v5042_v3 = vpop.f32.mrf.mxu1  ;;  %v5056_v16 = vpop.f32.mrf.mxu0 }
 0x352   : > { %v5044_v17 = vpop.f32.mrf.mxu1  ;;  %v5062_v33 = vpop.f32.mrf.mxu0 }
 0x354   : > { %v5046_v56 = vpop.f32.mrf.mxu1  ;;  %v5068_v42 = vpop.f32.mrf.mxu0 }
 0x356   : > { %v5048_v31 = vpop.f32.mrf.mxu1  ;;  %v5074_v14 = vpop.f32.mrf.mxu0 }
 0x358   : > { %v5050_v10 = vpop.f32.mrf.mxu1  ;;  %v5080_v23 = vpop.f32.mrf.mxu0 }
 0x35a   : > { %v5052_v55 = vpop.f32.mrf.mxu1  ;;  %v5086_v5 = vpop.f32.mrf.mxu0 }
 0x35c   : > { %v5054_v32 = vpop.f32.mrf.mxu1  ;;  %v5092_v40 = vpop.f32.mrf.mxu0 }
 0x35e   : > { %v5058_v37 = vpop.f32.mrf.mxu1  ;;  %v5098_v18 = vpop.f32.mrf.mxu0 }
 0x360   : > { %v5060_v26 = vpop.f32.mrf.mxu1  ;;  %v5104_v19 = vpop.f32.mrf.mxu0 }
 0x362   : > { %v5064_v2 = vpop.f32.mrf.mxu1  ;;  %v5108_v15 = vpop.f32.mrf.mxu0 }
 0x364   : > { %v5066_v61 = vpop.f32.mrf.mxu1  ;;  %v5112_v54 = vpop.f32.mrf.mxu0 }
 0x366   : > { %v5070_v21 = vpop.f32.mrf.mxu1  ;;  %v5122_v0 = vpop.f32.mrf.mxu0 }
 0x368   : > { %v5072_v59 = vpop.f32.mrf.mxu1 }
 0x36a   : > { %v5076_v11 = vpop.f32.mrf.mxu1 }
 0x36c   : > { %v5078_v13 = vpop.f32.mrf.mxu1 }
 0x36e   : > { %v5082_v52 = vpop.f32.mrf.mxu1 }
 0x370   : > { %v5084_v50 = vpop.f32.mrf.mxu1 }
 0x372   : > { %v5088_v8 = vpop.f32.mrf.mxu1 }
 0x374   : > { %v5090_v57 = vpop.f32.mrf.mxu1 }
 0x376   : > { %v5094_v53 = vpop.f32.mrf.mxu1 }
 0x378   : > { %v5096_v4 = vpop.f32.mrf.mxu1 }
 0x37a   : > { %v5100_v62 = vpop.f32.mrf.mxu1 }
 0x37c   : > { %v5102_v22 = vpop.f32.mrf.mxu1 }
 0x37e   : > { %v5106_v43 = vpop.f32.mrf.mxu1 }
 0x380   : > { %v3258_v49 = vpop.f32.mrf.mxu1 }
 0x381   : > { %v5114_v29 = vadd.f32 %v3258_v49, %v2186_v6 }
 0x382   : > { %v2348_v12 = vpop.f32.mrf.mxu1 }
 0x383   : > { %v5110_v41 = vadd.f32 %v2348_v12, %v2178_v20  ;;  %v2578_v58 = vmul.f32 %v5114_v29, %v5114_v29  ;;  %v2510_v46 = vsel %vm562_vm7, %v5114_v29, 0.0 }
 0x384   : > { %v3259_v30 = vpop.f32.mrf.mxu1 }
 0x385   : > { %v2576_v51 = vmul.f32 %v5110_v41, %v5110_v41  ;;  %v5118_v36 = vadd.f32 %v3259_v30, %v2189_v38  ;;  %v2507_v35 = vsel %vm562_vm7, %v5110_v41, 0.0  ;;  %v2205_v38 = vadd.f32 %v3229_v63, %v5038_v27 }
 0x386   : > { %v2351_v60 = vpop.f32.mrf.mxu1 }
 0x387   : > { %v5120_v44 = vadd.f32 %v2351_v60, %v2181_v9  ;;  %v2608_v20 = vsel %vm562_vm7, %v2576_v51, 0.0  ;;  %v2579_v12 = vmul.f32 %v5118_v36, %v5118_v36  ;;  %v2197_v9 = vadd.f32 %v2196_v34, %v5040_v7 }
 0x388   : > { %v3262_v48 = vpop.f32.mrf.mxu1  ;;  %v2512_v51 = vsel %vm562_vm7, %v5118_v36, 0.0 }
 0x389   : > { %5641 = vst [vmem:[#allocation4_spill] sm:$0xff] %v5120_v44  ;;  %v2508_v47 = vsel %vm562_vm7, %v5120_v44, 0.0  ;;  %v2577_v28 = vmul.f32 %v5120_v44, %v5120_v44  ;;  %v5143_v44 = vpop.f32.mrf.mxu0  ;;  %v2613_v7 = vsel %vm562_vm7, %v2579_v12, 0.0 }
 0x38a   : > { %v2509_v39 = vadd.f32 %v2508_v47, %v2507_v35  ;;  %v2364_v49 = vpop.f32.mrf.mxu1  ;;  %v2611_v35 = vsel %vm562_vm7, %v2578_v58, 0.0  ;;  %v5148_v47 = vadd.f32 %v3262_v48, %v2202_v24  ;;  %v2210_v58 = vadd.f32 %v5062_v33, %v5044_v17 }
 0x38b   : > { %v2609_v6 = vsel %vm562_vm7, %v2577_v28, 0.0  ;;  %v5139_v30 = vadd.f32 %v2364_v49, %v2194_v25 }
 0x38c   : > { %v2511_v60 = vadd.f32 %v2510_v46, %v2509_v39  ;;  %v2610_v45 = vadd.f32 %v2609_v6, %v2608_v20  ;;  %v3263_v1 = vpop.f32.mrf.mxu1  ;;  %v5161_v20 = vpop.f32.mrf.mxu0  ;;  %v2582_v6 = vmul.f32 %v5148_v47, %v5148_v47 }
 0x38d   : > { %v2580_v25 = vmul.f32 %v5139_v30, %v5139_v30  ;;  %v2514_v63 = vsel %vm562_vm7, %v5139_v30, 0.0  ;;  %v5155_v34 = vadd.f32 %v3263_v1, %v2205_v38  ;;  %v2518_v1 = vsel %vm562_vm7, %v5148_v47, 0.0 }
 0x38e   : > { %v2612_v28 = vadd.f32 %v2611_v35, %v2610_v45  ;;  %v2513_v49 = vadd.f32 %v2512_v51, %v2511_v60  ;;  %v2367_v27 = vpop.f32.mrf.mxu1 }
 0x38f   : > { %v5157_v46 = vadd.f32 %v2367_v27, %v2197_v9  ;;  %v2615_v12 = vsel %vm562_vm7, %v2580_v25, 0.0  ;;  %v2218_v9 = vadd.f32 %v5056_v16, %v5042_v3  ;;  %v2583_v35 = vmul.f32 %v5155_v34, %v5155_v34 }
 0x390   : > { %v2515_v48 = vadd.f32 %v2514_v63, %v2513_v49  ;;  %v2614_v24 = vadd.f32 %v2613_v7, %v2612_v28  ;;  %v3266_v39 = vpop.f32.mrf.mxu1  ;;  %v2221_v28 = vadd.f32 %v5068_v42, %v5046_v56  ;;  %v2213_v49 = vadd.f32 %v5074_v14, %v5048_v31  ;;  %v5183_v7 = vpop.f32.mrf.mxu0 }
 0x391   : > { %v2516_v60 = vsel %vm562_vm7, %v5157_v46, 0.0  ;;  %v2581_v38 = vmul.f32 %v5157_v46, %v5157_v46  ;;  %v2619_v63 = vsel %vm562_vm7, %v2582_v6, 0.0  ;;  %v2621_v31 = vsel %vm562_vm7, %v2583_v35, 0.0 }
 0x392   : > { %v2616_v17 = vadd.f32 %v2615_v12, %v2614_v24  ;;  %v2517_v33 = vadd.f32 %v2516_v60, %v2515_v48  ;;  %v2380_v45 = vpop.f32.mrf.mxu1  ;;  %v2520_v48 = vsel %vm562_vm7, %v5155_v34, 0.0  ;;  %v5188_v24 = vadd.f32 %v3266_v39, %v2218_v9 }
 0x393   : > { %v2617_v51 = vsel %vm562_vm7, %v2581_v38, 0.0  ;;  %v5177_v25 = vadd.f32 %v2380_v45, %v2210_v58  ;;  %v2226_v6 = vadd.f32 %v5086_v5, %v5052_v55 }
 0x394   : > { %v2519_v3 = vadd.f32 %v2518_v1, %v2517_v33  ;;  %v2618_v16 = vadd.f32 %v2617_v51, %v2616_v17  ;;  %v3267_v27 = vpop.f32.mrf.mxu1  ;;  %v5201_v33 = vpop.f32.mrf.mxu0  ;;  %v2586_v45 = vmul.f32 %v5188_v24, %v5188_v24 }
 0x395   : > { %v2584_v58 = vmul.f32 %v5177_v25, %v5177_v25  ;;  %v2522_v14 = vsel %vm562_vm7, %v5177_v25, 0.0  ;;  %v5195_v60 = vadd.f32 %v3267_v27, %v2221_v28  ;;  %v2234_v28 = vadd.f32 %v5080_v23, %v5050_v10 }
 0x396   : > { %v2620_v12 = vadd.f32 %v2619_v63, %v2618_v16  ;;  %v2521_v56 = vadd.f32 %v2520_v48, %v2519_v3  ;;  %v2383_v42 = vpop.f32.mrf.mxu1  ;;  %v2526_v3 = vsel %vm562_vm7, %v5188_v24, 0.0  ;;  %v2237_v48 = vadd.f32 %v5092_v40, %v5054_v32 }
 0x397   : > { %v5197_v38 = vadd.f32 %v2383_v42, %v2213_v49  ;;  %v2623_v1 = vsel %vm562_vm7, %v2584_v58, 0.0  ;;  %v2587_v16 = vmul.f32 %v5195_v60, %v5195_v60  ;;  %v2229_v58 = vadd.f32 %v5098_v18, %v5058_v37 }
 0x398   : > { %v2523_v39 = vadd.f32 %v2522_v14, %v2521_v56  ;;  %v2622_v9 = vadd.f32 %v2621_v31, %v2620_v12  ;;  %v3270_v17 = vpop.f32.mrf.mxu1  ;;  %v5223_v56 = vpop.f32.mrf.mxu0  ;;  %v2627_v42 = vsel %vm562_vm7, %v2586_v45, 0.0  ;;  %v2528_v31 = vsel %vm562_vm7, %v5195_v60, 0.0 }
 0x399   : > { %v2524_v35 = vsel %vm562_vm7, %v5197_v38, 0.0  ;;  %v2585_v51 = vmul.f32 %v5197_v38, %v5197_v38  ;;  %v5228_v14 = vadd.f32 %v3270_v17, %v2234_v28  ;;  %v2629_v37 = vsel %vm562_vm7, %v2587_v16, 0.0 }
 0x39a   : > { %v2624_v55 = vadd.f32 %v2623_v1, %v2622_v9  ;;  %v2525_v5 = vadd.f32 %v2524_v35, %v2523_v39  ;;  %v2396_v49 = vpop.f32.mrf.mxu1  ;;  %v2242_v45 = vadd.f32 %v5108_v15, %v5064_v2  ;;  %v5241_v28 = vpop.f32.mrf.mxu0  ;;  %v2250_v16 = vadd.f32 %v5104_v19, %v5060_v26 }
 0x39b   : > { %v2625_v27 = vsel %vm562_vm7, %v2585_v51, 0.0  ;;  %v5217_v63 = vadd.f32 %v2396_v49, %v2226_v6 }
 0x39c   : > { %v2527_v10 = vadd.f32 %v2526_v3, %v2525_v5  ;;  %v2626_v23 = vadd.f32 %v2625_v27, %v2624_v55  ;;  %v3271_v12 = vpop.f32.mrf.mxu1  ;;  %v2590_v55 = vmul.f32 %v5228_v14, %v5228_v14 }
 0x39d   : > { %v2588_v6 = vmul.f32 %v5217_v63, %v5217_v63  ;;  %v2530_v18 = vsel %vm562_vm7, %v5217_v63, 0.0  ;;  %v5235_v9 = vadd.f32 %v3271_v12, %v2237_v48  ;;  %v2534_v48 = vsel %vm562_vm7, %v5228_v14, 0.0 }
 0x39e   : > { %v2628_v39 = vadd.f32 %v2627_v42, %v2626_v23  ;;  %v2529_v32 = vadd.f32 %v2528_v31, %v2527_v10  ;;  %v2399_v40 = vpop.f32.mrf.mxu1  ;;  %v2253_v12 = vadd.f32 %v5112_v54, %v5066_v61  ;;  %v2245_v42 = vadd.f32 %v5122_v0, %v5070_v21 }
 0x39f   : > { %v5237_v1 = vadd.f32 %v2399_v40, %v2229_v58  ;;  %v2631_v5 = vsel %vm562_vm7, %v2588_v6, 0.0  ;;  %v2591_v58 = vmul.f32 %v5235_v9, %v5235_v9  ;;  %v5263_v6 = vpop.f32.mrf.mxu0 }
 0x3a0   : > { %v2531_v17 = vadd.f32 %v2530_v18, %v2529_v32  ;;  %v2630_v35 = vadd.f32 %v2629_v37, %v2628_v39  ;;  %v3274_v51 = vpop.f32.mrf.mxu1  ;;  %v2635_v39 = vsel %vm562_vm7, %v2590_v55, 0.0  ;;  %v2536_v32 = vsel %vm562_vm7, %v5235_v9, 0.0 }
 0x3a1   : > { %v2532_v49 = vsel %vm562_vm7, %v5237_v1, 0.0  ;;  %v2589_v3 = vmul.f32 %v5237_v1, %v5237_v1  ;;  %v5268_v40 = vadd.f32 %v3274_v51, %v2250_v16  ;;  %v2637_v21 = vsel %vm562_vm7, %v2591_v58, 0.0 }
 0x3a2   : > { %v2632_v2 = vadd.f32 %v2631_v5, %v2630_v35  ;;  %v2533_v15 = vadd.f32 %v2532_v49, %v2531_v17  ;;  %v2412_v27 = vpop.f32.mrf.mxu1  ;;  %v2258_v35 = vadd.f32 %v5161_v20, %v5076_v11  ;;  %v2276_v49 = vpop.f32.mrf.mxu0 }
 0x3a3   : > { %v2633_v10 = vsel %vm562_vm7, %v2589_v3, 0.0  ;;  %v5257_v23 = vadd.f32 %v2412_v27, %v2242_v45  ;;  %v2594_v3 = vmul.f32 %v5268_v40, %v5268_v40  ;;  %v2266_v27 = vadd.f32 %v5143_v44, %v5072_v59 }
 0x3a4   : > { %v2535_v26 = vadd.f32 %v2534_v48, %v2533_v15  ;;  %v2634_v19 = vadd.f32 %v2633_v10, %v2632_v2  ;;  %v3275_v31 = vpop.f32.mrf.mxu1  ;;  %v2542_v58 = vsel %vm562_vm7, %v5268_v40, 0.0 }
 0x3a5   : > { %v2592_v37 = vmul.f32 %v5257_v23, %v5257_v23  ;;  %v2538_v0 = vsel %vm562_vm7, %v5257_v23, 0.0  ;;  %v5275_v45 = vadd.f32 %v3275_v31, %v2253_v12 }
 0x3a6   : > { %v2636_v18 = vadd.f32 %v2635_v39, %v2634_v19  ;;  %v2537_v61 = vadd.f32 %v2536_v32, %v2535_v26  ;;  %v2415_v54 = vpop.f32.mrf.mxu1  ;;  %v2269_v26 = vadd.f32 %v5183_v7, %v5078_v13  ;;  %v2261_v19 = vadd.f32 %v5201_v33, %v5082_v52  ;;  %v3252_v39 = vpop.f32.mrf.mxu0 }
 0x3a7   : > { %v5277_v17 = vadd.f32 %v2415_v54, %v2245_v42  ;;  %v2639_v16 = vsel %vm562_vm7, %v2592_v37, 0.0  ;;  %v2595_v10 = vmul.f32 %v5275_v45, %v5275_v45  ;;  %v2643_v32 = vsel %vm562_vm7, %v2594_v3, 0.0 }
 0x3a8   : > { %v2539_v51 = vadd.f32 %v2538_v0, %v2537_v61  ;;  %v2638_v55 = vadd.f32 %v2637_v21, %v2636_v18  ;;  %v3278_v5 = vpop.f32.mrf.mxu1  ;;  %v2544_v37 = vsel %vm562_vm7, %v5275_v45, 0.0  ;;  %v2289_v3 = vpop.f32.mrf.mxu0 }
 0x3a9   : > { %v2540_v2 = vsel %vm562_vm7, %v5277_v17, 0.0  ;;  %v2593_v15 = vmul.f32 %v5277_v17, %v5277_v17  ;;  %v5304_v18 = vadd.f32 %v3278_v5, %v2266_v27  ;;  %v2645_v7 = vsel %vm562_vm7, %v2595_v10, 0.0 }
 0x3aa   : > { %v2640_v48 = vadd.f32 %v2639_v16, %v2638_v55  ;;  %v2541_v11 = vadd.f32 %v2540_v2, %v2539_v51  ;;  %v2428_v20 = vpop.f32.mrf.mxu1 }
 0x3ab   : > { %v2641_v12 = vsel %vm562_vm7, %v2593_v15, 0.0  ;;  %v5295_v42 = vadd.f32 %v2428_v20, %v2258_v35  ;;  %v2274_v35 = vadd.f32 %v5241_v28, %v5088_v8  ;;  %v2598_v16 = vmul.f32 %v5304_v18, %v5304_v18 }
 0x3ac   : > { %v2543_v59 = vadd.f32 %v2542_v58, %v2541_v11  ;;  %v2642_v44 = vadd.f32 %v2641_v12, %v2640_v48  ;;  %v3279_v31 = vpop.f32.mrf.mxu1  ;;  %v2282_v48 = vadd.f32 %v5223_v56, %v5084_v50  ;;  %v2550_v20 = vsel %vm562_vm7, %v5304_v18, 0.0 }
 0x3ad   : > { %v2596_v61 = vmul.f32 %v5295_v42, %v5295_v42  ;;  %v2546_v52 = vsel %vm562_vm7, %v5295_v42, 0.0  ;;  %v5311_v33 = vadd.f32 %v3279_v31, %v2269_v26  ;;  %v2285_v26 = vadd.f32 %v5263_v6, %v5090_v57 }
 0x3ae   : > { %v2644_v54 = vadd.f32 %v2643_v32, %v2642_v44  ;;  %v2545_v21 = vadd.f32 %v2544_v37, %v2543_v59  ;;  %v2431_v13 = vpop.f32.mrf.mxu1  ;;  %v3253_v44 = vpop.f32.mrf.mxu0  ;;  %v2651_v31 = vsel %vm562_vm7, %v2598_v16, 0.0 }
 0x3af   : > { %v5313_v0 = vadd.f32 %v2431_v13, %v2261_v19  ;;  %v2647_v2 = vsel %vm562_vm7, %v2596_v61, 0.0  ;;  %v2599_v58 = vmul.f32 %v5311_v33, %v5311_v33  ;;  %v2277_v19 = vadd.f32 %v2276_v49, %v5094_v53 }
 0x3b0   : > { %v2547_v51 = vadd.f32 %v2546_v52, %v2545_v21  ;;  %v2646_v55 = vadd.f32 %v2645_v7, %v2644_v54  ;;  %v3282_v5 = vpop.f32.mrf.mxu1  ;;  %v2552_v32 = vsel %vm562_vm7, %v5311_v33, 0.0  ;;  %v2290_v7 = vadd.f32 %v2289_v3, %v5100_v62 }
 0x3b1   : > { %v2548_v15 = vsel %vm562_vm7, %v5313_v0, 0.0  ;;  %v2597_v27 = vmul.f32 %v5313_v0, %v5313_v0  ;;  %v5339_v37 = vadd.f32 %v3282_v5, %v2282_v48  ;;  %v2653_v57 = vsel %vm562_vm7, %v2599_v58, 0.0 }
 0x3b2   : > { %v2648_v11 = vadd.f32 %v2647_v2, %v2646_v55  ;;  %v2549_v8 = vadd.f32 %v2548_v15, %v2547_v51  ;;  %v2444_v28 = vpop.f32.mrf.mxu1  ;;  %v2292_v55 = vpop.f32.mrf.mxu0  ;;  %v2301_v58 = vadd.f32 %v3253_v44, %v5102_v22 }
 0x3b3   : > { %v2649_v10 = vsel %vm562_vm7, %v2597_v27, 0.0  ;;  %v5331_v12 = vadd.f32 %v2444_v28, %v2274_v35  ;;  %v2602_v5 = vmul.f32 %v5339_v37, %v5339_v37  ;;  %v2298_v27 = vadd.f32 %v3252_v39, %v5096_v4 }
 0x3b4   : > { %v2551_v59 = vadd.f32 %v2550_v20, %v2549_v8  ;;  %v2650_v50 = vadd.f32 %v2649_v10, %v2648_v11  ;;  %v3283_v56 = vpop.f32.mrf.mxu1  ;;  %v2558_v3 = vsel %vm562_vm7, %v5339_v37, 0.0  ;;  %v2293_v10 = vadd.f32 %v2292_v55, %v5106_v43 }
 0x3b5   : > { %v2600_v61 = vmul.f32 %v5331_v12, %v5331_v12  ;;  %v2554_v53 = vsel %vm562_vm7, %v5331_v12, 0.0  ;;  %v5346_v6 = vadd.f32 %v3283_v56, %v2285_v26  ;;  %v2659_v39 = vsel %vm562_vm7, %v2602_v5, 0.0 }
 0x3b6   : > { %v2652_v54 = vadd.f32 %v2651_v31, %v2650_v50  ;;  %v2553_v21 = vadd.f32 %v2552_v32, %v2551_v59  ;;  %v2447_v13 = vpop.f32.mrf.mxu1 }
 0x3b7   : > { %v5348_v49 = vadd.f32 %v2447_v13, %v2277_v19  ;;  %v2655_v16 = vsel %vm562_vm7, %v2600_v61, 0.0  ;;  %v2603_v8 = vmul.f32 %v5346_v6, %v5346_v6  ;;  %v2560_v59 = vsel %vm562_vm7, %v5346_v6, 0.0 }
 0x3b8   : > { %v2555_v52 = vadd.f32 %v2554_v53, %v2553_v21  ;;  %v2654_v35 = vadd.f32 %v2653_v57, %v2652_v54  ;;  %v3286_v51 = vpop.f32.mrf.mxu1 }
 0x3b9   : > { %v2556_v2 = vsel %vm562_vm7, %v5348_v49, 0.0  ;;  %v2601_v15 = vmul.f32 %v5348_v49, %v5348_v49  ;;  %v5371_v50 = vadd.f32 %v3286_v51, %v2298_v27  ;;  %v2661_v22 = vsel %vm562_vm7, %v2603_v8, 0.0 }
 0x3ba   : > { %v2656_v48 = vadd.f32 %v2655_v16, %v2654_v35  ;;  %v2557_v11 = vadd.f32 %v2556_v2, %v2555_v52  ;;  %v2460_v62 = vpop.f32.mrf.mxu1 }
 0x3bb   : > { %v2657_v28 = vsel %vm562_vm7, %v2601_v15, 0.0  ;;  %v5364_v20 = vadd.f32 %v2460_v62, %v2290_v7  ;;  %v2606_v57 = vmul.f32 %v5371_v50, %v5371_v50  ;;  %v2566_v55 = vsel %vm562_vm7, %v5371_v50, 0.0 }
 0x3bc   : > { %v2559_v26 = vadd.f32 %v2558_v3, %v2557_v11  ;;  %v2658_v19 = vadd.f32 %v2657_v28, %v2656_v48  ;;  %v3287_v4 = vpop.f32.mrf.mxu1 }
 0x3bd   : > { %v2604_v56 = vmul.f32 %v5364_v20, %v5364_v20  ;;  %v2562_v43 = vsel %vm562_vm7, %v5364_v20, 0.0  ;;  %v5378_v44 = vadd.f32 %v3287_v4, %v2301_v58  ;;  %v2667_v27 = vsel %vm562_vm7, %v2606_v57, 0.0 }
 0x3be   : > { %v2660_v31 = vadd.f32 %v2659_v39, %v2658_v19  ;;  %v2561_v32 = vadd.f32 %v2560_v59, %v2559_v26  ;;  %v2463_v61 = vpop.f32.mrf.mxu1 }
 0x3bf   : > { %v5380_v54 = vadd.f32 %v2463_v61, %v2293_v10  ;;  %v2663_v53 = vsel %vm562_vm7, %v2604_v56, 0.0  ;;  %v2607_v5 = vmul.f32 %v5378_v44, %v5378_v44  ;;  %v2568_v48 = vsel %vm562_vm7, %v5378_v44, 0.0 }
 0x3c0   : > { %v2563_v21 = vadd.f32 %v2562_v43, %v2561_v32  ;;  %v2662_v13 = vadd.f32 %v2661_v22, %v2660_v31 }
 0x3c1   : > { %v2564_v7 = vsel %vm562_vm7, %v5380_v54, 0.0  ;;  %v2605_v52 = vmul.f32 %v5380_v54, %v5380_v54  ;;  %v2669_v3 = vsel %vm562_vm7, %v2607_v5, 0.0 }
 0x3c2   : > { %v2664_v35 = vadd.f32 %v2663_v53, %v2662_v13  ;;  %v2565_v51 = vadd.f32 %v2564_v7, %v2563_v21 }
 0x3c3   : > { %v2665_v16 = vsel %vm562_vm7, %v2605_v52, 0.0 }
 0x3c4   : > { %v2567_v2 = vadd.f32 %v2566_v55, %v2565_v51  ;;  %v2666_v15 = vadd.f32 %v2665_v16, %v2664_v35 }
 0x3c6   : > { %v2569_v11 = vadd.f32 %v2568_v48, %v2567_v2  ;;  %v2668_v62 = vadd.f32 %v2667_v27, %v2666_v15 }
 0x3c8   : > { %v2570_v8 = vrot.slane %v2569_v11, 4  ;;  %v2670_v28 = vadd.f32 %v2669_v3, %v2668_v62 }
 0x3ca   : > { %v2571_v58 = vadd.f32 %v2570_v8, %v2569_v11  ;;  %v2671_v10 = vrot.slane %v2670_v28, 4 }
 0x3cc   : > { %v2572_v26 = vrot.slane %v2571_v58, 2  ;;  %v2672_v19 = vadd.f32 %v2671_v10, %v2670_v28 }
 0x3ce   : > { %v2573_v4 = vadd.f32 %v2572_v26, %v2571_v58  ;;  %v2673_v39 = vrot.slane %v2672_v19, 2 }
 0x3d0   : > { %v2574_v59 = vrot.slane %v2573_v4, 1  ;;  %v2674_v56 = vadd.f32 %v2673_v39, %v2672_v19 }
 0x3d2   : > { %v2575_v31 = vadd.f32 %v2574_v59, %v2573_v4  ;;  %v2675_v32 = vrot.slane %v2674_v56, 1 }
 0x3d4   : > { %v2676_v61 = vadd.f32 %v2675_v32, %v2674_v56  ;;  %v5398_v22 = vmul.f32 0.00390625, %v2575_v31 }
 0x3d6   : > { %v2678_v43 = vmul.f32 0.00390625, %v2676_v61  ;;  %v2679_v21 = vmul.f32 %v5398_v22, %v5398_v22  ;;  %v2691_v57 = vsub.f32 %v5197_v38, %v5398_v22  ;;  %v2694_v53 = vsub.f32 %v5217_v63, %v5398_v22 }
 0x3d7   : > { %v2695_v52 = vsub.f32 %v5237_v1, %v5398_v22  ;;  %v2696_v35 = vsub.f32 %v5228_v14, %v5398_v22  ;;  %v2697_v51 = vsub.f32 %v5235_v9, %v5398_v22  ;;  %v2698_v55 = vsub.f32 %v5257_v23, %v5398_v22 }
 0x3d8   : > { %v2680_v13 = vsub.f32 %v2678_v43, %v2679_v21  ;;  %v2699_v5 = vsub.f32 %v5277_v17, %v5398_v22  ;;  %v2700_v38 = vsub.f32 %v5268_v40, %v5398_v22  ;;  %v2701_v63 = vsub.f32 %v5275_v45, %v5398_v22 }
 0x3d9   : > { %v2702_v1 = vsub.f32 %v5295_v42, %v5398_v22  ;;  %v2704_v14 = vsub.f32 %v5304_v18, %v5398_v22  ;;  %v2705_v9 = vsub.f32 %v5311_v33, %v5398_v22  ;;  %v2706_v23 = vsub.f32 %v5331_v12, %v5398_v22  ;;  %v5642_v12 = vld [vmem:[#allocation4_spill] sm:$0xff] }
 0x3da   : > { %v2681_v7 = vmax.f32 %v2680_v13, 0.0  ;;  %v2708_v17 = vsub.f32 %v5339_v37, %v5398_v22  ;;  %v2709_v40 = vsub.f32 %v5346_v6, %v5398_v22  ;;  %v2710_v45 = vsub.f32 %v5364_v20, %v5398_v22 }
 0x3db   : > { %v2712_v42 = vsub.f32 %v5371_v50, %v5398_v22  ;;  %v2713_v18 = vsub.f32 %v5378_v44, %v5398_v22  ;;  %v2682_v33 = vsub.f32 %v5110_v41, %v5398_v22  ;;  %v2683_v37 = vsub.f32 %v5642_v12, %v5398_v22 }
 0x3dc   : > { %v2714_v16 = vadd.f32 1e-05, %v2681_v7  ;;  %v2684_v6 = vsub.f32 %v5114_v29, %v5398_v22  ;;  %v2685_v20 = vsub.f32 %v5118_v36, %v5398_v22  ;;  %v2686_v50 = vsub.f32 %v5139_v30, %v5398_v22 }
 0x3dd   : > { %v2687_v44 = vsub.f32 %v5157_v46, %v5398_v22  ;;  %v2688_v2 = vsub.f32 %v5148_v47, %v5398_v22  ;;  %v2689_v41 = vsub.f32 %v5155_v34, %v5398_v22  ;;  %v2690_v15 = vsub.f32 %v5177_v25, %v5398_v22 }
 0x3de   : > { %3312 = vrsqrt.f32 %v2714_v16  ;;  %v2692_v29 = vsub.f32 %v5188_v24, %v5398_v22  ;;  %v2693_v36 = vsub.f32 %v5195_v60, %v5398_v22  ;;  %v2703_v30 = vsub.f32 %v5313_v0, %v5398_v22 }
 0x3df   : > { %v2707_v46 = vsub.f32 %v5348_v49, %v5398_v22  ;;  %v2711_v47 = vsub.f32 %v5380_v54, %v5398_v22 }
 0x3eb   : > { %v3313_v27 = vpop.eup %3312 }
 0x3ec   : > { %v2716_v34 = vmul.f32 %v3313_v27, %v2682_v33  ;;  %v2717_v48 = vmul.f32 %v3313_v27, %v2683_v37  ;;  %v2718_v11 = vmul.f32 %v3313_v27, %v2684_v6  ;;  %v2719_v25 = vmul.f32 %v3313_v27, %v2685_v20  ;;  %v3322_v33 = vld [vmem:[%s3398_s21 + $0x40] sm:$0xff]  ;;  %v3323_v37 = vld [vmem:[%s3398_s21 + $0x48] sm:$0xff]  ;;  %v3324_v20 = vld [vmem:[%s3398_s21 + $0x50] sm:$0xff] }
 0x3ed   : > { %v2720_v62 = vmul.f32 %v3313_v27, %v2686_v50  ;;  %v2721_v3 = vmul.f32 %v3313_v27, %v2687_v44  ;;  %v2722_v24 = vmul.f32 %v3313_v27, %v2688_v2  ;;  %v2723_v8 = vmul.f32 %v3313_v27, %v2689_v41  ;;  %v3325_v44 = vld [vmem:[%s3398_s21 + $0x58] sm:$0xff]  ;;  %v3326_v41 = vld [vmem:[%s3398_s21 + $0x60] sm:$0xff] }
 0x3ee   : > { %v2724_v28 = vmul.f32 %v3313_v27, %v2690_v15  ;;  %v2725_v58 = vmul.f32 %v3313_v27, %v2691_v57  ;;  %v2726_v60 = vmul.f32 %v3313_v27, %v2692_v29  ;;  %v2727_v10 = vmul.f32 %v3313_v27, %v2693_v36  ;;  %v3327_v29 = vld [vmem:[%s3398_s21 + $0x68] sm:$0xff]  ;;  %v3328_v36 = vld [vmem:[%s3398_s21 + $0x70] sm:$0xff] }
 0x3ef   : > { %v2728_v26 = vmul.f32 %v3313_v27, %v2694_v53  ;;  %v2729_v0 = vmul.f32 %v3313_v27, %v2695_v52  ;;  %v2730_v19 = vmul.f32 %v3313_v27, %v2696_v35  ;;  %v2731_v49 = vmul.f32 %v3313_v27, %v2697_v51  ;;  %v3314_v35 = vld [vmem:[%s3398_s21] sm:$0xff] }
 0x3f0   : > { %v2732_v4 = vmul.f32 %v3313_v27, %v2698_v55  ;;  %v2733_v39 = vmul.f32 %v3313_v27, %v2699_v5  ;;  %v2734_v54 = vmul.f32 %v3313_v27, %v2700_v38  ;;  %v2735_v59 = vmul.f32 %v3313_v27, %v2701_v63  ;;  %v3315_v55 = vld [vmem:[%s3398_s21 + $0x8] sm:$0xff]  ;;  %v3316_v38 = vld [vmem:[%s3398_s21 + $0x10] sm:$0xff] }
 0x3f1   : > { %v5466_v56 = vmul.f32 %v3313_v27, %v2702_v1  ;;  %v5468_v31 = vmul.f32 %v3313_v27, %v2703_v30  ;;  %v5470_v32 = vmul.f32 %v3313_v27, %v2704_v14  ;;  %v5472_v61 = vmul.f32 %v3313_v27, %v2705_v9  ;;  %v3317_v1 = vld [vmem:[%s3398_s21 + $0x18] sm:$0xff]  ;;  %v3318_v9 = vld [vmem:[%s3398_s21 + $0x20] sm:$0xff] }
 0x3f2   : > { %v5474_v22 = vmul.f32 %v3313_v27, %v2706_v23  ;;  %v5476_v43 = vmul.f32 %v3313_v27, %v2707_v46  ;;  %v5478_v21 = vmul.f32 %v3313_v27, %v2708_v17  ;;  %v5480_v13 = vmul.f32 %v3313_v27, %v2709_v40  ;;  %v3319_v17 = vld [vmem:[%s3398_s21 + $0x28] sm:$0xff]  ;;  %v3329_v46 = vld [vmem:[%s3398_s21 + $0x78] sm:$0xff] }
 0x3f3   : > { %v5489_v57 = vmul.f32 %v3313_v27, %v2710_v45  ;;  %v5491_v53 = vmul.f32 %v3313_v27, %v2711_v47  ;;  %v5493_v7 = vmul.f32 %v3313_v27, %v2712_v42  ;;  %v5495_v52 = vmul.f32 %v3313_v27, %v2713_v18  ;;  %v3320_v45 = vld [vmem:[%s3398_s21 + $0x30] sm:$0xff]  ;;  %v3321_v18 = vld [vmem:[%s3398_s21 + $0x38] sm:$0xff] }
 0x3f4   : > { %v2748_v51 = vadd.f32 %v3314_v35, %v2716_v34  ;;  %v2749_v5 = vadd.f32 %v3315_v55, %v2717_v48  ;;  %v2750_v63 = vadd.f32 %v3316_v38, %v2718_v11  ;;  %v2751_v14 = vadd.f32 %v3317_v1, %v2719_v25  ;;  %v3330_v34 = vld [vmem:[%s3398_s21 + $0x80] sm:$0xff]  ;;  %v3331_v11 = vld [vmem:[%s3398_s21 + $0x88] sm:$0xff]  ;;  %v3344_v35 = vld [vmem:[%s3398_s21 + $0xf0] sm:$0xff] }
 0x3f5   : > { %v2752_v23 = vadd.f32 %v3318_v9, %v2720_v62  ;;  %v2753_v40 = vadd.f32 %v3319_v17, %v2721_v3  ;;  %v2754_v42 = vadd.f32 %v3320_v45, %v2722_v24  ;;  %v2755_v16 = vadd.f32 %v3321_v18, %v2723_v8  ;;  %v3332_v62 = vld [vmem:[%s3398_s21 + $0x90] sm:$0xff]  ;;  %v3333_v24 = vld [vmem:[%s3398_s21 + $0x98] sm:$0xff] }
 0x3f6   : > { %v2756_v12 = vadd.f32 %v3322_v33, %v2724_v28  ;;  %v2757_v6 = vadd.f32 %v3323_v37, %v2725_v58  ;;  %v2758_v50 = vadd.f32 %v3324_v20, %v2726_v60  ;;  %v2759_v2 = vadd.f32 %v3325_v44, %v2727_v10  ;;  %2780 = vst.msk [vmem:[%s5487_s7] sm:$0xff] %vm562_vm7, %v2748_v51  ;;  %v3334_v28 = vld [vmem:[%s3398_s21 + $0xa0] sm:$0xff]  ;;  %v3335_v60 = vld [vmem:[%s3398_s21 + $0xa8] sm:$0xff]  ;;  %v3345_v55 = vld [vmem:[%s3398_s21 + $0xf8] sm:$0xff] }
 0x3f7   : > { %2781 = vst.msk [vmem:[%s5487_s7 + $0x8] sm:$0xff] %vm562_vm7, %v2749_v5  ;;  %2782 = vst.msk [vmem:[%s5487_s7 + $0x10] sm:$0xff] %vm562_vm7, %v2750_v63  ;;  %v2760_v15 = vadd.f32 %v3326_v41, %v2728_v26  ;;  %v2761_v27 = vadd.f32 %v3327_v29, %v2729_v0  ;;  %v2762_v30 = vadd.f32 %v3328_v36, %v2730_v19  ;;  %v3336_v26 = vld [vmem:[%s3398_s21 + $0xb0] sm:$0xff]  ;;  %v3337_v19 = vld [vmem:[%s3398_s21 + $0xb8] sm:$0xff] }
 0x3f8   : > { %2783 = vst.msk [vmem:[%s5487_s7 + $0x18] sm:$0xff] %vm562_vm7, %v2751_v14  ;;  %v2763_v47 = vadd.f32 %v3329_v46, %v2731_v49  ;;  %2784 = vst.msk [vmem:[%s5487_s7 + $0x20] sm:$0xff] %vm562_vm7, %v2752_v23  ;;  %v2764_v48 = vadd.f32 %v3330_v34, %v2732_v4  ;;  %v2765_v25 = vadd.f32 %v3331_v11, %v2733_v39  ;;  %v3338_v4 = vld [vmem:[%s3398_s21 + $0xc0] sm:$0xff] }
 0x3f9   : > { %2785 = vst.msk [vmem:[%s5487_s7 + $0x28] sm:$0xff] %vm562_vm7, %v2753_v40  ;;  %2786 = vst.msk [vmem:[%s5487_s7 + $0x30] sm:$0xff] %vm562_vm7, %v2754_v42  ;;  %v2766_v3 = vadd.f32 %v3332_v62, %v2734_v54  ;;  %v2767_v8 = vadd.f32 %v3333_v24, %v2735_v59  ;;  %v2768_v58 = vadd.f32 %v3334_v28, %v5466_v56  ;;  %v3339_v54 = vld [vmem:[%s3398_s21 + $0xc8] sm:$0xff]  ;;  %v3340_v56 = vld [vmem:[%s3398_s21 + $0xd0] sm:$0xff] }
 0x3fa   : > { %2787 = vst.msk [vmem:[%s5487_s7 + $0x38] sm:$0xff] %vm562_vm7, %v2755_v16  ;;  %2788 = vst.msk [vmem:[%s5487_s7 + $0x40] sm:$0xff] %vm562_vm7, %v2756_v12  ;;  %v2769_v10 = vadd.f32 %v3335_v60, %v5468_v31  ;;  %v2770_v0 = vadd.f32 %v3336_v26, %v5470_v32  ;;  %v2771_v49 = vadd.f32 %v3337_v19, %v5472_v61  ;;  %v3341_v32 = vld [vmem:[%s3398_s21 + $0xd8] sm:$0xff] }
 0x3fb   : > { %2789 = vst.msk [vmem:[%s5487_s7 + $0x48] sm:$0xff] %vm562_vm7, %v2757_v6  ;;  %2790 = vst.msk [vmem:[%s5487_s7 + $0x50] sm:$0xff] %vm562_vm7, %v2758_v50  ;;  %v2772_v39 = vadd.f32 %v3338_v4, %v5474_v22  ;;  %v2773_v59 = vadd.f32 %v3339_v54, %v5476_v43  ;;  %v2774_v31 = vadd.f32 %v3340_v56, %v5478_v21  ;;  %v3342_v22 = vld [vmem:[%s3398_s21 + $0xe0] sm:$0xff]  ;;  %v3343_v21 = vld [vmem:[%s3398_s21 + $0xe8] sm:$0xff] }
 0x3fc   : > { %2791 = vst.msk [vmem:[%s5487_s7 + $0x58] sm:$0xff] %vm562_vm7, %v2759_v2  ;;  %2792 = vst.msk [vmem:[%s5487_s7 + $0x60] sm:$0xff] %vm562_vm7, %v2760_v15  ;;  %v2775_v61 = vadd.f32 %v3341_v32, %v5480_v13  ;;  %v2776_v43 = vadd.f32 %v3342_v22, %v5489_v57  ;;  %v2777_v13 = vadd.f32 %v3343_v21, %v5491_v53 }
 0x3fd   : > { %2793 = vst.msk [vmem:[%s5487_s7 + $0x68] sm:$0xff] %vm562_vm7, %v2761_v27  ;;  %2794 = vst.msk [vmem:[%s5487_s7 + $0x70] sm:$0xff] %vm562_vm7, %v2762_v30  ;;  %v2778_v51 = vadd.f32 %v3344_v35, %v5493_v7  ;;  %v2779_v5 = vadd.f32 %v3345_v55, %v5495_v52 }
 0x3fe   : > { %2795 = vst.msk [vmem:[%s5487_s7 + $0x78] sm:$0xff] %vm562_vm7, %v2763_v47  ;;  %2796 = vst.msk [vmem:[%s5487_s7 + $0x80] sm:$0xff] %vm562_vm7, %v2764_v48 }
 0x3ff   : > { %2797 = vst.msk [vmem:[%s5487_s7 + $0x88] sm:$0xff] %vm562_vm7, %v2765_v25  ;;  %2798 = vst.msk [vmem:[%s5487_s7 + $0x90] sm:$0xff] %vm562_vm7, %v2766_v3 }
 0x400   : > { %2799 = vst.msk [vmem:[%s5487_s7 + $0x98] sm:$0xff] %vm562_vm7, %v2767_v8  ;;  %2800 = vst.msk [vmem:[%s5487_s7 + $0xa0] sm:$0xff] %vm562_vm7, %v2768_v58 }
 0x401   : > { %2801 = vst.msk [vmem:[%s5487_s7 + $0xa8] sm:$0xff] %vm562_vm7, %v2769_v10  ;;  %2802 = vst.msk [vmem:[%s5487_s7 + $0xb0] sm:$0xff] %vm562_vm7, %v2770_v0 }
 0x402   : > { %2803 = vst.msk [vmem:[%s5487_s7 + $0xb8] sm:$0xff] %vm562_vm7, %v2771_v49  ;;  %2804 = vst.msk [vmem:[%s5487_s7 + $0xc0] sm:$0xff] %vm562_vm7, %v2772_v39 }
 0x403   : > { %2805 = vst.msk [vmem:[%s5487_s7 + $0xc8] sm:$0xff] %vm562_vm7, %v2773_v59  ;;  %2806 = vst.msk [vmem:[%s5487_s7 + $0xd0] sm:$0xff] %vm562_vm7, %v2774_v31 }
 0x404   : > { %2807 = vst.msk [vmem:[%s5487_s7 + $0xd8] sm:$0xff] %vm562_vm7, %v2775_v61  ;;  %2808 = vst.msk [vmem:[%s5487_s7 + $0xe0] sm:$0xff] %vm562_vm7, %v2776_v43 }
 0x405   : > { %2809 = vst.msk [vmem:[%s5487_s7 + $0xe8] sm:$0xff] %vm562_vm7, %v2777_v13  ;;  %2810 = vst.msk [vmem:[%s5487_s7 + $0xf0] sm:$0xff] %vm562_vm7, %v2778_v51 }
 0x406   : > { %2811 = vst.msk [vmem:[%s5487_s7 + $0xf8] sm:$0xff] %vm562_vm7, %v2779_v5 }
 0x407 PF: > { %s13_s12 = sadd.s32 1, %s3352_s12  }
 0x408   : > { %p10_p4 = scmp.ge.s32.totalorder %s13_s12, 4  }
 0x40a   :  { %12 = sbr.rel (!%p10_p4) target bundleno = 1 (0x1), region = 62 }

</bundles_post_ra>
